<compile_context>
chip_gen: v7x
topology: tpu7x:2x2x1
jax: 0.10.0
libtpu: 0.0.40
codegen_flags: <defaults>
</compile_context>

<pallas_src>
import functools

import jax
import jax.numpy as jnp
from jax import lax
from jax.experimental import pallas as pl
from jax.experimental.pallas import tpu as pltpu


def _round_up(x, m):
    return ((x + m - 1) // m) * m


def _pad_gate_cols(w, h, h_pad):
    """Pad each of the 4 PyTorch gate blocks [i|f|g|o] along the last axis to h_pad."""
    if h == h_pad:
        return w
    blocks = jnp.split(w, 4, axis=-1)
    pad = [(0, 0)] * (w.ndim - 1) + [(0, h_pad - h)]
    return jnp.concatenate([jnp.pad(blk, pad) for blk in blocks], axis=-1)


def _lstm_chunk_kernel(x_ref, wih_ref, whh_ref, b_ref, wfc_ref, bfc_ref,
                       out_ref, h_sc, c_sc, gx_sc, *,
                       t_s, hidden, seq_len, mask_tail, compute_dtype):
    """One grid step = one (batch_tile, time_chunk); the recurrence runs in-kernel.

    CORRECTNESS NOTE: the h/c carry in VMEM scratch relies on
      * the time-chunk axis being the INNERMOST grid axis and marked "arbitrary",
      * the batch axis being outermost,
    so all chunks of one batch tile run back-to-back on one core.  Do not reorder
    the grid or the dimension_semantics without re-deriving this.
    """
    tc = pl.program_id(1)

    @pl.when(tc == 0)
    def _init():
        h_sc[...] = jnp.zeros_like(h_sc)
        c_sc[...] = jnp.zeros_like(c_sc)

    t_b = h_sc.shape[0]            # batch-tile rows (padded to %8)
    H = hidden                     # padded hidden (%128) -> lane-aligned gate slices
    e = x_ref.shape[-1]

    # ---- Hoisted input-to-hidden matmul for the whole chunk (bias folded in). ----
    # bf16 MXU operands, f32 accumulation; off the serial critical path.
    x_flat = x_ref[...].reshape(t_s * t_b, e).astype(compute_dtype)
    gx = (jnp.dot(x_flat, wih_ref[...], preferred_element_type=jnp.float32)
          + b_ref[...])                                            # (T_S*B, 4H) f32
    gx_sc[...] = gx.reshape(t_s, t_b, 4 * H)

    # Loop-invariant weight load hoisted out of the unrolled step closure.
    w_hh = whh_ref[...]

    if mask_tail:
        # cdiv chunking: the last chunk may be only partially valid.
        valid = jnp.minimum(t_s, seq_len - tc * t_s)

    # ---- Serial recurrence over the chunk: only h @ W_hh on the critical path. ----
    def step(t, carry):
        h_prev, c_prev = carry
        gates = gx_sc[t] + jnp.dot(h_prev.astype(compute_dtype), w_hh,
                                   preferred_element_type=jnp.float32)  # (B, 4H)
        # PyTorch gate order [i | f | g | o]; H%128==0 -> lane-aligned slices.
        i_g = jax.nn.sigmoid(gates[:, 0 * H:1 * H])
        f_g = jax.nn.sigmoid(gates[:, 1 * H:2 * H])
        g_g = jnp.tanh(gates[:, 2 * H:3 * H])
        o_g = jax.nn.sigmoid(gates[:, 3 * H:4 * H])
        c_new = f_g * c_prev + i_g * g_g
        h_new = o_g * jnp.tanh(c_new)
        if mask_tail:
            upd = t < valid
            h_new = jnp.where(upd, h_new, h_prev)
            c_new = jnp.where(upd, c_new, c_prev)
        return h_new, c_new

    h, c = lax.fori_loop(0, t_s, step, (h_sc[...], c_sc[...]), unroll=True)
    h_sc[...] = h
    c_sc[...] = c

    @pl.when(tc == pl.num_programs(1) - 1)
    def _final():
        out_ref[...] = (jnp.dot(h, wfc_ref[...],
                                preferred_element_type=jnp.float32)
                        + bfc_ref[...]).astype(out_ref.dtype)


def _vmem_need_bytes(t_s, t_b, e, h_pad, o_pad, w_bytes):
    """Rough per-grid-step VMEM footprint (single-buffered weights)."""
    return (t_s * t_b * 4 * h_pad * 4            # gx scratch (f32)
            + 2 * t_s * t_b * e * 4              # double-buffered x chunk (f32)
            + (e + h_pad) * 4 * h_pad * w_bytes  # W_ih + W_hh
            + 4 * h_pad * 4                      # bias
            + (h_pad + 1) * o_pad * 4            # fc weight + bias
            + 2 * t_b * h_pad * 4                # h, c scratch
            + 2 * t_b * o_pad * 4)               # output block


def lstm_model_forward(text, params, *, max_time_chunk=32, batch_tile=None,
                       use_bf16=True):
    """text: int32 [seq_len, batch]; returns [batch, output_dim] = fc(h_T)."""
    emb_table = params["embedding"]              # (vocab, E)
    w_ih = params["w_ih"]                        # (E, 4H)
    w_hh = params["w_hh"]                        # (H, 4H)
    b = params["b"]                              # (1, 4H)  (b_ih + b_hh)
    w_fc = params["w_fc"]                        # (H, O)
    b_fc = params["b_fc"]                        # (1, O)

    S, B = text.shape
    E = emb_table.shape[1]
    H = w_hh.shape[0]
    O = w_fc.shape[1]

    compute_dtype = jnp.bfloat16 if use_bf16 else jnp.float32

    # Embedding gather is glue (plain JAX); recurrence + matmuls live in the kernel.
    embedded = jnp.take(emb_table, text, axis=0)        # (S, B, E) f32

    # ---- Pad to hardware tiles: batch -> %8 (sublanes), hidden/out -> %128 (lanes).
    B_pad = _round_up(B, 8)
    H_pad = _round_up(H, 128)
    O_pad = _round_up(O, 128)

    # Batch tiling: large batches get 256-row tiles (VMEM- and MXU-fill-friendly).
    if batch_tile is not None:
        t_b = _round_up(batch_tile, 8)
    elif B_pad > 256:
        t_b = 256
    else:
        t_b = B_pad
    B_tot = _round_up(B_pad, t_b)

    # ---- VMEM budgeting: pick t_s per-generation, set vmem_limit explicitly. ----
    try:
        physical_vmem = int(getattr(pltpu.get_tpu_info(), "vmem_capacity_bytes",
                                    64 << 20))
    except Exception:
        physical_vmem = 64 << 20                 # conservative default: v7x per-core
    budget = physical_vmem // 2
    w_bytes = 2 if use_bf16 else 4
    t_s = 1
    for cand in range(1, max(1, min(S, max_time_chunk)) + 1):
        if _vmem_need_bytes(cand, t_b, E, H_pad, O_pad, w_bytes) <= budget:
            t_s = cand
    need = _vmem_need_bytes(t_s, t_b, E, H_pad, O_pad, w_bytes)
    vmem_limit = int(min(physical_vmem * 9 // 10, max(32 << 20, 2 * need)))

    n_chunks = pl.cdiv(S, t_s)
    S_pad = n_chunks * t_s
    mask_tail = (S % t_s) != 0

    embedded = jnp.pad(embedded, ((0, S_pad - S), (0, B_tot - B), (0, 0)))

    # Padded gate columns get zero weights/bias -> padded hidden units stay 0.
    w_ih_p = _pad_gate_cols(w_ih, H, H_pad).astype(compute_dtype)      # (E, 4Hp)
    w_hh_p = jnp.pad(_pad_gate_cols(w_hh, H, H_pad),
                     ((0, H_pad - H), (0, 0))).astype(compute_dtype)   # (Hp, 4Hp)
    b_p = _pad_gate_cols(b, H, H_pad)                                  # (1, 4Hp) f32
    w_fc_p = jnp.pad(w_fc, ((0, H_pad - H), (0, O_pad - O)))           # (Hp, Op) f32
    b_fc_p = jnp.pad(b_fc, ((0, 0), (0, O_pad - O)))                   # (1, Op)  f32

    kernel = functools.partial(_lstm_chunk_kernel, t_s=t_s, hidden=H_pad,
                               seq_len=S, mask_tail=mask_tail,
                               compute_dtype=compute_dtype)

    def run(single_buffer_weights):
        def const_spec(shape):
            kwargs = {}
            if single_buffer_weights:
                # Constant-index weights are never re-fetched; one VMEM copy suffices.
                kwargs["pipeline_mode"] = pl.Buffered(1)
            return pl.BlockSpec(shape, lambda bi, tc: (0, 0), **kwargs)

        out = pl.pallas_call(
            kernel,
            out_shape=jax.ShapeDtypeStruct((B_tot, O_pad), jnp.float32),
            grid_spec=pltpu.PrefetchScalarGridSpec(
                num_scalar_prefetch=0,
                grid=(B_tot // t_b, n_chunks),           # (batch tiles, time chunks)
                in_specs=[
                    pl.BlockSpec((t_s, t_b, E), lambda bi, tc: (tc, bi, 0)),  # x chunk
                    const_spec((E, 4 * H_pad)),                               # W_ih^T
                    const_spec((H_pad, 4 * H_pad)),                           # W_hh^T
                    const_spec((1, 4 * H_pad)),                               # bias
                    const_spec((H_pad, O_pad)),                               # fc W^T
                    const_spec((1, O_pad)),                                   # fc bias
                ],
                out_specs=pl.BlockSpec((t_b, O_pad), lambda bi, tc: (bi, 0)),
                scratch_shapes=[
                    pltpu.VMEM((t_b, H_pad), jnp.float32),              # h
                    pltpu.VMEM((t_b, H_pad), jnp.float32),              # c
                    pltpu.VMEM((t_s, t_b, 4 * H_pad), jnp.float32),     # hoisted gates
                ],
            ),
            compiler_params=pltpu.CompilerParams(
                dimension_semantics=("parallel", "arbitrary"),  # batch ∥, time serial
                vmem_limit_bytes=vmem_limit),
        )(embedded, w_ih_p, w_hh_p, b_p, w_fc_p, b_fc_p)
        return jax.block_until_ready(out)

    try:
        out = run(True)
    except Exception:
        # jax builds without BlockSpec(pipeline_mode=...): fall back to default
        # double-buffered weights (costs VMEM only; semantics unchanged).
        out = run(False)

    return out[:B, :O]


def reference_forward(text, params):
    """Pure-JAX reference matching PyTorch nn.LSTM semantics (unpadded, f32)."""
    embedded = jnp.take(params["embedding"], text, axis=0)  # (S, B, E)
    H = params["w_hh"].shape[0]
    B = text.shape[1]

    def step(carry, x):
        h, c = carry
        gates = x @ params["w_ih"] + h @ params["w_hh"] + params["b"][0]
        i = jax.nn.sigmoid(gates[:, 0 * H:1 * H])
        f = jax.nn.sigmoid(gates[:, 1 * H:2 * H])
        g = jnp.tanh(gates[:, 2 * H:3 * H])
        o = jax.nn.sigmoid(gates[:, 3 * H:4 * H])
        c = f * c + i * g
        h = o * jnp.tanh(c)
        return (h, c), None

    h0 = jnp.zeros((B, H), jnp.float32)
    c0 = jnp.zeros((B, H), jnp.float32)
    (h, _), _ = lax.scan(step, (h0, c0), embedded)
    return h @ params["w_fc"] + params["b_fc"][0]


def init_params(key, vocab_size, embedding_dim, hidden_dim, output_dim):
    ks = jax.random.split(key, 8)
    s = 1.0 / jnp.sqrt(hidden_dim)
    # PyTorch stores W_ih as (4H, E); we keep the transpose for x @ W.
    w_ih = jax.random.uniform(ks[0], (embedding_dim, 4 * hidden_dim),
                              jnp.float32, -s, s)
    w_hh = jax.random.uniform(ks[1], (hidden_dim, 4 * hidden_dim),
                              jnp.float32, -s, s)
    b_ih = jax.random.uniform(ks[2], (4 * hidden_dim,), jnp.float32, -s, s)
    b_hh = jax.random.uniform(ks[3], (4 * hidden_dim,), jnp.float32, -s, s)
    emb = jax.random.normal(ks[4], (vocab_size, embedding_dim), jnp.float32)
    sf = 1.0 / jnp.sqrt(hidden_dim)
    w_fc = jax.random.uniform(ks[5], (hidden_dim, output_dim),
                              jnp.float32, -sf, sf)
    b_fc = jax.random.uniform(ks[6], (output_dim,), jnp.float32, -sf, sf)
    return {
        "embedding": emb,
        "w_ih": w_ih,
        "w_hh": w_hh,
        "b": (b_ih + b_hh)[None, :],
        "w_fc": w_fc,
        "b_fc": b_fc[None, :],
    }


if __name__ == "__main__":
    vocab_size, embedding_dim, hidden_dim, output_dim = 100, 32, 32, 8
    key = jax.random.PRNGKey(0)
    kp, kt = jax.random.split(key)
    params = init_params(kp, vocab_size, embedding_dim, hidden_dim, output_dim)

    # Case 1: S divisible by the chosen chunk size (single chunk, no tail masking).
    seq_len, batch = 8, 2
    text = jax.random.randint(kt, (seq_len, batch), 0, vocab_size, jnp.int32)
    out = jax.block_until_ready(lstm_model_forward(text, params))
    ref = reference_forward(text, params)
    assert out.shape == (batch, output_dim), out.shape
    assert jnp.allclose(out, ref, atol=2e-2, rtol=2e-2), (out, ref)

    # Case 2: prime S with a forced small chunk -> exercises cdiv chunking and the
    # masked tail chunk (previously t_s would have collapsed to 1).
    seq_len2 = 7
    text2 = jax.random.randint(jax.random.PRNGKey(1), (seq_len2, batch),
                               0, vocab_size, jnp.int32)
    out2 = jax.block_until_ready(
        lstm_model_forward(text2, params, max_time_chunk=4))
    ref2 = reference_forward(text2, params)
    assert out2.shape == (batch, output_dim), out2.shape
    assert jnp.allclose(out2, ref2, atol=2e-2, rtol=2e-2), (out2, ref2)

    print("KERNEL_OK")
</pallas_src>

<mosaic_0001>
module attributes {stable_mosaic.version = 11 : i64} {
  func.func @_lstm_chunk_kernel(%arg0: i32, %arg1: i32, %arg2: memref<8x8x32xf32, #tpu.memory_space<vmem>>, %arg3: memref<32x512xbf16, #tpu.memory_space<vmem>>, %arg4: memref<128x512xbf16, #tpu.memory_space<vmem>>, %arg5: memref<1x512xf32, #tpu.memory_space<vmem>>, %arg6: memref<128x128xf32, #tpu.memory_space<vmem>>, %arg7: memref<1x128xf32, #tpu.memory_space<vmem>>, %arg8: memref<8x128xf32, #tpu.memory_space<vmem>>, %arg9: memref<8x128xf32, #tpu.memory_space<vmem>>, %arg10: memref<8x128xf32, #tpu.memory_space<vmem>>, %arg11: memref<8x8x512xf32, #tpu.memory_space<vmem>>) attributes {dimension_semantics = [#tpu.dimension_semantics<parallel>, #tpu.dimension_semantics<arbitrary>], iteration_bounds = array<i64: 1, 1>, scalar_prefetch = 0 : i64, scratch_operands = 3 : i64, tpu.core_type = #tpu.core_type<tc>, window_params = [{transform_indices = @transform_0, window_bounds = array<i64: 8, 8, 32>}, {pipeline_mode = #tpu.pipeline_mode<synchronous>, transform_indices = @transform_1, window_bounds = array<i64: 32, 512>}, {pipeline_mode = #tpu.pipeline_mode<synchronous>, transform_indices = @transform_2, window_bounds = array<i64: 128, 512>}, {pipeline_mode = #tpu.pipeline_mode<synchronous>, transform_indices = @transform_3, window_bounds = array<i64: 1, 512>}, {pipeline_mode = #tpu.pipeline_mode<synchronous>, transform_indices = @transform_4, window_bounds = array<i64: 128, 128>}, {pipeline_mode = #tpu.pipeline_mode<synchronous>, transform_indices = @transform_5, window_bounds = array<i64: 1, 128>}, {transform_indices = @transform_6, window_bounds = array<i64: 8, 128>}]} {
    %c0_i32 = arith.constant 0 : i32
    %0 = arith.cmpi eq, %arg1, %c0_i32 : i32
    %1 = arith.extui %0 : i1 to i32
    %c0_i32_0 = arith.constant 0 : i32
    %2 = arith.cmpi ne, %1, %c0_i32_0 : i32
    scf.if %2 {
      %cst_71 = arith.constant 0.000000e+00 : f32
      %269 = vector.broadcast %cst_71 : f32 to vector<8x128xf32>
      %c0_72 = arith.constant 0 : index
      %c0_73 = arith.constant 0 : index
      %270 = vector.load %arg9[%c0_72, %c0_73] : memref<8x128xf32, #tpu.memory_space<vmem>>, vector<8x128xf32>
      tpu.vector_store %arg9[%c0_72, %c0_73], %269 {strides = array<i32>} : memref<8x128xf32, #tpu.memory_space<vmem>>, vector<8x128xf32>,
      %cst_74 = arith.constant 0.000000e+00 : f32
      %271 = vector.broadcast %cst_74 : f32 to vector<8x128xf32>
      %c0_75 = arith.constant 0 : index
      %c0_76 = arith.constant 0 : index
      %272 = vector.load %arg10[%c0_75, %c0_76] : memref<8x128xf32, #tpu.memory_space<vmem>>, vector<8x128xf32>
      tpu.vector_store %arg10[%c0_75, %c0_76], %271 {strides = array<i32>} : memref<8x128xf32, #tpu.memory_space<vmem>>, vector<8x128xf32>,
    } else {
    }
    %c0 = arith.constant 0 : index
    %c0_1 = arith.constant 0 : index
    %c0_2 = arith.constant 0 : index
    %3 = vector.load %arg2[%c0, %c0_1, %c0_2] : memref<8x8x32xf32, #tpu.memory_space<vmem>>, vector<8x8x32xf32>
    %4 = vector.shape_cast %3 : vector<8x8x32xf32> to vector<64x32xf32>
    %5 = arith.truncf %4 : vector<64x32xf32> to vector<64x32xbf16>
    %c0_3 = arith.constant 0 : index
    %c0_4 = arith.constant 0 : index
    %6 = vector.load %arg3[%c0_3, %c0_4] : memref<32x512xbf16, #tpu.memory_space<vmem>>, vector<32x512xbf16>
    %cst = arith.constant dense<0.000000e+00> : vector<64x512xf32>
    %7 = tpu.matmul %5, %6, %cst {dimension_numbers = #tpu.dot_dimension_numbers<[1], [0], [0], [1], [0, 0, 1, 1], [], []>} : vector<64x32xbf16>, vector<32x512xbf16>, vector<64x512xf32> -> vector<64x512xf32>
    %c0_5 = arith.constant 0 : index
    %c0_6 = arith.constant 0 : index
    %8 = vector.load %arg5[%c0_5, %c0_6] : memref<1x512xf32, #tpu.memory_space<vmem>>, vector<1x512xf32>
    %9 = vector.broadcast %8 : vector<1x512xf32> to vector<64x512xf32>
    %10 = arith.addf %7, %9 : vector<64x512xf32>
    %11 = vector.shape_cast %10 : vector<64x512xf32> to vector<8x8x512xf32>
    %c0_7 = arith.constant 0 : index
    %c0_8 = arith.constant 0 : index
    %c0_9 = arith.constant 0 : index
    %12 = vector.load %arg11[%c0_7, %c0_8, %c0_9] : memref<8x8x512xf32, #tpu.memory_space<vmem>>, vector<8x8x512xf32>
    tpu.vector_store %arg11[%c0_7, %c0_8, %c0_9], %11 {strides = array<i32>} : memref<8x8x512xf32, #tpu.memory_space<vmem>>, vector<8x8x512xf32>,
    %c0_10 = arith.constant 0 : index
    %c0_11 = arith.constant 0 : index
    %13 = vector.load %arg4[%c0_10, %c0_11] : memref<128x512xbf16, #tpu.memory_space<vmem>>, vector<128x512xbf16>
    %c0_12 = arith.constant 0 : index
    %c0_13 = arith.constant 0 : index
    %14 = vector.load %arg9[%c0_12, %c0_13] : memref<8x128xf32, #tpu.memory_space<vmem>>, vector<8x128xf32>
    %c0_14 = arith.constant 0 : index
    %c0_15 = arith.constant 0 : index
    %15 = vector.load %arg10[%c0_14, %c0_15] : memref<8x128xf32, #tpu.memory_space<vmem>>, vector<8x128xf32>
    %c0_i32_16 = arith.constant 0 : i32
    %16 = arith.index_cast %c0_i32_16 : i32 to index
    %c0_17 = arith.constant 0 : index
    %c0_18 = arith.constant 0 : index
    %17 = vector.load %arg11[%16, %c0_17, %c0_18] : memref<8x8x512xf32, #tpu.memory_space<vmem>>, vector<1x8x512xf32>
    %18 = vector.shape_cast %17 : vector<1x8x512xf32> to vector<8x512xf32>
    %19 = arith.truncf %14 : vector<8x128xf32> to vector<8x128xbf16>
    %cst_19 = arith.constant dense<0.000000e+00> : vector<8x512xf32>
    %20 = tpu.matmul %19, %13, %cst_19 {dimension_numbers = #tpu.dot_dimension_numbers<[1], [0], [0], [1], [0, 0, 1, 1], [], []>} : vector<8x128xbf16>, vector<128x512xbf16>, vector<8x512xf32> -> vector<8x512xf32>
    %21 = arith.addf %18, %20 : vector<8x512xf32>
    %22 = vector.extract_strided_slice %21 {offsets = [0, 0], sizes = [8, 128], strides = [1, 1]} : vector<8x512xf32> to vector<8x128xf32>
    %23 = arith.negf %22 : vector<8x128xf32>
    %24 = math.exp %23 : vector<8x128xf32>
    %cst_20 = arith.constant 1.000000e+00 : f32
    %25 = vector.broadcast %cst_20 : f32 to vector<8x128xf32>
    %26 = arith.addf %25, %24 : vector<8x128xf32>
    %27 = arith.divf %25, %26 : vector<8x128xf32>
    %28 = vector.extract_strided_slice %21 {offsets = [0, 128], sizes = [8, 128], strides = [1, 1]} : vector<8x512xf32> to vector<8x128xf32>
    %29 = arith.negf %28 : vector<8x128xf32>
    %30 = math.exp %29 : vector<8x128xf32>
    %cst_21 = arith.constant 1.000000e+00 : f32
    %31 = vector.broadcast %cst_21 : f32 to vector<8x128xf32>
    %32 = arith.addf %31, %30 : vector<8x128xf32>
    %33 = arith.divf %31, %32 : vector<8x128xf32>
    %34 = vector.extract_strided_slice %21 {offsets = [0, 256], sizes = [8, 128], strides = [1, 1]} : vector<8x512xf32> to vector<8x128xf32>
    %35 = math.tanh %34 : vector<8x128xf32>
    %36 = vector.extract_strided_slice %21 {offsets = [0, 384], sizes = [8, 128], strides = [1, 1]} : vector<8x512xf32> to vector<8x128xf32>
    %37 = arith.negf %36 : vector<8x128xf32>
    %38 = math.exp %37 : vector<8x128xf32>
    %cst_22 = arith.constant 1.000000e+00 : f32
    %39 = vector.broadcast %cst_22 : f32 to vector<8x128xf32>
    %40 = arith.addf %39, %38 : vector<8x128xf32>
    %41 = arith.divf %39, %40 : vector<8x128xf32>
    %42 = arith.mulf %33, %15 : vector<8x128xf32>
    %43 = arith.mulf %27, %35 : vector<8x128xf32>
    %44 = arith.addf %42, %43 : vector<8x128xf32>
    %45 = math.tanh %44 : vector<8x128xf32>
    %46 = arith.mulf %41, %45 : vector<8x128xf32>
    %c1_i32 = arith.constant 1 : i32
    %47 = arith.index_cast %c1_i32 : i32 to index
    %c0_23 = arith.constant 0 : index
    %c0_24 = arith.constant 0 : index
    %48 = vector.load %arg11[%47, %c0_23, %c0_24] : memref<8x8x512xf32, #tpu.memory_space<vmem>>, vector<1x8x512xf32>
    %49 = vector.shape_cast %48 : vector<1x8x512xf32> to vector<8x512xf32>
    %50 = arith.truncf %46 : vector<8x128xf32> to vector<8x128xbf16>
    %cst_25 = arith.constant dense<0.000000e+00> : vector<8x512xf32>
    %51 = tpu.matmul %50, %13, %cst_25 {dimension_numbers = #tpu.dot_dimension_numbers<[1], [0], [0], [1], [0, 0, 1, 1], [], []>} : vector<8x128xbf16>, vector<128x512xbf16>, vector<8x512xf32> -> vector<8x512xf32>
    %52 = arith.addf %49, %51 : vector<8x512xf32>
    %53 = vector.extract_strided_slice %52 {offsets = [0, 0], sizes = [8, 128], strides = [1, 1]} : vector<8x512xf32> to vector<8x128xf32>
    %54 = arith.negf %53 : vector<8x128xf32>
    %55 = math.exp %54 : vector<8x128xf32>
    %cst_26 = arith.constant 1.000000e+00 : f32
    %56 = vector.broadcast %cst_26 : f32 to vector<8x128xf32>
    %57 = arith.addf %56, %55 : vector<8x128xf32>
    %58 = arith.divf %56, %57 : vector<8x128xf32>
    %59 = vector.extract_strided_slice %52 {offsets = [0, 128], sizes = [8, 128], strides = [1, 1]} : vector<8x512xf32> to vector<8x128xf32>
    %60 = arith.negf %59 : vector<8x128xf32>
    %61 = math.exp %60 : vector<8x128xf32>
    %cst_27 = arith.constant 1.000000e+00 : f32
    %62 = vector.broadcast %cst_27 : f32 to vector<8x128xf32>
    %63 = arith.addf %62, %61 : vector<8x128xf32>
    %64 = arith.divf %62, %63 : vector<8x128xf32>
    %65 = vector.extract_strided_slice %52 {offsets = [0, 256], sizes = [8, 128], strides = [1, 1]} : vector<8x512xf32> to vector<8x128xf32>
    %66 = math.tanh %65 : vector<8x128xf32>
    %67 = vector.extract_strided_slice %52 {offsets = [0, 384], sizes = [8, 128], strides = [1, 1]} : vector<8x512xf32> to vector<8x128xf32>
    %68 = arith.negf %67 : vector<8x128xf32>
    %69 = math.exp %68 : vector<8x128xf32>
    %cst_28 = arith.constant 1.000000e+00 : f32
    %70 = vector.broadcast %cst_28 : f32 to vector<8x128xf32>
    %71 = arith.addf %70, %69 : vector<8x128xf32>
    %72 = arith.divf %70, %71 : vector<8x128xf32>
    %73 = arith.mulf %64, %44 : vector<8x128xf32>
    %74 = arith.mulf %58, %66 : vector<8x128xf32>
    %75 = arith.addf %73, %74 : vector<8x128xf32>
    %76 = math.tanh %75 : vector<8x128xf32>
    %77 = arith.mulf %72, %76 : vector<8x128xf32>
    %c2_i32 = arith.constant 2 : i32
    %78 = arith.index_cast %c2_i32 : i32 to index
    %c0_29 = arith.constant 0 : index
    %c0_30 = arith.constant 0 : index
    %79 = vector.load %arg11[%78, %c0_29, %c0_30] : memref<8x8x512xf32, #tpu.memory_space<vmem>>, vector<1x8x512xf32>
    %80 = vector.shape_cast %79 : vector<1x8x512xf32> to vector<8x512xf32>
    %81 = arith.truncf %77 : vector<8x128xf32> to vector<8x128xbf16>
    %cst_31 = arith.constant dense<0.000000e+00> : vector<8x512xf32>
    %82 = tpu.matmul %81, %13, %cst_31 {dimension_numbers = #tpu.dot_dimension_numbers<[1], [0], [0], [1], [0, 0, 1, 1], [], []>} : vector<8x128xbf16>, vector<128x512xbf16>, vector<8x512xf32> -> vector<8x512xf32>
    %83 = arith.addf %80, %82 : vector<8x512xf32>
    %84 = vector.extract_strided_slice %83 {offsets = [0, 0], sizes = [8, 128], strides = [1, 1]} : vector<8x512xf32> to vector<8x128xf32>
    %85 = arith.negf %84 : vector<8x128xf32>
    %86 = math.exp %85 : vector<8x128xf32>
    %cst_32 = arith.constant 1.000000e+00 : f32
    %87 = vector.broadcast %cst_32 : f32 to vector<8x128xf32>
    %88 = arith.addf %87, %86 : vector<8x128xf32>
    %89 = arith.divf %87, %88 : vector<8x128xf32>
    %90 = vector.extract_strided_slice %83 {offsets = [0, 128], sizes = [8, 128], strides = [1, 1]} : vector<8x512xf32> to vector<8x128xf32>
    %91 = arith.negf %90 : vector<8x128xf32>
    %92 = math.exp %91 : vector<8x128xf32>
    %cst_33 = arith.constant 1.000000e+00 : f32
    %93 = vector.broadcast %cst_33 : f32 to vector<8x128xf32>
    %94 = arith.addf %93, %92 : vector<8x128xf32>
    %95 = arith.divf %93, %94 : vector<8x128xf32>
    %96 = vector.extract_strided_slice %83 {offsets = [0, 256], sizes = [8, 128], strides = [1, 1]} : vector<8x512xf32> to vector<8x128xf32>
    %97 = math.tanh %96 : vector<8x128xf32>
    %98 = vector.extract_strided_slice %83 {offsets = [0, 384], sizes = [8, 128], strides = [1, 1]} : vector<8x512xf32> to vector<8x128xf32>
    %99 = arith.negf %98 : vector<8x128xf32>
    %100 = math.exp %99 : vector<8x128xf32>
    %cst_34 = arith.constant 1.000000e+00 : f32
    %101 = vector.broadcast %cst_34 : f32 to vector<8x128xf32>
    %102 = arith.addf %101, %100 : vector<8x128xf32>
    %103 = arith.divf %101, %102 : vector<8x128xf32>
    %104 = arith.mulf %95, %75 : vector<8x128xf32>
    %105 = arith.mulf %89, %97 : vector<8x128xf32>
    %106 = arith.addf %104, %105 : vector<8x128xf32>
    %107 = math.tanh %106 : vector<8x128xf32>
    %108 = arith.mulf %103, %107 : vector<8x128xf32>
    %c3_i32 = arith.constant 3 : i32
    %109 = arith.index_cast %c3_i32 : i32 to index
    %c0_35 = arith.constant 0 : index
    %c0_36 = arith.constant 0 : index
    %110 = vector.load %arg11[%109, %c0_35, %c0_36] : memref<8x8x512xf32, #tpu.memory_space<vmem>>, vector<1x8x512xf32>
    %111 = vector.shape_cast %110 : vector<1x8x512xf32> to vector<8x512xf32>
    %112 = arith.truncf %108 : vector<8x128xf32> to vector<8x128xbf16>
    %cst_37 = arith.constant dense<0.000000e+00> : vector<8x512xf32>
    %113 = tpu.matmul %112, %13, %cst_37 {dimension_numbers = #tpu.dot_dimension_numbers<[1], [0], [0], [1], [0, 0, 1, 1], [], []>} : vector<8x128xbf16>, vector<128x512xbf16>, vector<8x512xf32> -> vector<8x512xf32>
    %114 = arith.addf %111, %113 : vector<8x512xf32>
    %115 = vector.extract_strided_slice %114 {offsets = [0, 0], sizes = [8, 128], strides = [1, 1]} : vector<8x512xf32> to vector<8x128xf32>
    %116 = arith.negf %115 : vector<8x128xf32>
    %117 = math.exp %116 : vector<8x128xf32>
    %cst_38 = arith.constant 1.000000e+00 : f32
    %118 = vector.broadcast %cst_38 : f32 to vector<8x128xf32>
    %119 = arith.addf %118, %117 : vector<8x128xf32>
    %120 = arith.divf %118, %119 : vector<8x128xf32>
    %121 = vector.extract_strided_slice %114 {offsets = [0, 128], sizes = [8, 128], strides = [1, 1]} : vector<8x512xf32> to vector<8x128xf32>
    %122 = arith.negf %121 : vector<8x128xf32>
    %123 = math.exp %122 : vector<8x128xf32>
    %cst_39 = arith.constant 1.000000e+00 : f32
    %124 = vector.broadcast %cst_39 : f32 to vector<8x128xf32>
    %125 = arith.addf %124, %123 : vector<8x128xf32>
    %126 = arith.divf %124, %125 : vector<8x128xf32>
    %127 = vector.extract_strided_slice %114 {offsets = [0, 256], sizes = [8, 128], strides = [1, 1]} : vector<8x512xf32> to vector<8x128xf32>
    %128 = math.tanh %127 : vector<8x128xf32>
    %129 = vector.extract_strided_slice %114 {offsets = [0, 384], sizes = [8, 128], strides = [1, 1]} : vector<8x512xf32> to vector<8x128xf32>
    %130 = arith.negf %129 : vector<8x128xf32>
    %131 = math.exp %130 : vector<8x128xf32>
    %cst_40 = arith.constant 1.000000e+00 : f32
    %132 = vector.broadcast %cst_40 : f32 to vector<8x128xf32>
    %133 = arith.addf %132, %131 : vector<8x128xf32>
    %134 = arith.divf %132, %133 : vector<8x128xf32>
    %135 = arith.mulf %126, %106 : vector<8x128xf32>
    %136 = arith.mulf %120, %128 : vector<8x128xf32>
    %137 = arith.addf %135, %136 : vector<8x128xf32>
    %138 = math.tanh %137 : vector<8x128xf32>
    %139 = arith.mulf %134, %138 : vector<8x128xf32>
    %c4_i32 = arith.constant 4 : i32
    %140 = arith.index_cast %c4_i32 : i32 to index
    %c0_41 = arith.constant 0 : index
    %c0_42 = arith.constant 0 : index
    %141 = vector.load %arg11[%140, %c0_41, %c0_42] : memref<8x8x512xf32, #tpu.memory_space<vmem>>, vector<1x8x512xf32>
    %142 = vector.shape_cast %141 : vector<1x8x512xf32> to vector<8x512xf32>
    %143 = arith.truncf %139 : vector<8x128xf32> to vector<8x128xbf16>
    %cst_43 = arith.constant dense<0.000000e+00> : vector<8x512xf32>
    %144 = tpu.matmul %143, %13, %cst_43 {dimension_numbers = #tpu.dot_dimension_numbers<[1], [0], [0], [1], [0, 0, 1, 1], [], []>} : vector<8x128xbf16>, vector<128x512xbf16>, vector<8x512xf32> -> vector<8x512xf32>
    %145 = arith.addf %142, %144 : vector<8x512xf32>
    %146 = vector.extract_strided_slice %145 {offsets = [0, 0], sizes = [8, 128], strides = [1, 1]} : vector<8x512xf32> to vector<8x128xf32>
    %147 = arith.negf %146 : vector<8x128xf32>
    %148 = math.exp %147 : vector<8x128xf32>
    %cst_44 = arith.constant 1.000000e+00 : f32
    %149 = vector.broadcast %cst_44 : f32 to vector<8x128xf32>
    %150 = arith.addf %149, %148 : vector<8x128xf32>
    %151 = arith.divf %149, %150 : vector<8x128xf32>
    %152 = vector.extract_strided_slice %145 {offsets = [0, 128], sizes = [8, 128], strides = [1, 1]} : vector<8x512xf32> to vector<8x128xf32>
    %153 = arith.negf %152 : vector<8x128xf32>
    %154 = math.exp %153 : vector<8x128xf32>
    %cst_45 = arith.constant 1.000000e+00 : f32
    %155 = vector.broadcast %cst_45 : f32 to vector<8x128xf32>
    %156 = arith.addf %155, %154 : vector<8x128xf32>
    %157 = arith.divf %155, %156 : vector<8x128xf32>
    %158 = vector.extract_strided_slice %145 {offsets = [0, 256], sizes = [8, 128], strides = [1, 1]} : vector<8x512xf32> to vector<8x128xf32>
    %159 = math.tanh %158 : vector<8x128xf32>
    %160 = vector.extract_strided_slice %145 {offsets = [0, 384], sizes = [8, 128], strides = [1, 1]} : vector<8x512xf32> to vector<8x128xf32>
    %161 = arith.negf %160 : vector<8x128xf32>
    %162 = math.exp %161 : vector<8x128xf32>
    %cst_46 = arith.constant 1.000000e+00 : f32
    %163 = vector.broadcast %cst_46 : f32 to vector<8x128xf32>
    %164 = arith.addf %163, %162 : vector<8x128xf32>
    %165 = arith.divf %163, %164 : vector<8x128xf32>
    %166 = arith.mulf %157, %137 : vector<8x128xf32>
    %167 = arith.mulf %151, %159 : vector<8x128xf32>
    %168 = arith.addf %166, %167 : vector<8x128xf32>
    %169 = math.tanh %168 : vector<8x128xf32>
    %170 = arith.mulf %165, %169 : vector<8x128xf32>
    %c5_i32 = arith.constant 5 : i32
    %171 = arith.index_cast %c5_i32 : i32 to index
    %c0_47 = arith.constant 0 : index
    %c0_48 = arith.constant 0 : index
    %172 = vector.load %arg11[%171, %c0_47, %c0_48] : memref<8x8x512xf32, #tpu.memory_space<vmem>>, vector<1x8x512xf32>
    %173 = vector.shape_cast %172 : vector<1x8x512xf32> to vector<8x512xf32>
    %174 = arith.truncf %170 : vector<8x128xf32> to vector<8x128xbf16>
    %cst_49 = arith.constant dense<0.000000e+00> : vector<8x512xf32>
    %175 = tpu.matmul %174, %13, %cst_49 {dimension_numbers = #tpu.dot_dimension_numbers<[1], [0], [0], [1], [0, 0, 1, 1], [], []>} : vector<8x128xbf16>, vector<128x512xbf16>, vector<8x512xf32> -> vector<8x512xf32>
    %176 = arith.addf %173, %175 : vector<8x512xf32>
    %177 = vector.extract_strided_slice %176 {offsets = [0, 0], sizes = [8, 128], strides = [1, 1]} : vector<8x512xf32> to vector<8x128xf32>
    %178 = arith.negf %177 : vector<8x128xf32>
    %179 = math.exp %178 : vector<8x128xf32>
    %cst_50 = arith.constant 1.000000e+00 : f32
    %180 = vector.broadcast %cst_50 : f32 to vector<8x128xf32>
    %181 = arith.addf %180, %179 : vector<8x128xf32>
    %182 = arith.divf %180, %181 : vector<8x128xf32>
    %183 = vector.extract_strided_slice %176 {offsets = [0, 128], sizes = [8, 128], strides = [1, 1]} : vector<8x512xf32> to vector<8x128xf32>
    %184 = arith.negf %183 : vector<8x128xf32>
    %185 = math.exp %184 : vector<8x128xf32>
    %cst_51 = arith.constant 1.000000e+00 : f32
    %186 = vector.broadcast %cst_51 : f32 to vector<8x128xf32>
    %187 = arith.addf %186, %185 : vector<8x128xf32>
    %188 = arith.divf %186, %187 : vector<8x128xf32>
    %189 = vector.extract_strided_slice %176 {offsets = [0, 256], sizes = [8, 128], strides = [1, 1]} : vector<8x512xf32> to vector<8x128xf32>
    %190 = math.tanh %189 : vector<8x128xf32>
    %191 = vector.extract_strided_slice %176 {offsets = [0, 384], sizes = [8, 128], strides = [1, 1]} : vector<8x512xf32> to vector<8x128xf32>
    %192 = arith.negf %191 : vector<8x128xf32>
    %193 = math.exp %192 : vector<8x128xf32>
    %cst_52 = arith.constant 1.000000e+00 : f32
    %194 = vector.broadcast %cst_52 : f32 to vector<8x128xf32>
    %195 = arith.addf %194, %193 : vector<8x128xf32>
    %196 = arith.divf %194, %195 : vector<8x128xf32>
    %197 = arith.mulf %188, %168 : vector<8x128xf32>
    %198 = arith.mulf %182, %190 : vector<8x128xf32>
    %199 = arith.addf %197, %198 : vector<8x128xf32>
    %200 = math.tanh %199 : vector<8x128xf32>
    %201 = arith.mulf %196, %200 : vector<8x128xf32>
    %c6_i32 = arith.constant 6 : i32
    %202 = arith.index_cast %c6_i32 : i32 to index
    %c0_53 = arith.constant 0 : index
    %c0_54 = arith.constant 0 : index
    %203 = vector.load %arg11[%202, %c0_53, %c0_54] : memref<8x8x512xf32, #tpu.memory_space<vmem>>, vector<1x8x512xf32>
    %204 = vector.shape_cast %203 : vector<1x8x512xf32> to vector<8x512xf32>
    %205 = arith.truncf %201 : vector<8x128xf32> to vector<8x128xbf16>
    %cst_55 = arith.constant dense<0.000000e+00> : vector<8x512xf32>
    %206 = tpu.matmul %205, %13, %cst_55 {dimension_numbers = #tpu.dot_dimension_numbers<[1], [0], [0], [1], [0, 0, 1, 1], [], []>} : vector<8x128xbf16>, vector<128x512xbf16>, vector<8x512xf32> -> vector<8x512xf32>
    %207 = arith.addf %204, %206 : vector<8x512xf32>
    %208 = vector.extract_strided_slice %207 {offsets = [0, 0], sizes = [8, 128], strides = [1, 1]} : vector<8x512xf32> to vector<8x128xf32>
    %209 = arith.negf %208 : vector<8x128xf32>
    %210 = math.exp %209 : vector<8x128xf32>
    %cst_56 = arith.constant 1.000000e+00 : f32
    %211 = vector.broadcast %cst_56 : f32 to vector<8x128xf32>
    %212 = arith.addf %211, %210 : vector<8x128xf32>
    %213 = arith.divf %211, %212 : vector<8x128xf32>
    %214 = vector.extract_strided_slice %207 {offsets = [0, 128], sizes = [8, 128], strides = [1, 1]} : vector<8x512xf32> to vector<8x128xf32>
    %215 = arith.negf %214 : vector<8x128xf32>
    %216 = math.exp %215 : vector<8x128xf32>
    %cst_57 = arith.constant 1.000000e+00 : f32
    %217 = vector.broadcast %cst_57 : f32 to vector<8x128xf32>
    %218 = arith.addf %217, %216 : vector<8x128xf32>
    %219 = arith.divf %217, %218 : vector<8x128xf32>
    %220 = vector.extract_strided_slice %207 {offsets = [0, 256], sizes = [8, 128], strides = [1, 1]} : vector<8x512xf32> to vector<8x128xf32>
    %221 = math.tanh %220 : vector<8x128xf32>
    %222 = vector.extract_strided_slice %207 {offsets = [0, 384], sizes = [8, 128], strides = [1, 1]} : vector<8x512xf32> to vector<8x128xf32>
    %223 = arith.negf %222 : vector<8x128xf32>
    %224 = math.exp %223 : vector<8x128xf32>
    %cst_58 = arith.constant 1.000000e+00 : f32
    %225 = vector.broadcast %cst_58 : f32 to vector<8x128xf32>
    %226 = arith.addf %225, %224 : vector<8x128xf32>
    %227 = arith.divf %225, %226 : vector<8x128xf32>
    %228 = arith.mulf %219, %199 : vector<8x128xf32>
    %229 = arith.mulf %213, %221 : vector<8x128xf32>
    %230 = arith.addf %228, %229 : vector<8x128xf32>
    %231 = math.tanh %230 : vector<8x128xf32>
    %232 = arith.mulf %227, %231 : vector<8x128xf32>
    %c7_i32 = arith.constant 7 : i32
    %233 = arith.index_cast %c7_i32 : i32 to index
    %c0_59 = arith.constant 0 : index
    %c0_60 = arith.constant 0 : index
    %234 = vector.load %arg11[%233, %c0_59, %c0_60] : memref<8x8x512xf32, #tpu.memory_space<vmem>>, vector<1x8x512xf32>
    %235 = vector.shape_cast %234 : vector<1x8x512xf32> to vector<8x512xf32>
    %236 = arith.truncf %232 : vector<8x128xf32> to vector<8x128xbf16>
    %cst_61 = arith.constant dense<0.000000e+00> : vector<8x512xf32>
    %237 = tpu.matmul %236, %13, %cst_61 {dimension_numbers = #tpu.dot_dimension_numbers<[1], [0], [0], [1], [0, 0, 1, 1], [], []>} : vector<8x128xbf16>, vector<128x512xbf16>, vector<8x512xf32> -> vector<8x512xf32>
    %238 = arith.addf %235, %237 : vector<8x512xf32>
    %239 = vector.extract_strided_slice %238 {offsets = [0, 0], sizes = [8, 128], strides = [1, 1]} : vector<8x512xf32> to vector<8x128xf32>
    %240 = arith.negf %239 : vector<8x128xf32>
    %241 = math.exp %240 : vector<8x128xf32>
    %cst_62 = arith.constant 1.000000e+00 : f32
    %242 = vector.broadcast %cst_62 : f32 to vector<8x128xf32>
    %243 = arith.addf %242, %241 : vector<8x128xf32>
    %244 = arith.divf %242, %243 : vector<8x128xf32>
    %245 = vector.extract_strided_slice %238 {offsets = [0, 128], sizes = [8, 128], strides = [1, 1]} : vector<8x512xf32> to vector<8x128xf32>
    %246 = arith.negf %245 : vector<8x128xf32>
    %247 = math.exp %246 : vector<8x128xf32>
    %cst_63 = arith.constant 1.000000e+00 : f32
    %248 = vector.broadcast %cst_63 : f32 to vector<8x128xf32>
    %249 = arith.addf %248, %247 : vector<8x128xf32>
    %250 = arith.divf %248, %249 : vector<8x128xf32>
    %251 = vector.extract_strided_slice %238 {offsets = [0, 256], sizes = [8, 128], strides = [1, 1]} : vector<8x512xf32> to vector<8x128xf32>
    %252 = math.tanh %251 : vector<8x128xf32>
    %253 = vector.extract_strided_slice %238 {offsets = [0, 384], sizes = [8, 128], strides = [1, 1]} : vector<8x512xf32> to vector<8x128xf32>
    %254 = arith.negf %253 : vector<8x128xf32>
    %255 = math.exp %254 : vector<8x128xf32>
    %cst_64 = arith.constant 1.000000e+00 : f32
    %256 = vector.broadcast %cst_64 : f32 to vector<8x128xf32>
    %257 = arith.addf %256, %255 : vector<8x128xf32>
    %258 = arith.divf %256, %257 : vector<8x128xf32>
    %259 = arith.mulf %250, %230 : vector<8x128xf32>
    %260 = arith.mulf %244, %252 : vector<8x128xf32>
    %261 = arith.addf %259, %260 : vector<8x128xf32>
    %262 = math.tanh %261 : vector<8x128xf32>
    %263 = arith.mulf %258, %262 : vector<8x128xf32>
    %c8_i32 = arith.constant 8 : i32
    %c0_65 = arith.constant 0 : index
    %c0_66 = arith.constant 0 : index
    %264 = vector.load %arg9[%c0_65, %c0_66] : memref<8x128xf32, #tpu.memory_space<vmem>>, vector<8x128xf32>
    tpu.vector_store %arg9[%c0_65, %c0_66], %263 {strides = array<i32>} : memref<8x128xf32, #tpu.memory_space<vmem>>, vector<8x128xf32>,
    %c0_67 = arith.constant 0 : index
    %c0_68 = arith.constant 0 : index
    %265 = vector.load %arg10[%c0_67, %c0_68] : memref<8x128xf32, #tpu.memory_space<vmem>>, vector<8x128xf32>
    tpu.vector_store %arg10[%c0_67, %c0_68], %261 {strides = array<i32>} : memref<8x128xf32, #tpu.memory_space<vmem>>, vector<8x128xf32>,
    %c0_i32_69 = arith.constant 0 : i32
    %266 = arith.cmpi eq, %arg1, %c0_i32_69 : i32
    %267 = arith.extui %266 : i1 to i32
    %c0_i32_70 = arith.constant 0 : i32
    %268 = arith.cmpi ne, %267, %c0_i32_70 : i32
    scf.if %268 {
      %c0_71 = arith.constant 0 : index
      %c0_72 = arith.constant 0 : index
      %269 = vector.load %arg6[%c0_71, %c0_72] : memref<128x128xf32, #tpu.memory_space<vmem>>, vector<128x128xf32>
      %cst_73 = arith.constant dense<0.000000e+00> : vector<8x128xf32>
      %270 = tpu.matmul %263, %269, %cst_73 {dimension_numbers = #tpu.dot_dimension_numbers<[1], [0], [0], [1], [0, 0, 1, 1], [], []>} : vector<8x128xf32>, vector<128x128xf32>, vector<8x128xf32> -> vector<8x128xf32>
      %c0_74 = arith.constant 0 : index
      %c0_75 = arith.constant 0 : index
      %271 = vector.load %arg7[%c0_74, %c0_75] : memref<1x128xf32, #tpu.memory_space<vmem>>, vector<1x128xf32>
      %272 = vector.broadcast %271 : vector<1x128xf32> to vector<8x128xf32>
      %273 = arith.addf %270, %272 : vector<8x128xf32>
      %c0_76 = arith.constant 0 : index
      %c0_77 = arith.constant 0 : index
      %274 = vector.load %arg8[%c0_76, %c0_77] : memref<8x128xf32, #tpu.memory_space<vmem>>, vector<8x128xf32>
      tpu.vector_store %arg8[%c0_76, %c0_77], %273 {strides = array<i32>} : memref<8x128xf32, #tpu.memory_space<vmem>>, vector<8x128xf32>,
    } else {
    }
    return
  }
  func.func @transform_0(%arg0: i32, %arg1: i32) -> (i32, i32, i32) {
    %c0_i32 = arith.constant 0 : i32
    %c0_i32_0 = arith.constant 0 : i32
    return %arg1, %arg0, %c0_i32 : i32, i32, i32
  }
  func.func @transform_1(%arg0: i32, %arg1: i32) -> (i32, i32) {
    %c0_i32 = arith.constant 0 : i32
    %c0_i32_0 = arith.constant 0 : i32
    %c0_i32_1 = arith.constant 0 : i32
    return %c0_i32, %c0_i32_0 : i32, i32
  }
  func.func @transform_2(%arg0: i32, %arg1: i32) -> (i32, i32) {
    %c0_i32 = arith.constant 0 : i32
    %c0_i32_0 = arith.constant 0 : i32
    %c0_i32_1 = arith.constant 0 : i32
    return %c0_i32, %c0_i32_0 : i32, i32
  }
  func.func @transform_3(%arg0: i32, %arg1: i32) -> (i32, i32) {
    %c0_i32 = arith.constant 0 : i32
    %c0_i32_0 = arith.constant 0 : i32
    %c0_i32_1 = arith.constant 0 : i32
    return %c0_i32, %c0_i32_0 : i32, i32
  }
  func.func @transform_4(%arg0: i32, %arg1: i32) -> (i32, i32) {
    %c0_i32 = arith.constant 0 : i32
    %c0_i32_0 = arith.constant 0 : i32
    %c0_i32_1 = arith.constant 0 : i32
    return %c0_i32, %c0_i32_0 : i32, i32
  }
  func.func @transform_5(%arg0: i32, %arg1: i32) -> (i32, i32) {
    %c0_i32 = arith.constant 0 : i32
    %c0_i32_0 = arith.constant 0 : i32
    %c0_i32_1 = arith.constant 0 : i32
    return %c0_i32, %c0_i32_0 : i32, i32
  }
  func.func @transform_6(%arg0: i32, %arg1: i32) -> (i32, i32) {
    %c0_i32 = arith.constant 0 : i32
    %c0_i32_0 = arith.constant 0 : i32
    return %arg0, %c0_i32 : i32, i32
  }
}

module attributes {stable_mosaic.version = 11 : i64} {
  func.func @_lstm_chunk_kernel(%arg0: i32, %arg1: i32, %arg2: memref<8x8x32xf32, #tpu.memory_space<vmem>>, %arg3: memref<32x512xbf16, #tpu.memory_space<vmem>>, %arg4: memref<128x512xbf16, #tpu.memory_space<vmem>>, %arg5: memref<1x512xf32, #tpu.memory_space<vmem>>, %arg6: memref<128x128xf32, #tpu.memory_space<vmem>>, %arg7: memref<1x128xf32, #tpu.memory_space<vmem>>, %arg8: memref<8x128xf32, #tpu.memory_space<vmem>>, %arg9: memref<8x128xf32, #tpu.memory_space<vmem>>, %arg10: memref<8x128xf32, #tpu.memory_space<vmem>>, %arg11: memref<8x8x512xf32, #tpu.memory_space<vmem>>) attributes {dimension_semantics = [#tpu.dimension_semantics<parallel>, #tpu.dimension_semantics<arbitrary>], iteration_bounds = array<i64: 1, 1>, scalar_prefetch = 0 : i64, scratch_operands = 3 : i64, tpu.core_type = #tpu.core_type<tc>, window_params = [{transform_indices = @transform_0, window_bounds = array<i64: 8, 8, 32>}, {pipeline_mode = #tpu.pipeline_mode<synchronous>, transform_indices = @transform_1, window_bounds = array<i64: 32, 512>}, {pipeline_mode = #tpu.pipeline_mode<synchronous>, transform_indices = @transform_2, window_bounds = array<i64: 128, 512>}, {pipeline_mode = #tpu.pipeline_mode<synchronous>, transform_indices = @transform_3, window_bounds = array<i64: 1, 512>}, {pipeline_mode = #tpu.pipeline_mode<synchronous>, transform_indices = @transform_4, window_bounds = array<i64: 128, 128>}, {pipeline_mode = #tpu.pipeline_mode<synchronous>, transform_indices = @transform_5, window_bounds = array<i64: 1, 128>}, {transform_indices = @transform_6, window_bounds = array<i64: 8, 128>}]} {
    %c0_i32 = arith.constant 0 : i32
    %0 = arith.cmpi eq, %arg1, %c0_i32 : i32
    %1 = arith.extui %0 : i1 to i32
    %c0_i32_0 = arith.constant 0 : i32
    %2 = arith.cmpi ne, %1, %c0_i32_0 : i32
    scf.if %2 {
      %cst_71 = arith.constant 0.000000e+00 : f32
      %269 = vector.broadcast %cst_71 : f32 to vector<8x128xf32>
      %c0_72 = arith.constant 0 : index
      %c0_73 = arith.constant 0 : index
      %270 = vector.load %arg9[%c0_72, %c0_73] : memref<8x128xf32, #tpu.memory_space<vmem>>, vector<8x128xf32>
      tpu.vector_store %arg9[%c0_72, %c0_73], %269 {strides = array<i32>} : memref<8x128xf32, #tpu.memory_space<vmem>>, vector<8x128xf32>,
      %cst_74 = arith.constant 0.000000e+00 : f32
      %271 = vector.broadcast %cst_74 : f32 to vector<8x128xf32>
      %c0_75 = arith.constant 0 : index
      %c0_76 = arith.constant 0 : index
      %272 = vector.load %arg10[%c0_75, %c0_76] : memref<8x128xf32, #tpu.memory_space<vmem>>, vector<8x128xf32>
      tpu.vector_store %arg10[%c0_75, %c0_76], %271 {strides = array<i32>} : memref<8x128xf32, #tpu.memory_space<vmem>>, vector<8x128xf32>,
    } else {
    }
    %c0 = arith.constant 0 : index
    %c0_1 = arith.constant 0 : index
    %c0_2 = arith.constant 0 : index
    %3 = vector.load %arg2[%c0, %c0_1, %c0_2] : memref<8x8x32xf32, #tpu.memory_space<vmem>>, vector<8x8x32xf32>
    %4 = vector.shape_cast %3 : vector<8x8x32xf32> to vector<64x32xf32>
    %5 = arith.truncf %4 : vector<64x32xf32> to vector<64x32xbf16>
    %c0_3 = arith.constant 0 : index
    %c0_4 = arith.constant 0 : index
    %6 = vector.load %arg3[%c0_3, %c0_4] : memref<32x512xbf16, #tpu.memory_space<vmem>>, vector<32x512xbf16>
    %cst = arith.constant dense<0.000000e+00> : vector<64x512xf32>
    %7 = tpu.matmul %5, %6, %cst {dimension_numbers = #tpu.dot_dimension_numbers<[1], [0], [0], [1], [0, 0, 1, 1], [], []>} : vector<64x32xbf16>, vector<32x512xbf16>, vector<64x512xf32> -> vector<64x512xf32>
    %c0_5 = arith.constant 0 : index
    %c0_6 = arith.constant 0 : index
    %8 = vector.load %arg5[%c0_5, %c0_6] : memref<1x512xf32, #tpu.memory_space<vmem>>, vector<1x512xf32>
    %9 = vector.broadcast %8 : vector<1x512xf32> to vector<64x512xf32>
    %10 = arith.addf %7, %9 : vector<64x512xf32>
    %11 = vector.shape_cast %10 : vector<64x512xf32> to vector<8x8x512xf32>
    %c0_7 = arith.constant 0 : index
    %c0_8 = arith.constant 0 : index
    %c0_9 = arith.constant 0 : index
    %12 = vector.load %arg11[%c0_7, %c0_8, %c0_9] : memref<8x8x512xf32, #tpu.memory_space<vmem>>, vector<8x8x512xf32>
    tpu.vector_store %arg11[%c0_7, %c0_8, %c0_9], %11 {strides = array<i32>} : memref<8x8x512xf32, #tpu.memory_space<vmem>>, vector<8x8x512xf32>,
    %c0_10 = arith.constant 0 : index
    %c0_11 = arith.constant 0 : index
    %13 = vector.load %arg4[%c0_10, %c0_11] : memref<128x512xbf16, #tpu.memory_space<vmem>>, vector<128x512xbf16>
    %c0_12 = arith.constant 0 : index
    %c0_13 = arith.constant 0 : index
    %14 = vector.load %arg9[%c0_12, %c0_13] : memref<8x128xf32, #tpu.memory_space<vmem>>, vector<8x128xf32>
    %c0_14 = arith.constant 0 : index
    %c0_15 = arith.constant 0 : index
    %15 = vector.load %arg10[%c0_14, %c0_15] : memref<8x128xf32, #tpu.memory_space<vmem>>, vector<8x128xf32>
    %c0_i32_16 = arith.constant 0 : i32
    %16 = arith.index_cast %c0_i32_16 : i32 to index
    %c0_17 = arith.constant 0 : index
    %c0_18 = arith.constant 0 : index
    %17 = vector.load %arg11[%16, %c0_17, %c0_18] : memref<8x8x512xf32, #tpu.memory_space<vmem>>, vector<1x8x512xf32>
    %18 = vector.shape_cast %17 : vector<1x8x512xf32> to vector<8x512xf32>
    %19 = arith.truncf %14 : vector<8x128xf32> to vector<8x128xbf16>
    %cst_19 = arith.constant dense<0.000000e+00> : vector<8x512xf32>
    %20 = tpu.matmul %19, %13, %cst_19 {dimension_numbers = #tpu.dot_dimension_numbers<[1], [0], [0], [1], [0, 0, 1, 1], [], []>} : vector<8x128xbf16>, vector<128x512xbf16>, vector<8x512xf32> -> vector<8x512xf32>
    %21 = arith.addf %18, %20 : vector<8x512xf32>
    %22 = vector.extract_strided_slice %21 {offsets = [0, 0], sizes = [8, 128], strides = [1, 1]} : vector<8x512xf32> to vector<8x128xf32>
    %23 = arith.negf %22 : vector<8x128xf32>
    %24 = math.exp %23 : vector<8x128xf32>
    %cst_20 = arith.constant 1.000000e+00 : f32
    %25 = vector.broadcast %cst_20 : f32 to vector<8x128xf32>
    %26 = arith.addf %25, %24 : vector<8x128xf32>
    %27 = arith.divf %25, %26 : vector<8x128xf32>
    %28 = vector.extract_strided_slice %21 {offsets = [0, 128], sizes = [8, 128], strides = [1, 1]} : vector<8x512xf32> to vector<8x128xf32>
    %29 = arith.negf %28 : vector<8x128xf32>
    %30 = math.exp %29 : vector<8x128xf32>
    %cst_21 = arith.constant 1.000000e+00 : f32
    %31 = vector.broadcast %cst_21 : f32 to vector<8x128xf32>
    %32 = arith.addf %31, %30 : vector<8x128xf32>
    %33 = arith.divf %31, %32 : vector<8x128xf32>
    %34 = vector.extract_strided_slice %21 {offsets = [0, 256], sizes = [8, 128], strides = [1, 1]} : vector<8x512xf32> to vector<8x128xf32>
    %35 = math.tanh %34 : vector<8x128xf32>
    %36 = vector.extract_strided_slice %21 {offsets = [0, 384], sizes = [8, 128], strides = [1, 1]} : vector<8x512xf32> to vector<8x128xf32>
    %37 = arith.negf %36 : vector<8x128xf32>
    %38 = math.exp %37 : vector<8x128xf32>
    %cst_22 = arith.constant 1.000000e+00 : f32
    %39 = vector.broadcast %cst_22 : f32 to vector<8x128xf32>
    %40 = arith.addf %39, %38 : vector<8x128xf32>
    %41 = arith.divf %39, %40 : vector<8x128xf32>
    %42 = arith.mulf %33, %15 : vector<8x128xf32>
    %43 = arith.mulf %27, %35 : vector<8x128xf32>
    %44 = arith.addf %42, %43 : vector<8x128xf32>
    %45 = math.tanh %44 : vector<8x128xf32>
    %46 = arith.mulf %41, %45 : vector<8x128xf32>
    %c1_i32 = arith.constant 1 : i32
    %47 = arith.index_cast %c1_i32 : i32 to index
    %c0_23 = arith.constant 0 : index
    %c0_24 = arith.constant 0 : index
    %48 = vector.load %arg11[%47, %c0_23, %c0_24] : memref<8x8x512xf32, #tpu.memory_space<vmem>>, vector<1x8x512xf32>
    %49 = vector.shape_cast %48 : vector<1x8x512xf32> to vector<8x512xf32>
    %50 = arith.truncf %46 : vector<8x128xf32> to vector<8x128xbf16>
    %cst_25 = arith.constant dense<0.000000e+00> : vector<8x512xf32>
    %51 = tpu.matmul %50, %13, %cst_25 {dimension_numbers = #tpu.dot_dimension_numbers<[1], [0], [0], [1], [0, 0, 1, 1], [], []>} : vector<8x128xbf16>, vector<128x512xbf16>, vector<8x512xf32> -> vector<8x512xf32>
    %52 = arith.addf %49, %51 : vector<8x512xf32>
    %53 = vector.extract_strided_slice %52 {offsets = [0, 0], sizes = [8, 128], strides = [1, 1]} : vector<8x512xf32> to vector<8x128xf32>
    %54 = arith.negf %53 : vector<8x128xf32>
    %55 = math.exp %54 : vector<8x128xf32>
    %cst_26 = arith.constant 1.000000e+00 : f32
    %56 = vector.broadcast %cst_26 : f32 to vector<8x128xf32>
    %57 = arith.addf %56, %55 : vector<8x128xf32>
    %58 = arith.divf %56, %57 : vector<8x128xf32>
    %59 = vector.extract_strided_slice %52 {offsets = [0, 128], sizes = [8, 128], strides = [1, 1]} : vector<8x512xf32> to vector<8x128xf32>
    %60 = arith.negf %59 : vector<8x128xf32>
    %61 = math.exp %60 : vector<8x128xf32>
    %cst_27 = arith.constant 1.000000e+00 : f32
    %62 = vector.broadcast %cst_27 : f32 to vector<8x128xf32>
    %63 = arith.addf %62, %61 : vector<8x128xf32>
    %64 = arith.divf %62, %63 : vector<8x128xf32>
    %65 = vector.extract_strided_slice %52 {offsets = [0, 256], sizes = [8, 128], strides = [1, 1]} : vector<8x512xf32> to vector<8x128xf32>
    %66 = math.tanh %65 : vector<8x128xf32>
    %67 = vector.extract_strided_slice %52 {offsets = [0, 384], sizes = [8, 128], strides = [1, 1]} : vector<8x512xf32> to vector<8x128xf32>
    %68 = arith.negf %67 : vector<8x128xf32>
    %69 = math.exp %68 : vector<8x128xf32>
    %cst_28 = arith.constant 1.000000e+00 : f32
    %70 = vector.broadcast %cst_28 : f32 to vector<8x128xf32>
    %71 = arith.addf %70, %69 : vector<8x128xf32>
    %72 = arith.divf %70, %71 : vector<8x128xf32>
    %73 = arith.mulf %64, %44 : vector<8x128xf32>
    %74 = arith.mulf %58, %66 : vector<8x128xf32>
    %75 = arith.addf %73, %74 : vector<8x128xf32>
    %76 = math.tanh %75 : vector<8x128xf32>
    %77 = arith.mulf %72, %76 : vector<8x128xf32>
    %c2_i32 = arith.constant 2 : i32
    %78 = arith.index_cast %c2_i32 : i32 to index
    %c0_29 = arith.constant 0 : index
    %c0_30 = arith.constant 0 : index
    %79 = vector.load %arg11[%78, %c0_29, %c0_30] : memref<8x8x512xf32, #tpu.memory_space<vmem>>, vector<1x8x512xf32>
    %80 = vector.shape_cast %79 : vector<1x8x512xf32> to vector<8x512xf32>
    %81 = arith.truncf %77 : vector<8x128xf32> to vector<8x128xbf16>
    %cst_31 = arith.constant dense<0.000000e+00> : vector<8x512xf32>
    %82 = tpu.matmul %81, %13, %cst_31 {dimension_numbers = #tpu.dot_dimension_numbers<[1], [0], [0], [1], [0, 0, 1, 1], [], []>} : vector<8x128xbf16>, vector<128x512xbf16>, vector<8x512xf32> -> vector<8x512xf32>
    %83 = arith.addf %80, %82 : vector<8x512xf32>
    %84 = vector.extract_strided_slice %83 {offsets = [0, 0], sizes = [8, 128], strides = [1, 1]} : vector<8x512xf32> to vector<8x128xf32>
    %85 = arith.negf %84 : vector<8x128xf32>
    %86 = math.exp %85 : vector<8x128xf32>
    %cst_32 = arith.constant 1.000000e+00 : f32
    %87 = vector.broadcast %cst_32 : f32 to vector<8x128xf32>
    %88 = arith.addf %87, %86 : vector<8x128xf32>
    %89 = arith.divf %87, %88 : vector<8x128xf32>
    %90 = vector.extract_strided_slice %83 {offsets = [0, 128], sizes = [8, 128], strides = [1, 1]} : vector<8x512xf32> to vector<8x128xf32>
    %91 = arith.negf %90 : vector<8x128xf32>
    %92 = math.exp %91 : vector<8x128xf32>
    %cst_33 = arith.constant 1.000000e+00 : f32
    %93 = vector.broadcast %cst_33 : f32 to vector<8x128xf32>
    %94 = arith.addf %93, %92 : vector<8x128xf32>
    %95 = arith.divf %93, %94 : vector<8x128xf32>
    %96 = vector.extract_strided_slice %83 {offsets = [0, 256], sizes = [8, 128], strides = [1, 1]} : vector<8x512xf32> to vector<8x128xf32>
    %97 = math.tanh %96 : vector<8x128xf32>
    %98 = vector.extract_strided_slice %83 {offsets = [0, 384], sizes = [8, 128], strides = [1, 1]} : vector<8x512xf32> to vector<8x128xf32>
    %99 = arith.negf %98 : vector<8x128xf32>
    %100 = math.exp %99 : vector<8x128xf32>
    %cst_34 = arith.constant 1.000000e+00 : f32
    %101 = vector.broadcast %cst_34 : f32 to vector<8x128xf32>
    %102 = arith.addf %101, %100 : vector<8x128xf32>
    %103 = arith.divf %101, %102 : vector<8x128xf32>
    %104 = arith.mulf %95, %75 : vector<8x128xf32>
    %105 = arith.mulf %89, %97 : vector<8x128xf32>
    %106 = arith.addf %104, %105 : vector<8x128xf32>
    %107 = math.tanh %106 : vector<8x128xf32>
    %108 = arith.mulf %103, %107 : vector<8x128xf32>
    %c3_i32 = arith.constant 3 : i32
    %109 = arith.index_cast %c3_i32 : i32 to index
    %c0_35 = arith.constant 0 : index
    %c0_36 = arith.constant 0 : index
    %110 = vector.load %arg11[%109, %c0_35, %c0_36] : memref<8x8x512xf32, #tpu.memory_space<vmem>>, vector<1x8x512xf32>
    %111 = vector.shape_cast %110 : vector<1x8x512xf32> to vector<8x512xf32>
    %112 = arith.truncf %108 : vector<8x128xf32> to vector<8x128xbf16>
    %cst_37 = arith.constant dense<0.000000e+00> : vector<8x512xf32>
    %113 = tpu.matmul %112, %13, %cst_37 {dimension_numbers = #tpu.dot_dimension_numbers<[1], [0], [0], [1], [0, 0, 1, 1], [], []>} : vector<8x128xbf16>, vector<128x512xbf16>, vector<8x512xf32> -> vector<8x512xf32>
    %114 = arith.addf %111, %113 : vector<8x512xf32>
    %115 = vector.extract_strided_slice %114 {offsets = [0, 0], sizes = [8, 128], strides = [1, 1]} : vector<8x512xf32> to vector<8x128xf32>
    %116 = arith.negf %115 : vector<8x128xf32>
    %117 = math.exp %116 : vector<8x128xf32>
    %cst_38 = arith.constant 1.000000e+00 : f32
    %118 = vector.broadcast %cst_38 : f32 to vector<8x128xf32>
    %119 = arith.addf %118, %117 : vector<8x128xf32>
    %120 = arith.divf %118, %119 : vector<8x128xf32>
    %121 = vector.extract_strided_slice %114 {offsets = [0, 128], sizes = [8, 128], strides = [1, 1]} : vector<8x512xf32> to vector<8x128xf32>
    %122 = arith.negf %121 : vector<8x128xf32>
    %123 = math.exp %122 : vector<8x128xf32>
    %cst_39 = arith.constant 1.000000e+00 : f32
    %124 = vector.broadcast %cst_39 : f32 to vector<8x128xf32>
    %125 = arith.addf %124, %123 : vector<8x128xf32>
    %126 = arith.divf %124, %125 : vector<8x128xf32>
    %127 = vector.extract_strided_slice %114 {offsets = [0, 256], sizes = [8, 128], strides = [1, 1]} : vector<8x512xf32> to vector<8x128xf32>
    %128 = math.tanh %127 : vector<8x128xf32>
    %129 = vector.extract_strided_slice %114 {offsets = [0, 384], sizes = [8, 128], strides = [1, 1]} : vector<8x512xf32> to vector<8x128xf32>
    %130 = arith.negf %129 : vector<8x128xf32>
    %131 = math.exp %130 : vector<8x128xf32>
    %cst_40 = arith.constant 1.000000e+00 : f32
    %132 = vector.broadcast %cst_40 : f32 to vector<8x128xf32>
    %133 = arith.addf %132, %131 : vector<8x128xf32>
    %134 = arith.divf %132, %133 : vector<8x128xf32>
    %135 = arith.mulf %126, %106 : vector<8x128xf32>
    %136 = arith.mulf %120, %128 : vector<8x128xf32>
    %137 = arith.addf %135, %136 : vector<8x128xf32>
    %138 = math.tanh %137 : vector<8x128xf32>
    %139 = arith.mulf %134, %138 : vector<8x128xf32>
    %c4_i32 = arith.constant 4 : i32
    %140 = arith.index_cast %c4_i32 : i32 to index
    %c0_41 = arith.constant 0 : index
    %c0_42 = arith.constant 0 : index
    %141 = vector.load %arg11[%140, %c0_41, %c0_42] : memref<8x8x512xf32, #tpu.memory_space<vmem>>, vector<1x8x512xf32>
    %142 = vector.shape_cast %141 : vector<1x8x512xf32> to vector<8x512xf32>
    %143 = arith.truncf %139 : vector<8x128xf32> to vector<8x128xbf16>
    %cst_43 = arith.constant dense<0.000000e+00> : vector<8x512xf32>
    %144 = tpu.matmul %143, %13, %cst_43 {dimension_numbers = #tpu.dot_dimension_numbers<[1], [0], [0], [1], [0, 0, 1, 1], [], []>} : vector<8x128xbf16>, vector<128x512xbf16>, vector<8x512xf32> -> vector<8x512xf32>
    %145 = arith.addf %142, %144 : vector<8x512xf32>
    %146 = vector.extract_strided_slice %145 {offsets = [0, 0], sizes = [8, 128], strides = [1, 1]} : vector<8x512xf32> to vector<8x128xf32>
    %147 = arith.negf %146 : vector<8x128xf32>
    %148 = math.exp %147 : vector<8x128xf32>
    %cst_44 = arith.constant 1.000000e+00 : f32
    %149 = vector.broadcast %cst_44 : f32 to vector<8x128xf32>
    %150 = arith.addf %149, %148 : vector<8x128xf32>
    %151 = arith.divf %149, %150 : vector<8x128xf32>
    %152 = vector.extract_strided_slice %145 {offsets = [0, 128], sizes = [8, 128], strides = [1, 1]} : vector<8x512xf32> to vector<8x128xf32>
    %153 = arith.negf %152 : vector<8x128xf32>
    %154 = math.exp %153 : vector<8x128xf32>
    %cst_45 = arith.constant 1.000000e+00 : f32
    %155 = vector.broadcast %cst_45 : f32 to vector<8x128xf32>
    %156 = arith.addf %155, %154 : vector<8x128xf32>
    %157 = arith.divf %155, %156 : vector<8x128xf32>
    %158 = vector.extract_strided_slice %145 {offsets = [0, 256], sizes = [8, 128], strides = [1, 1]} : vector<8x512xf32> to vector<8x128xf32>
    %159 = math.tanh %158 : vector<8x128xf32>
    %160 = vector.extract_strided_slice %145 {offsets = [0, 384], sizes = [8, 128], strides = [1, 1]} : vector<8x512xf32> to vector<8x128xf32>
    %161 = arith.negf %160 : vector<8x128xf32>
    %162 = math.exp %161 : vector<8x128xf32>
    %cst_46 = arith.constant 1.000000e+00 : f32
    %163 = vector.broadcast %cst_46 : f32 to vector<8x128xf32>
    %164 = arith.addf %163, %162 : vector<8x128xf32>
    %165 = arith.divf %163, %164 : vector<8x128xf32>
    %166 = arith.mulf %157, %137 : vector<8x128xf32>
    %167 = arith.mulf %151, %159 : vector<8x128xf32>
    %168 = arith.addf %166, %167 : vector<8x128xf32>
    %169 = math.tanh %168 : vector<8x128xf32>
    %170 = arith.mulf %165, %169 : vector<8x128xf32>
    %c5_i32 = arith.constant 5 : i32
    %171 = arith.index_cast %c5_i32 : i32 to index
    %c0_47 = arith.constant 0 : index
    %c0_48 = arith.constant 0 : index
    %172 = vector.load %arg11[%171, %c0_47, %c0_48] : memref<8x8x512xf32, #tpu.memory_space<vmem>>, vector<1x8x512xf32>
    %173 = vector.shape_cast %172 : vector<1x8x512xf32> to vector<8x512xf32>
    %174 = arith.truncf %170 : vector<8x128xf32> to vector<8x128xbf16>
    %cst_49 = arith.constant dense<0.000000e+00> : vector<8x512xf32>
    %175 = tpu.matmul %174, %13, %cst_49 {dimension_numbers = #tpu.dot_dimension_numbers<[1], [0], [0], [1], [0, 0, 1, 1], [], []>} : vector<8x128xbf16>, vector<128x512xbf16>, vector<8x512xf32> -> vector<8x512xf32>
    %176 = arith.addf %173, %175 : vector<8x512xf32>
    %177 = vector.extract_strided_slice %176 {offsets = [0, 0], sizes = [8, 128], strides = [1, 1]} : vector<8x512xf32> to vector<8x128xf32>
    %178 = arith.negf %177 : vector<8x128xf32>
    %179 = math.exp %178 : vector<8x128xf32>
    %cst_50 = arith.constant 1.000000e+00 : f32
    %180 = vector.broadcast %cst_50 : f32 to vector<8x128xf32>
    %181 = arith.addf %180, %179 : vector<8x128xf32>
    %182 = arith.divf %180, %181 : vector<8x128xf32>
    %183 = vector.extract_strided_slice %176 {offsets = [0, 128], sizes = [8, 128], strides = [1, 1]} : vector<8x512xf32> to vector<8x128xf32>
    %184 = arith.negf %183 : vector<8x128xf32>
    %185 = math.exp %184 : vector<8x128xf32>
    %cst_51 = arith.constant 1.000000e+00 : f32
    %186 = vector.broadcast %cst_51 : f32 to vector<8x128xf32>
    %187 = arith.addf %186, %185 : vector<8x128xf32>
    %188 = arith.divf %186, %187 : vector<8x128xf32>
    %189 = vector.extract_strided_slice %176 {offsets = [0, 256], sizes = [8, 128], strides = [1, 1]} : vector<8x512xf32> to vector<8x128xf32>
    %190 = math.tanh %189 : vector<8x128xf32>
    %191 = vector.extract_strided_slice %176 {offsets = [0, 384], sizes = [8, 128], strides = [1, 1]} : vector<8x512xf32> to vector<8x128xf32>
    %192 = arith.negf %191 : vector<8x128xf32>
    %193 = math.exp %192 : vector<8x128xf32>
    %cst_52 = arith.constant 1.000000e+00 : f32
    %194 = vector.broadcast %cst_52 : f32 to vector<8x128xf32>
    %195 = arith.addf %194, %193 : vector<8x128xf32>
    %196 = arith.divf %194, %195 : vector<8x128xf32>
    %197 = arith.mulf %188, %168 : vector<8x128xf32>
    %198 = arith.mulf %182, %190 : vector<8x128xf32>
    %199 = arith.addf %197, %198 : vector<8x128xf32>
    %200 = math.tanh %199 : vector<8x128xf32>
    %201 = arith.mulf %196, %200 : vector<8x128xf32>
    %c6_i32 = arith.constant 6 : i32
    %202 = arith.index_cast %c6_i32 : i32 to index
    %c0_53 = arith.constant 0 : index
    %c0_54 = arith.constant 0 : index
    %203 = vector.load %arg11[%202, %c0_53, %c0_54] : memref<8x8x512xf32, #tpu.memory_space<vmem>>, vector<1x8x512xf32>
    %204 = vector.shape_cast %203 : vector<1x8x512xf32> to vector<8x512xf32>
    %205 = arith.truncf %201 : vector<8x128xf32> to vector<8x128xbf16>
    %cst_55 = arith.constant dense<0.000000e+00> : vector<8x512xf32>
    %206 = tpu.matmul %205, %13, %cst_55 {dimension_numbers = #tpu.dot_dimension_numbers<[1], [0], [0], [1], [0, 0, 1, 1], [], []>} : vector<8x128xbf16>, vector<128x512xbf16>, vector<8x512xf32> -> vector<8x512xf32>
    %207 = arith.addf %204, %206 : vector<8x512xf32>
    %208 = vector.extract_strided_slice %207 {offsets = [0, 0], sizes = [8, 128], strides = [1, 1]} : vector<8x512xf32> to vector<8x128xf32>
    %209 = arith.negf %208 : vector<8x128xf32>
    %210 = math.exp %209 : vector<8x128xf32>
    %cst_56 = arith.constant 1.000000e+00 : f32
    %211 = vector.broadcast %cst_56 : f32 to vector<8x128xf32>
    %212 = arith.addf %211, %210 : vector<8x128xf32>
    %213 = arith.divf %211, %212 : vector<8x128xf32>
    %214 = vector.extract_strided_slice %207 {offsets = [0, 128], sizes = [8, 128], strides = [1, 1]} : vector<8x512xf32> to vector<8x128xf32>
    %215 = arith.negf %214 : vector<8x128xf32>
    %216 = math.exp %215 : vector<8x128xf32>
    %cst_57 = arith.constant 1.000000e+00 : f32
    %217 = vector.broadcast %cst_57 : f32 to vector<8x128xf32>
    %218 = arith.addf %217, %216 : vector<8x128xf32>
    %219 = arith.divf %217, %218 : vector<8x128xf32>
    %220 = vector.extract_strided_slice %207 {offsets = [0, 256], sizes = [8, 128], strides = [1, 1]} : vector<8x512xf32> to vector<8x128xf32>
    %221 = math.tanh %220 : vector<8x128xf32>
    %222 = vector.extract_strided_slice %207 {offsets = [0, 384], sizes = [8, 128], strides = [1, 1]} : vector<8x512xf32> to vector<8x128xf32>
    %223 = arith.negf %222 : vector<8x128xf32>
    %224 = math.exp %223 : vector<8x128xf32>
    %cst_58 = arith.constant 1.000000e+00 : f32
    %225 = vector.broadcast %cst_58 : f32 to vector<8x128xf32>
    %226 = arith.addf %225, %224 : vector<8x128xf32>
    %227 = arith.divf %225, %226 : vector<8x128xf32>
    %228 = arith.mulf %219, %199 : vector<8x128xf32>
    %229 = arith.mulf %213, %221 : vector<8x128xf32>
    %230 = arith.addf %228, %229 : vector<8x128xf32>
    %231 = math.tanh %230 : vector<8x128xf32>
    %232 = arith.mulf %227, %231 : vector<8x128xf32>
    %c7_i32 = arith.constant 7 : i32
    %233 = arith.index_cast %c7_i32 : i32 to index
    %c0_59 = arith.constant 0 : index
    %c0_60 = arith.constant 0 : index
    %234 = vector.load %arg11[%233, %c0_59, %c0_60] : memref<8x8x512xf32, #tpu.memory_space<vmem>>, vector<1x8x512xf32>
    %235 = vector.shape_cast %234 : vector<1x8x512xf32> to vector<8x512xf32>
    %236 = arith.truncf %232 : vector<8x128xf32> to vector<8x128xbf16>
    %cst_61 = arith.constant dense<0.000000e+00> : vector<8x512xf32>
    %237 = tpu.matmul %236, %13, %cst_61 {dimension_numbers = #tpu.dot_dimension_numbers<[1], [0], [0], [1], [0, 0, 1, 1], [], []>} : vector<8x128xbf16>, vector<128x512xbf16>, vector<8x512xf32> -> vector<8x512xf32>
    %238 = arith.addf %235, %237 : vector<8x512xf32>
    %239 = vector.extract_strided_slice %238 {offsets = [0, 0], sizes = [8, 128], strides = [1, 1]} : vector<8x512xf32> to vector<8x128xf32>
    %240 = arith.negf %239 : vector<8x128xf32>
    %241 = math.exp %240 : vector<8x128xf32>
    %cst_62 = arith.constant 1.000000e+00 : f32
    %242 = vector.broadcast %cst_62 : f32 to vector<8x128xf32>
    %243 = arith.addf %242, %241 : vector<8x128xf32>
    %244 = arith.divf %242, %243 : vector<8x128xf32>
    %245 = vector.extract_strided_slice %238 {offsets = [0, 128], sizes = [8, 128], strides = [1, 1]} : vector<8x512xf32> to vector<8x128xf32>
    %246 = arith.negf %245 : vector<8x128xf32>
    %247 = math.exp %246 : vector<8x128xf32>
    %cst_63 = arith.constant 1.000000e+00 : f32
    %248 = vector.broadcast %cst_63 : f32 to vector<8x128xf32>
    %249 = arith.addf %248, %247 : vector<8x128xf32>
    %250 = arith.divf %248, %249 : vector<8x128xf32>
    %251 = vector.extract_strided_slice %238 {offsets = [0, 256], sizes = [8, 128], strides = [1, 1]} : vector<8x512xf32> to vector<8x128xf32>
    %252 = math.tanh %251 : vector<8x128xf32>
    %253 = vector.extract_strided_slice %238 {offsets = [0, 384], sizes = [8, 128], strides = [1, 1]} : vector<8x512xf32> to vector<8x128xf32>
    %254 = arith.negf %253 : vector<8x128xf32>
    %255 = math.exp %254 : vector<8x128xf32>
    %cst_64 = arith.constant 1.000000e+00 : f32
    %256 = vector.broadcast %cst_64 : f32 to vector<8x128xf32>
    %257 = arith.addf %256, %255 : vector<8x128xf32>
    %258 = arith.divf %256, %257 : vector<8x128xf32>
    %259 = arith.mulf %250, %230 : vector<8x128xf32>
    %260 = arith.mulf %244, %252 : vector<8x128xf32>
    %261 = arith.addf %259, %260 : vector<8x128xf32>
    %262 = math.tanh %261 : vector<8x128xf32>
    %263 = arith.mulf %258, %262 : vector<8x128xf32>
    %c8_i32 = arith.constant 8 : i32
    %c0_65 = arith.constant 0 : index
    %c0_66 = arith.constant 0 : index
    %264 = vector.load %arg9[%c0_65, %c0_66] : memref<8x128xf32, #tpu.memory_space<vmem>>, vector<8x128xf32>
    tpu.vector_store %arg9[%c0_65, %c0_66], %263 {strides = array<i32>} : memref<8x128xf32, #tpu.memory_space<vmem>>, vector<8x128xf32>,
    %c0_67 = arith.constant 0 : index
    %c0_68 = arith.constant 0 : index
    %265 = vector.load %arg10[%c0_67, %c0_68] : memref<8x128xf32, #tpu.memory_space<vmem>>, vector<8x128xf32>
    tpu.vector_store %arg10[%c0_67, %c0_68], %261 {strides = array<i32>} : memref<8x128xf32, #tpu.memory_space<vmem>>, vector<8x128xf32>,
    %c0_i32_69 = arith.constant 0 : i32
    %266 = arith.cmpi eq, %arg1, %c0_i32_69 : i32
    %267 = arith.extui %266 : i1 to i32
    %c0_i32_70 = arith.constant 0 : i32
    %268 = arith.cmpi ne, %267, %c0_i32_70 : i32
    scf.if %268 {
      %c0_71 = arith.constant 0 : index
      %c0_72 = arith.constant 0 : index
      %269 = vector.load %arg6[%c0_71, %c0_72] : memref<128x128xf32, #tpu.memory_space<vmem>>, vector<128x128xf32>
      %cst_73 = arith.constant dense<0.000000e+00> : vector<8x128xf32>
      %270 = tpu.matmul %263, %269, %cst_73 {dimension_numbers = #tpu.dot_dimension_numbers<[1], [0], [0], [1], [0, 0, 1, 1], [], []>} : vector<8x128xf32>, vector<128x128xf32>, vector<8x128xf32> -> vector<8x128xf32>
      %c0_74 = arith.constant 0 : index
      %c0_75 = arith.constant 0 : index
      %271 = vector.load %arg7[%c0_74, %c0_75] : memref<1x128xf32, #tpu.memory_space<vmem>>, vector<1x128xf32>
      %272 = vector.broadcast %271 : vector<1x128xf32> to vector<8x128xf32>
      %273 = arith.addf %270, %272 : vector<8x128xf32>
      %c0_76 = arith.constant 0 : index
      %c0_77 = arith.constant 0 : index
      %274 = vector.load %arg8[%c0_76, %c0_77] : memref<8x128xf32, #tpu.memory_space<vmem>>, vector<8x128xf32>
      tpu.vector_store %arg8[%c0_76, %c0_77], %273 {strides = array<i32>} : memref<8x128xf32, #tpu.memory_space<vmem>>, vector<8x128xf32>,
    } else {
    }
    return
  }
  func.func @transform_0(%arg0: i32, %arg1: i32) -> (i32, i32, i32) {
    %c0_i32 = arith.constant 0 : i32
    %c0_i32_0 = arith.constant 0 : i32
    return %arg1, %arg0, %c0_i32 : i32, i32, i32
  }
  func.func @transform_1(%arg0: i32, %arg1: i32) -> (i32, i32) {
    %c0_i32 = arith.constant 0 : i32
    %c0_i32_0 = arith.constant 0 : i32
    %c0_i32_1 = arith.constant 0 : i32
    return %c0_i32, %c0_i32_0 : i32, i32
  }
  func.func @transform_2(%arg0: i32, %arg1: i32) -> (i32, i32) {
    %c0_i32 = arith.constant 0 : i32
    %c0_i32_0 = arith.constant 0 : i32
    %c0_i32_1 = arith.constant 0 : i32
    return %c0_i32, %c0_i32_0 : i32, i32
  }
  func.func @transform_3(%arg0: i32, %arg1: i32) -> (i32, i32) {
    %c0_i32 = arith.constant 0 : i32
    %c0_i32_0 = arith.constant 0 : i32
    %c0_i32_1 = arith.constant 0 : i32
    return %c0_i32, %c0_i32_0 : i32, i32
  }
  func.func @transform_4(%arg0: i32, %arg1: i32) -> (i32, i32) {
    %c0_i32 = arith.constant 0 : i32
    %c0_i32_0 = arith.constant 0 : i32
    %c0_i32_1 = arith.constant 0 : i32
    return %c0_i32, %c0_i32_0 : i32, i32
  }
  func.func @transform_5(%arg0: i32, %arg1: i32) -> (i32, i32) {
    %c0_i32 = arith.constant 0 : i32
    %c0_i32_0 = arith.constant 0 : i32
    %c0_i32_1 = arith.constant 0 : i32
    return %c0_i32, %c0_i32_0 : i32, i32
  }
  func.func @transform_6(%arg0: i32, %arg1: i32) -> (i32, i32) {
    %c0_i32 = arith.constant 0 : i32
    %c0_i32_0 = arith.constant 0 : i32
    return %arg0, %c0_i32 : i32, i32
  }
}

</mosaic_0001>

<bundles_post_ra>
// kernel: tpu_custom_call.1
= control target key start
LH: loop header
LB: loop body
LE: loop exit
PB: predicated region body
PF: predicated region fallthrough
CT: control target
= control target key end

     0   :  { %11 = vsyncpa [#allocation6], 0  ;;  %s2769_s0 = inlined_call_operand.hbm [shape: f32[8,8,32], index: 0, kind: input, shape index: {}]   ;;  %s2770_s1 = inlined_call_operand.hbm [shape: bf16[32,512], index: 1, kind: input, shape index: {}]   ;;  %s2771_s2 = inlined_call_operand.hbm [shape: bf16[128,512], index: 2, kind: input, shape index: {}]   ;;  %s2772_s3 = inlined_call_operand.vmem [shape: f32[1,512], index: 3, kind: input, shape index: {}]   ;;  %s2773_s4 = inlined_call_operand.hbm [shape: f32[128,128], index: 4, kind: input, shape index: {}]   ;;  %s2774_s5 = inlined_call_operand.vmem [shape: f32[1,128], index: 5, kind: input, shape index: {}]   ;;  %s2775_s6 = inlined_call_operand.hbm [shape: f32[8,128], index: 6, kind: output, shape index: {}]  }
   0x1   :  { %12 = vsyncpa [#allocation9], 0 }
   0x2   :  { %13 = vsyncpa [#allocation12], 0 }
   0x3   :  { %14 = vsyncpa [#allocation7], 0  ;;  %s2096_s21 = smov [#allocation8]   ;;  %s1978_s25 = scalar_lea.hbm %s2770_s1, 1024 }
   0x4   :  { %s32_s22 = sshll.u32 %s2096_s21, 4  ;;  %p1979_p0 = scmp.ne.s32.totalorder %s2770_s1, %s1978_s25  ;;  %s33_s22 = int_to_ptr.vmem [resolvable:$true] %s32_s22 }
   0x5   :  { %p1982_p1 = scmp.lt.u32.totalorder %s1978_s25, %s2770_s1 }
   0x7   :  { %p1984_p2 = pnand %p1982_p1, %p1979_p0 }
   0x9   :  { %1987 = shalt.err (!%p1984_p2)
}
   0xa   :  { %s1988_s30 = scalar_lea.vmem %s33_s22, 1024  ;;  %p1993_p4 = scmp.lt.s32.totalorder %s33_s22, %s33_s22 }
   0xb   :  { %p1989_p3 = scmp.ne.s32.totalorder %s33_s22, %s1988_s30  ;;  %p1994_p5 = scmp.lt.s32.totalorder %s1988_s30, %s1988_s30 }
   0xd   :  { %p1995_p6 = por %p1994_p5, %p1993_p4 }
   0xf   :  { %p1996_p7 = pnand %p1995_p6, %p1989_p3 }
  0x11   :  { %1999 = shalt.err (!%p1996_p7)
}
  0x12   :  { %s2097_s7 = smov 256   ;;  %s2098_s8 = smov 16  }
  0x13   :  { %38 = dma.hbm_to_vmem [thread:$0]  %s2770_s1, 1024, %s33_s22, [#allocation9], %s2097_s7, %s2097_s7, %s2098_s8  }
  0x14   :  { %s2099_s11 = smov [#allocation5]   ;;  %s2000_s15 = scalar_lea.hbm %s2769_s0, 1024 }
  0x15   :  { %s20_s12 = sshll.u32 %s2099_s11, 4  ;;  %p2001_p8 = scmp.ne.s32.totalorder %s2769_s0, %s2000_s15  ;;  %s21_s12 = int_to_ptr.vmem [resolvable:$true] %s20_s12 }
  0x16   :  { %p2004_p9 = scmp.lt.u32.totalorder %s2000_s15, %s2769_s0 }
  0x18   :  { %p2006_p10 = pnand %p2004_p9, %p2001_p8 }
  0x1a   :  { %2009 = shalt.err (!%p2006_p10)
}
  0x1b   :  { %s2010_s20 = scalar_lea.vmem %s21_s12, 1024  ;;  %p2015_p12 = scmp.lt.s32.totalorder %s21_s12, %s21_s12 }
  0x1c   :  { %p2011_p11 = scmp.ne.s32.totalorder %s21_s12, %s2010_s20  ;;  %p2016_p13 = scmp.lt.s32.totalorder %s2010_s20, %s2010_s20 }
  0x1e   :  { %p2017_p0 = por %p2016_p13, %p2015_p12 }
  0x20   :  { %p2018_p1 = pnand %p2017_p0, %p2011_p11 }
  0x22   :  { %2021 = shalt.err (!%p2018_p1)
}
  0x23   :  { %s2100_s1 = smov 128   ;;  %s2101_s21 = smov 8  }
  0x24   :  { %26 = dma.hbm_to_vmem [thread:$0]  %s2769_s0, 1024, %s21_s12, [#allocation6], %s2100_s1, %s2100_s1, %s2101_s21  }
  0x25   :  { %s2102_s24 = smov [#allocation10]   ;;  %s2103_s26 = smov [#allocation11]  }
  0x26   :  { %s44_s25 = sshll.u32 %s2102_s24, 4  ;;  %s58_s27 = sshll.u32 %s2103_s26, 4  ;;  %s45_s25 = int_to_ptr.vmem [resolvable:$true] %s44_s25  ;;  %s2174_s27 = int_to_ptr.vmem [resolvable:$true] %s58_s27 }
  0x27   :  { %s2022_s30 = scalar_lea.hbm %s2771_s2, 4096 }
  0x28   :  { %p2023_p2 = scmp.ne.s32.totalorder %s2771_s2, %s2022_s30  ;;  %p2026_p3 = scmp.lt.u32.totalorder %s2022_s30, %s2771_s2 }
  0x2a   :  { %p2028_p4 = pnand %p2026_p3, %p2023_p2 }
  0x2c   :  { %2031 = shalt.err (!%p2028_p4)
}
  0x2d   :  { %s2032_s0 = scalar_lea.vmem %s45_s25, 4096  ;;  %p2037_p6 = scmp.lt.s32.totalorder %s45_s25, %s45_s25 }
  0x2e   :  { %p2033_p5 = scmp.ne.s32.totalorder %s45_s25, %s2032_s0  ;;  %p2038_p7 = scmp.lt.s32.totalorder %s2032_s0, %s2032_s0 }
  0x30   :  { %p2039_p8 = por %p2038_p7, %p2037_p6 }
  0x32   :  { %p2040_p9 = pnand %p2039_p8, %p2033_p5 }
  0x34   :  { %2043 = shalt.err (!%p2040_p9)
}
  0x35   :  { %50 = dma.hbm_to_vmem [thread:$0]  %s2771_s2, 4096, %s45_s25, [#allocation9], %s2097_s7, %s2097_s7, %s2098_s8  }
  0x36   :  { %s2044_s17 = scalar_lea.hbm %s2773_s4, 2048 }
  0x37   :  { %p2045_p10 = scmp.ne.s32.totalorder %s2773_s4, %s2044_s17  ;;  %p2048_p11 = scmp.lt.u32.totalorder %s2044_s17, %s2773_s4 }
  0x39   :  { %p2050_p12 = pnand %p2048_p11, %p2045_p10 }
  0x3b   :  { %2053 = shalt.err (!%p2050_p12)
}
  0x3c   :  { %s2054_s23 = scalar_lea.vmem %s2174_s27, 2048  ;;  %p2059_p0 = scmp.lt.s32.totalorder %s2174_s27, %s2174_s27 }
  0x3d   :  { %p2055_p13 = scmp.ne.s32.totalorder %s2174_s27, %s2054_s23  ;;  %p2060_p1 = scmp.lt.s32.totalorder %s2054_s23, %s2054_s23 }
  0x3f   :  { %p2061_p2 = por %p2060_p1, %p2059_p0 }
  0x41   :  { %p2062_p3 = pnand %p2061_p2, %p2055_p13 }
  0x43   :  { %2065 = shalt.err (!%p2062_p3)
}
  0x44   :  { %64 = dma.hbm_to_vmem [thread:$0]  %s2773_s4, 2048, %s2174_s27, [#allocation12], %s2100_s1, %s2100_s1, %s2101_s21  }
  0x45   :  { %2088 = dma.done.wait [#allocation6], 1024  }
  0x46   :  { %2089 = vsyncadd [#allocation6], 4294966272 }
  0x47   :  { %2090 = dma.done.wait [#allocation9], 5120  }
  0x48   :  { %2091 = vsyncadd [#allocation9], 4294962176 }
  0x49   :  { %2092 = dma.done.wait [#allocation12], 2048  }
  0x4a   :  { %2093 = vsyncadd [#allocation12], 4294965248  ;;  %v2778_v0 = vmov 0   ;;  %v1758_v1 = vld [vmem:[#allocation8 + $0x4] ss:$16 sps:$4 sm:$0xff]   ;;  %v87_v10 = vld [vmem:[#allocation5 + $0x8] sm:$0xff]  ;;  %v108_v54 = vlaneseq }
  0x4b   :  { %213 = vmatprep.mubr.bf16.mxu0 %v2778_v0  ;;  %286 = vmatprep.mubr.bf16.mxu1 %v2778_v0  ;;  %v1760_v2 = vld [vmem:[#allocation8 + $0xc] ss:$16 sps:$4 sm:$0xff]   ;;  %v1762_v3 = vld [vmem:[#allocation8] ss:$16 sps:$4 sm:$0xff]   ;;  %v1763_v4 = vld [vmem:[#allocation8 + $0x8] ss:$16 sps:$4 sm:$0xff]  }
  0x4c   :  { %181 = vmatprep.subr.bf16.mxu0 %v1758_v1  ;;  %254 = vmatprep.subr.bf16.mxu1 %v1760_v2  ;;  %v1764_v5 = vld [vmem:[#allocation8 + $0x24] ss:$16 sps:$4 sm:$0xff]   ;;  %v1766_v6 = vld [vmem:[#allocation8 + $0x2c] ss:$16 sps:$4 sm:$0xff]   ;;  %v1768_v7 = vld [vmem:[#allocation8 + $0x20] ss:$16 sps:$4 sm:$0xff]  }
  0x4d   :  { %182 = vmatpush1.bf16.msra.mxu0 %v1762_v3  ;;  %255 = vmatpush1.bf16.msra.mxu1 %v1763_v4  ;;  %v1769_v8 = vld [vmem:[#allocation8 + $0x28] ss:$16 sps:$4 sm:$0xff]   ;;  %v86_v9 = vld [vmem:[#allocation5] sm:$0xff]  ;;  %v2215_v13 = vld [vmem:[#allocation10 + $0xc] ss:$16 sps:$4 sm:$0xff]   ;;  %vm168_vm0 = vcmask 261120  }
  0x4e   :  { %183 = vmatprep.subr.bf16.mxu0 %v1764_v5  ;;  %256 = vmatprep.subr.bf16.mxu1 %v1766_v6  ;;  %v2213_v11 = vld [vmem:[#allocation10 + $0x4] ss:$16 sps:$4 sm:$0xff]   ;;  %v94_v12 = vpack.c.bf16 %v87_v10, %v86_v9  ;;  %v2217_v14 = vld [vmem:[#allocation10] ss:$16 sps:$4 sm:$0xff]   ;;  %v2219_v15 = vld [vmem:[#allocation10 + $0x8] ss:$16 sps:$4 sm:$0xff]  }
  0x4f   :  { %v2223_v16 = vld [vmem:[#allocation10 + $0x24] ss:$16 sps:$4 sm:$0xff]   ;;  %v2225_v17 = vld [vmem:[#allocation10 + $0x2c] ss:$16 sps:$4 sm:$0xff]   ;;  %v2227_v18 = vld [vmem:[#allocation10 + $0x20] ss:$16 sps:$4 sm:$0xff]  }
  0x50   :  { %v2231_v19 = vld [vmem:[#allocation10 + $0x28] ss:$16 sps:$4 sm:$0xff]   ;;  %v88_v20 = vld [vmem:[#allocation5 + $0x10] sm:$0xff]  ;;  %v2239_v23 = vld [vmem:[#allocation10 + $0x4c] ss:$16 sps:$4 sm:$0xff]   ;;  %v2776_v53 = vmov 0.0|0.0  }
  0x51   :  { %184 = vmatpush1.bf16.msra.mxu0 %v1768_v7  ;;  %257 = vmatpush1.bf16.msra.mxu1 %v1769_v8  ;;  %v89_v21 = vld [vmem:[#allocation5 + $0x18] sm:$0xff]  ;;  %v2235_v22 = vld [vmem:[#allocation10 + $0x44] ss:$16 sps:$4 sm:$0xff]   ;;  %v2245_v25 = vld [vmem:[#allocation10 + $0x40] ss:$16 sps:$4 sm:$0xff]   ;;  %v109_v55 = vshrl.u32 %v108_v54, 7 }
  0x52   :  { %558 = vmatprep.subr.bf16.mxu0 %v2213_v11  ;;  %599 = vmatprep.subr.bf16.mxu1 %v2215_v13  ;;  %v95_v24 = vpack.c.bf16 %v89_v21, %v88_v20  ;;  %v2247_v26 = vld [vmem:[#allocation10 + $0x48] ss:$16 sps:$4 sm:$0xff]   ;;  %v2251_v27 = vld [vmem:[#allocation10 + $0x64] ss:$16 sps:$4 sm:$0xff]   ;;  %v2253_v28 = vld [vmem:[#allocation10 + $0x6c] ss:$16 sps:$4 sm:$0xff]  }
  0x53   :  { %v2255_v29 = vld [vmem:[#allocation10 + $0x60] ss:$16 sps:$4 sm:$0xff]   ;;  %v2257_v30 = vld [vmem:[#allocation10 + $0x68] ss:$16 sps:$4 sm:$0xff]   ;;  %v2263_v33 = vld [vmem:[#allocation10 + $0x84] ss:$16 sps:$4 sm:$0xff]  }
  0x54   :  { %1604 = vmatmul.mubr.msk.bf16.vlgmr.msra.gmra.mrb[0].mxu0 %vm168_vm0, %v94_v12  ;;  %1608 = vmatmul.mubr.msk.bf16.vlgmr.msra.gmra.mrb[0].mxu1 %vm168_vm0, %v94_v12  ;;  %v90_v31 = vld [vmem:[#allocation5 + $0x20] sm:$0xff]  ;;  %v91_v32 = vld [vmem:[#allocation5 + $0x28] sm:$0xff]  ;;  %v92_v42 = vld [vmem:[#allocation5 + $0x30] sm:$0xff]  ;;  %v118_v56 = vsub.s32 2, %v109_v55  ;;  %v122_v57 = vsub.s32 3, %v109_v55  ;;  %v110_v58 = vsub.s32 0, %v109_v55 }
  0x55   :  { %559 = vmatpush1.bf16.msra.mxu0 %v2217_v14  ;;  %600 = vmatpush1.bf16.msra.mxu1 %v2219_v15  ;;  %v2267_v34 = vld [vmem:[#allocation10 + $0x8c] ss:$16 sps:$4 sm:$0xff]   ;;  %v96_v35 = vpack.c.bf16 %v91_v32, %v90_v31  ;;  %v2271_v36 = vld [vmem:[#allocation10 + $0x80] ss:$16 sps:$4 sm:$0xff]   ;;  %v2273_v37 = vld [vmem:[#allocation10 + $0x88] ss:$16 sps:$4 sm:$0xff]  }
  0x56   :  { %560 = vmatprep.subr.bf16.mxu0 %v2223_v16  ;;  %601 = vmatprep.subr.bf16.mxu1 %v2225_v17  ;;  %v2277_v38 = vld [vmem:[#allocation10 + $0xa4] ss:$16 sps:$4 sm:$0xff]   ;;  %v2281_v39 = vld [vmem:[#allocation10 + $0xac] ss:$16 sps:$4 sm:$0xff]   ;;  %v2283_v40 = vld [vmem:[#allocation10 + $0xa0] ss:$16 sps:$4 sm:$0xff]  }
  0x57   :  { %223 = vmatprep.mubr.bf16.mxu0 %v2778_v0  ;;  %296 = vmatprep.mubr.bf16.mxu1 %v2778_v0  ;;  %v2287_v41 = vld [vmem:[#allocation10 + $0xa8] ss:$16 sps:$4 sm:$0xff]   ;;  %v2293_v44 = vld [vmem:[#allocation10 + $0xc4] ss:$16 sps:$4 sm:$0xff]   ;;  %v2295_v45 = vld [vmem:[#allocation10 + $0xcc] ss:$16 sps:$4 sm:$0xff]  }
  0x58   :  { %v93_v43 = vld [vmem:[#allocation5 + $0x38] sm:$0xff]  ;;  %v2301_v47 = vld [vmem:[#allocation10 + $0xc0] ss:$16 sps:$4 sm:$0xff]   ;;  %v2307_v49 = vld [vmem:[#allocation10 + $0xe4] ss:$16 sps:$4 sm:$0xff]   ;;  %v114_v60 = vsub.s32 1, %v109_v55 }
  0x59   :  { %561 = vmatpush1.bf16.msra.mxu0 %v2227_v18  ;;  %602 = vmatpush1.bf16.msra.mxu1 %v2231_v19  ;;  %v97_v46 = vpack.c.bf16 %v93_v43, %v92_v42  ;;  %v2303_v48 = vld [vmem:[#allocation10 + $0xc8] ss:$16 sps:$4 sm:$0xff]   ;;  %v2309_v50 = vld [vmem:[#allocation10 + $0xec] ss:$16 sps:$4 sm:$0xff]   ;;  %v2315_v51 = vld [vmem:[#allocation10 + $0xe0] ss:$16 sps:$4 sm:$0xff]  }
  0x5a   :  { %562 = vmatprep.subr.bf16.mxu0 %v2235_v22  ;;  %603 = vmatprep.subr.bf16.mxu1 %v2239_v23  ;;  %v2317_v52 = vld [vmem:[#allocation10 + $0xe8] ss:$16 sps:$4 sm:$0xff]   ;;  %v106_v59 = vld [vmem:[%s2772_s3] sm:$0xf]  ;;  %vm2106_vm1 = vmmov 0   ;;  %s2108_s21 = smov [#allocation13]  }
  0x5b   :  { %v2366_v61 = vrot.slane %v106_v59, %v118_v56  ;;  %v2372_v1 = vrot.slane %v106_v59, %v122_v57  ;;  %v111_v2 = vrot.slane %v106_v59, %v110_v58  ;;  %v115_v5 = vrot.slane %v106_v59, %v114_v60  ;;  %s1585_s24 = sshll.u32 %s2108_s21, 4  ;;  %s1586_s24 = int_to_ptr.vmem [resolvable:$true] %s1585_s24 }
  0x5c   :  { %1605 = vmatmul.mubr.msk.bf16.gmra.mrb[4].mxu0 %vm168_vm0, %v95_v24  ;;  %1609 = vmatmul.mubr.msk.bf16.gmra.mrb[4].mxu1 %vm168_vm0, %v95_v24  ;;  %s2066_s25 = scalar_lea.vmem %s1586_s24, 128  ;;  %p2071_p5 = scmp.lt.s32.totalorder %s1586_s24, %s1586_s24 }
  0x5d   :  { %563 = vmatpush1.bf16.msra.mxu0 %v2245_v25  ;;  %604 = vmatpush1.bf16.msra.mxu1 %v2247_v26  ;;  %p2067_p4 = scmp.ne.s32.totalorder %s1586_s24, %s2066_s25  ;;  %p2072_p6 = scmp.lt.s32.totalorder %s2066_s25, %s2066_s25 }
  0x5e   :  { %564 = vmatprep.subr.bf16.mxu0 %v2251_v27  ;;  %605 = vmatprep.subr.bf16.mxu1 %v2253_v28 }
  0x5f   :  { %233 = vmatprep.mubr.bf16.mxu0 %v2778_v0  ;;  %306 = vmatprep.mubr.bf16.mxu1 %v2778_v0  ;;  %p2073_p7 = por %p2072_p6, %p2071_p5 }
  0x61   :  { %565 = vmatpush1.bf16.msra.mxu0 %v2255_v29  ;;  %606 = vmatpush1.bf16.msra.mxu1 %v2257_v30  ;;  %p2074_p8 = pnand %p2073_p7, %p2067_p4 }
  0x62   :  { %566 = vmatprep.subr.bf16.mxu0 %v2263_v33  ;;  %607 = vmatprep.subr.bf16.mxu1 %v2267_v34 }
  0x64   :  { %1606 = vmatmul.mubr.msk.bf16.gmra.mrb[8].mxu0 %vm168_vm0, %v96_v35  ;;  %1610 = vmatmul.mubr.msk.bf16.gmra.mrb[8].mxu1 %vm168_vm0, %v96_v35 }
  0x65   :  { %567 = vmatpush1.bf16.msra.mxu0 %v2271_v36  ;;  %608 = vmatpush1.bf16.msra.mxu1 %v2273_v37 }
  0x66   :  { %568 = vmatprep.subr.bf16.mxu0 %v2277_v38  ;;  %609 = vmatprep.subr.bf16.mxu1 %v2281_v39 }
  0x67   :  { %243 = vmatprep.mubr.bf16.mxu0 %v2778_v0  ;;  %316 = vmatprep.mubr.bf16.mxu1 %v2778_v0 }
  0x69   :  { %569 = vmatpush1.bf16.msra.mxu0 %v2283_v40  ;;  %610 = vmatpush1.bf16.msra.mxu1 %v2287_v41 }
  0x6a   :  { %570 = vmatprep.subr.bf16.mxu0 %v2293_v44  ;;  %611 = vmatprep.subr.bf16.mxu1 %v2295_v45 }
  0x6c   :  { %1607 = vmatmul.mubr.msk.bf16.gmra.mrb[12].mxu0 %vm168_vm0, %v97_v46  ;;  %1611 = vmatmul.mubr.msk.bf16.gmra.mrb[12].mxu1 %vm168_vm0, %v97_v46 }
  0x6d   :  { %571 = vmatpush1.bf16.msra.mxu0 %v2301_v47  ;;  %612 = vmatpush1.bf16.msra.mxu1 %v2303_v48 }
  0x6e   :  { %572 = vmatprep.subr.bf16.mxu0 %v2307_v49  ;;  %613 = vmatprep.subr.bf16.mxu1 %v2309_v50 }
  0x6f   :  { %590 = vmatprep.mubr.bf16.mxu0 %v2778_v0  ;;  %631 = vmatprep.mubr.bf16.mxu1 %v2778_v0 }
  0x71   :  { %573 = vmatpush1.bf16.msra.mxu0 %v2315_v51  ;;  %614 = vmatpush1.bf16.msra.mxu1 %v2317_v52 }
  0x72   :  { %674 = vmatprep.subr.bf16.mxu0 %v2213_v11  ;;  %715 = vmatprep.subr.bf16.mxu1 %v2215_v13 }
  0x74   :  { %591 = vmatmul.mubr.bf16.vlgmr.msra.gmra.mrb[16].mxu0 %v2776_v53  ;;  %632 = vmatmul.mubr.bf16.vlgmr.msra.gmra.mrb[16].mxu1 %v2776_v53 }
  0x75   :  { %675 = vmatpush1.bf16.msra.mxu0 %v2217_v14  ;;  %716 = vmatpush1.bf16.msra.mxu1 %v2219_v15 }
  0x76   :  { %676 = vmatprep.subr.bf16.mxu0 %v2223_v16  ;;  %717 = vmatprep.subr.bf16.mxu1 %v2225_v17 }
  0x77   :  { %706 = vmatprep.mubr.bf16.mxu0 %v2778_v0  ;;  %747 = vmatprep.mubr.bf16.mxu1 %v2778_v0 }
  0x79   :  { %677 = vmatpush1.bf16.msra.mxu0 %v2227_v18  ;;  %718 = vmatpush1.bf16.msra.mxu1 %v2231_v19 }
  0x7a   :  { %678 = vmatprep.subr.bf16.mxu0 %v2235_v22  ;;  %719 = vmatprep.subr.bf16.mxu1 %v2239_v23 }
  0x7d   :  { %679 = vmatpush1.bf16.msra.mxu0 %v2245_v25  ;;  %720 = vmatpush1.bf16.msra.mxu1 %v2247_v26 }
  0x7e   :  { %680 = vmatprep.subr.bf16.mxu0 %v2251_v27  ;;  %721 = vmatprep.subr.bf16.mxu1 %v2253_v28 }
  0x81   :  { %681 = vmatpush1.bf16.msra.mxu0 %v2255_v29  ;;  %722 = vmatpush1.bf16.msra.mxu1 %v2257_v30 }
  0x82   :  { %682 = vmatprep.subr.bf16.mxu0 %v2263_v33  ;;  %723 = vmatprep.subr.bf16.mxu1 %v2267_v34 }
  0x85   :  { %683 = vmatpush1.bf16.msra.mxu0 %v2271_v36  ;;  %724 = vmatpush1.bf16.msra.mxu1 %v2273_v37 }
  0x86   :  { %684 = vmatprep.subr.bf16.mxu0 %v2277_v38  ;;  %725 = vmatprep.subr.bf16.mxu1 %v2281_v39 }
  0x89   :  { %685 = vmatpush1.bf16.msra.mxu0 %v2283_v40  ;;  %726 = vmatpush1.bf16.msra.mxu1 %v2287_v41 }
  0x8a   :  { %686 = vmatprep.subr.bf16.mxu0 %v2293_v44  ;;  %727 = vmatprep.subr.bf16.mxu1 %v2295_v45 }
  0x8d   :  { %687 = vmatpush1.bf16.msra.mxu0 %v2301_v47  ;;  %728 = vmatpush1.bf16.msra.mxu1 %v2303_v48 }
  0x8e   :  { %688 = vmatprep.subr.bf16.mxu0 %v2307_v49  ;;  %729 = vmatprep.subr.bf16.mxu1 %v2309_v50 }
  0x91   :  { %689 = vmatpush1.bf16.msra.mxu0 %v2315_v51  ;;  %730 = vmatpush1.bf16.msra.mxu1 %v2317_v52 }
  0x92   :  { %790 = vmatprep.subr.bf16.mxu0 %v2213_v11  ;;  %831 = vmatprep.subr.bf16.mxu1 %v2215_v13 }
 0x127   :  { %v2368_v62 = vpop.f32.mrb[0].mxu0  ;;  %v2370_v63 = vpop.f32.mrb[0].mxu1 }
 0x128   :  { %v217_v3 = vpop.f32.mrb[1].mxu0  ;;  %v290_v4 = vpop.f32.mrb[1].mxu1 }
 0x129   :  { %v219_v6 = vpop.f32.mrb[2].mxu0  ;;  %v292_v7 = vpop.f32.mrb[2].mxu1 }
 0x12a   :  { %v2374_v8 = vadd.f32 %v219_v6, %v111_v2  ;;  %v221_v9 = vpop.f32.mrb[3].mxu0  ;;  %v2377_v10 = vadd.f32 %v292_v7, %v2366_v61  ;;  %v294_v12 = vpop.f32.mrb[3].mxu1 }
 0x12b   :  { %v2379_v20 = vadd.f32 %v221_v9, %v115_v5  ;;  %v2382_v21 = vadd.f32 %v294_v12, %v2372_v1 }
 0x12f   :  { %v225_v24 = vpop.f32.mrb[4].mxu0  ;;  %v298_v31 = vpop.f32.mrb[4].mxu1 }
 0x130   :  { %v2384_v32 = vadd.f32 %v225_v24, %v111_v2  ;;  %v227_v35 = vpop.f32.mrb[5].mxu0  ;;  %v2387_v42 = vadd.f32 %v298_v31, %v2366_v61  ;;  %v300_v43 = vpop.f32.mrb[5].mxu1 }
 0x131   :  { %v2389_v46 = vadd.f32 %v227_v35, %v115_v5  ;;  %v229_v54 = vpop.f32.mrb[6].mxu0  ;;  %v2392_v55 = vadd.f32 %v300_v43, %v2372_v1  ;;  %v302_v56 = vpop.f32.mrb[6].mxu1 }
 0x132   :  { %v2394_v57 = vadd.f32 %v229_v54, %v111_v2  ;;  %v231_v58 = vpop.f32.mrb[7].mxu0  ;;  %v2397_v59 = vadd.f32 %v302_v56, %v2366_v61  ;;  %v304_v60 = vpop.f32.mrb[7].mxu1 }
 0x133   :  { %2780 = vst [vmem:[#allocation18_spill] sm:$0xff] %v2392_v55  ;;  %v2399_v6 = vadd.f32 %v231_v58, %v115_v5  ;;  %v2402_v7 = vadd.f32 %v304_v60, %v2372_v1 }
 0x134   :  { %2781 = vst [vmem:[#allocation19_spill] sm:$0xff] %v2394_v57  ;;  %2782 = vst [vmem:[#allocation20_spill] sm:$0xff] %v2397_v59 }
 0x135   :  { %2783 = vst [vmem:[#allocation21_spill] sm:$0xff] %v2399_v6  ;;  %2784 = vst [vmem:[#allocation22_spill] sm:$0xff] %v2402_v7 }
 0x137   :  { %v235_v9 = vpop.f32.mrb[8].mxu0  ;;  %v308_v12 = vpop.f32.mrb[8].mxu1 }
 0x138   :  { %v2404_v24 = vadd.f32 %v235_v9, %v111_v2  ;;  %v237_v31 = vpop.f32.mrb[9].mxu0  ;;  %v2407_v35 = vadd.f32 %v308_v12, %v2366_v61  ;;  %v310_v43 = vpop.f32.mrb[9].mxu1 }
 0x139   :  { %v2409_v54 = vadd.f32 %v237_v31, %v115_v5  ;;  %v239_v53 = vpop.f32.mrb[10].mxu0  ;;  %v2412_v56 = vadd.f32 %v310_v43, %v2372_v1  ;;  %v312_v58 = vpop.f32.mrb[10].mxu1 }
 0x13a   :  { %2785 = vst [vmem:[#allocation23_spill] sm:$0xff] %v2404_v24  ;;  %2786 = vst [vmem:[#allocation24_spill] sm:$0xff] %v2407_v35  ;;  %v2414_v0 = vadd.f32 %v239_v53, %v111_v2  ;;  %v241_v60 = vpop.f32.mrb[11].mxu0  ;;  %v2417_v7 = vadd.f32 %v312_v58, %v2366_v61  ;;  %v314_v9 = vpop.f32.mrb[11].mxu1 }
 0x13b   :  { %2787 = vst [vmem:[#allocation25_spill] sm:$0xff] %v2409_v54  ;;  %2788 = vst [vmem:[#allocation26_spill] sm:$0xff] %v2412_v56  ;;  %v2419_v24 = vadd.f32 %v241_v60, %v115_v5  ;;  %v2422_v12 = vadd.f32 %v314_v9, %v2372_v1 }
 0x13c   :  { %2789 = vst [vmem:[#allocation27_spill] sm:$0xff] %v2414_v0  ;;  %2790 = vst [vmem:[#allocation28_spill] sm:$0xff] %v2417_v7 }
 0x13d   :  { %2791 = vst [vmem:[#allocation29_spill] sm:$0xff] %v2419_v24  ;;  %2792 = vst [vmem:[#allocation30_spill] sm:$0xff] %v2422_v12 }
 0x13f   :  { %v245_v35 = vpop.f32.mrb[12].mxu0  ;;  %v318_v31 = vpop.f32.mrb[12].mxu1 }
 0x140   :  { %v2424_v54 = vadd.f32 %v245_v35, %v111_v2  ;;  %v247_v6 = vpop.f32.mrb[13].mxu0  ;;  %v2427_v43 = vadd.f32 %v318_v31, %v2366_v61  ;;  %v320_v53 = vpop.f32.mrb[13].mxu1 }
 0x141   :  { %v2429_v0 = vadd.f32 %v247_v6, %v115_v5  ;;  %v249_v56 = vpop.f32.mrb[14].mxu0  ;;  %v2432_v58 = vadd.f32 %v320_v53, %v2372_v1  ;;  %v322_v60 = vpop.f32.mrb[14].mxu1  ;;  %v216_v6 = vadd.f32 %v2368_v62, %v111_v2  ;;  %v218_v53 = vadd.f32 %v217_v3, %v115_v5 }
 0x142   :  { %2793 = vst [vmem:[#allocation31_spill] sm:$0xff] %v2424_v54  ;;  %2794 = vst [vmem:[#allocation32_spill] sm:$0xff] %v2427_v43  ;;  %v2434_v24 = vadd.f32 %v249_v56, %v111_v2  ;;  %v251_v9 = vpop.f32.mrb[15].mxu0  ;;  %v2437_v12 = vadd.f32 %v322_v60, %v2366_v61  ;;  %v324_v35 = vpop.f32.mrb[15].mxu1 }
 0x143   :  { %2795 = vst [vmem:[#allocation33_spill] sm:$0xff] %v2429_v0  ;;  %2796 = vst [vmem:[#allocation34_spill] sm:$0xff] %v2432_v58  ;;  %v2439_v54 = vadd.f32 %v251_v9, %v115_v5  ;;  %v2442_v31 = vadd.f32 %v324_v35, %v2372_v1  ;;  %v289_v0 = vadd.f32 %v2370_v63, %v2366_v61 }
 0x144   :  { %2797 = vst [vmem:[#allocation35_spill] sm:$0xff] %v2434_v24  ;;  %2798 = vst [vmem:[#allocation36_spill] sm:$0xff] %v2437_v12  ;;  %v291_v58 = vadd.f32 %v290_v4, %v2372_v1 }
 0x145   :  { %2799 = vst [vmem:[#allocation37_spill] sm:$0xff] %v2439_v54  ;;  %2800 = vst [vmem:[#allocation38_spill] sm:$0xff] %v2442_v31 }
 0x147   :  { %v592_v56 = vpop.f32.mrb[16].mxu0  ;;  %v633_v24 = vpop.f32.mrb[16].mxu1 }
 0x148   :  { %v640_v43 = vadd.f32 %v592_v56, %v216_v6  ;;  %v642_v7 = vadd.f32 %v633_v24, %v289_v0  ;;  %v594_v60 = vpop.f32.mrb[17].mxu0  ;;  %v635_v12 = vpop.f32.mrb[17].mxu1 }
 0x149   :  { %v641_v59 = vadd.f32 %v594_v60, %v218_v53  ;;  %v643_v9 = vadd.f32 %v635_v12, %v291_v58  ;;  %v596_v54 = vpop.f32.mrb[18].mxu0  ;;  %v637_v57 = vpop.f32.mrb[18].mxu1 }
 0x14a   :  { %v1644_v35 = vmul.f32 -1.442695, %v640_v43  ;;  %v597_v31 = vpop.f32.mrb[19].mxu0  ;;  %v638_v55 = vpop.f32.mrb[19].mxu1 }
 0x14b   :  { %v1645_v62 = vmul.f32 -1.442695, %v641_v59  ;;  %v1646_v61 = vmul.f32 -1.442695, %v643_v9 }
 0x14c   :  { %1818 = vpow2.f32 %v1644_v35 }
 0x14d   :  { %1820 = vpow2.f32 %v1645_v62 }
 0x14e   :  { %1822 = vpow2.f32 %v1646_v61 }
 0x14f   :  { %1824 = vtanh.f32 %v642_v7  ;;  %v2801_v7 = vmov 0  }
 0x156   :  { %v1819_v63 = vpop.eup %1818 }
 0x157   :  { %v1821_v2 = vpop.eup %1820  ;;  %v647_v1 = vadd.f32 1.0, %v1819_v63 }
 0x158   :  { %v653_v3 = vadd.f32 1.0, %v1821_v2  ;;  %v1823_v0 = vpop.eup %1822 }
 0x159   :  { %1826 = vrcp.f32 %v647_v1  ;;  %v1825_v4 = vpop.eup %1824  ;;  %v660_v54 = vadd.f32 1.0, %v1823_v0 }
 0x15a   :  { %1828 = vrcp.f32 %v653_v3 }
 0x15b   :  { %1830 = vrcp.f32 %v660_v54 }
 0x163   :  { %v1827_v5 = vpop.eup %1826 }
 0x164   :  { %v1829_v24 = vpop.eup %1828  ;;  %v664_v57 = vmul.f32 %v1827_v5, %v1825_v4 }
 0x165   :  { %v663_v12 = vmul.f32 0.0, %v1829_v24  ;;  %v1831_v59 = vpop.eup %1830 }
 0x167   :  { %v2448_v55 = vadd.f32 %v664_v57, %v663_v12 }
 0x169   :  { %1832 = vtanh.f32 %v2448_v55 }
 0x173   :  { %v1833_v43 = vpop.eup %1832 }
 0x174   :  { %v667_v58 = vmul.f32 %v1833_v43, %v1831_v59 }
 0x176   :  { %v673_v31 = vpack.c.bf16 %v667_v58, %v667_v58 }
 0x178   :  { %707 = vmatmul.mubr.bf16.vlgmr.msra.gmra.mrb[20].mxu0 %v673_v31  ;;  %748 = vmatmul.mubr.bf16.vlgmr.msra.gmra.mrb[20].mxu1 %v673_v31 }
 0x179   :  { %791 = vmatpush1.bf16.msra.mxu0 %v2217_v14  ;;  %832 = vmatpush1.bf16.msra.mxu1 %v2219_v15 }
 0x17a   :  { %792 = vmatprep.subr.bf16.mxu0 %v2223_v16  ;;  %833 = vmatprep.subr.bf16.mxu1 %v2225_v17 }
 0x17b   :  { %822 = vmatprep.mubr.bf16.mxu0 %v2801_v7  ;;  %863 = vmatprep.mubr.bf16.mxu1 %v2801_v7 }
 0x17d   :  { %793 = vmatpush1.bf16.msra.mxu0 %v2227_v18  ;;  %834 = vmatpush1.bf16.msra.mxu1 %v2231_v19 }
 0x17e   :  { %794 = vmatprep.subr.bf16.mxu0 %v2235_v22  ;;  %835 = vmatprep.subr.bf16.mxu1 %v2239_v23 }
 0x181   :  { %795 = vmatpush1.bf16.msra.mxu0 %v2245_v25  ;;  %836 = vmatpush1.bf16.msra.mxu1 %v2247_v26 }
 0x182   :  { %796 = vmatprep.subr.bf16.mxu0 %v2251_v27  ;;  %837 = vmatprep.subr.bf16.mxu1 %v2253_v28 }
 0x185   :  { %797 = vmatpush1.bf16.msra.mxu0 %v2255_v29  ;;  %838 = vmatpush1.bf16.msra.mxu1 %v2257_v30 }
 0x186   :  { %798 = vmatprep.subr.bf16.mxu0 %v2263_v33  ;;  %839 = vmatprep.subr.bf16.mxu1 %v2267_v34 }
 0x189   :  { %799 = vmatpush1.bf16.msra.mxu0 %v2271_v36  ;;  %840 = vmatpush1.bf16.msra.mxu1 %v2273_v37 }
 0x18a   :  { %800 = vmatprep.subr.bf16.mxu0 %v2277_v38  ;;  %841 = vmatprep.subr.bf16.mxu1 %v2281_v39 }
 0x18d   :  { %801 = vmatpush1.bf16.msra.mxu0 %v2283_v40  ;;  %842 = vmatpush1.bf16.msra.mxu1 %v2287_v41 }
 0x18e   :  { %802 = vmatprep.subr.bf16.mxu0 %v2293_v44  ;;  %843 = vmatprep.subr.bf16.mxu1 %v2295_v45 }
 0x191   :  { %803 = vmatpush1.bf16.msra.mxu0 %v2301_v47  ;;  %844 = vmatpush1.bf16.msra.mxu1 %v2303_v48 }
 0x192   :  { %804 = vmatprep.subr.bf16.mxu0 %v2307_v49  ;;  %845 = vmatprep.subr.bf16.mxu1 %v2309_v50 }
 0x195   :  { %805 = vmatpush1.bf16.msra.mxu0 %v2315_v51  ;;  %846 = vmatpush1.bf16.msra.mxu1 %v2317_v52 }
 0x196   :  { %906 = vmatprep.subr.bf16.mxu0 %v2213_v11  ;;  %947 = vmatprep.subr.bf16.mxu1 %v2215_v13 }
 0x24b   :  { %v708_v6 = vpop.f32.mrb[20].mxu0  ;;  %v749_v53 = vpop.f32.mrb[20].mxu1 }
 0x24c   :  { %v756_v56 = vadd.f32 %v708_v6, %v2374_v8  ;;  %v758_v60 = vadd.f32 %v749_v53, %v2377_v10  ;;  %v710_v9 = vpop.f32.mrb[21].mxu0  ;;  %v751_v35 = vpop.f32.mrb[21].mxu1 }
 0x24d   :  { %v757_v62 = vadd.f32 %v710_v9, %v2379_v20  ;;  %v759_v61 = vadd.f32 %v751_v35, %v2382_v21  ;;  %v712_v63 = vpop.f32.mrb[22].mxu0  ;;  %v753_v2 = vpop.f32.mrb[22].mxu1 }
 0x24e   :  { %v1647_v1 = vmul.f32 -1.442695, %v756_v56  ;;  %v713_v3 = vpop.f32.mrb[23].mxu0  ;;  %v754_v0 = vpop.f32.mrb[23].mxu1 }
 0x24f   :  { %v1648_v4 = vmul.f32 -1.442695, %v757_v62  ;;  %v1649_v5 = vmul.f32 -1.442695, %v759_v61 }
 0x250   :  { %1834 = vpow2.f32 %v1647_v1  ;;  %v2802_v1 = vld [vmem:[#allocation18_spill] sm:$0xff] }
 0x251   :  { %1836 = vpow2.f32 %v1648_v4 }
 0x252   :  { %1838 = vpow2.f32 %v1649_v5 }
 0x253   :  { %1840 = vtanh.f32 %v758_v60 }
 0x25a   :  { %v1835_v24 = vpop.eup %1834 }
 0x25b   :  { %v1837_v57 = vpop.eup %1836  ;;  %v763_v8 = vadd.f32 1.0, %v1835_v24 }
 0x25c   :  { %v769_v10 = vadd.f32 1.0, %v1837_v57  ;;  %v1839_v20 = vpop.eup %1838 }
 0x25d   :  { %1842 = vrcp.f32 %v763_v8  ;;  %v1841_v54 = vpop.eup %1840  ;;  %v776_v43 = vadd.f32 1.0, %v1839_v20 }
 0x25e   :  { %1844 = vrcp.f32 %v769_v10 }
 0x25f   :  { %1846 = vrcp.f32 %v776_v43 }
 0x267   :  { %v1843_v21 = vpop.eup %1842 }
 0x268   :  { %v1845_v12 = vpop.eup %1844  ;;  %v780_v59 = vmul.f32 %v1843_v21, %v1841_v54 }
 0x269   :  { %v779_v58 = vmul.f32 %v1845_v12, %v2448_v55  ;;  %v1847_v6 = vpop.eup %1846 }
 0x26b   :  { %v2490_v31 = vadd.f32 %v780_v59, %v779_v58 }
 0x26d   :  { %1848 = vtanh.f32 %v2490_v31 }
 0x277   :  { %v1849_v53 = vpop.eup %1848 }
 0x278   :  { %v783_v56 = vmul.f32 %v1849_v53, %v1847_v6 }
 0x27a   :  { %v789_v60 = vpack.c.bf16 %v783_v56, %v783_v56 }
 0x27c   :  { %823 = vmatmul.mubr.bf16.vlgmr.msra.gmra.mrb[24].mxu0 %v789_v60  ;;  %864 = vmatmul.mubr.bf16.vlgmr.msra.gmra.mrb[24].mxu1 %v789_v60 }
 0x27d   :  { %907 = vmatpush1.bf16.msra.mxu0 %v2217_v14  ;;  %948 = vmatpush1.bf16.msra.mxu1 %v2219_v15 }
 0x27e   :  { %908 = vmatprep.subr.bf16.mxu0 %v2223_v16  ;;  %949 = vmatprep.subr.bf16.mxu1 %v2225_v17 }
 0x27f   :  { %938 = vmatprep.mubr.bf16.mxu0 %v2801_v7  ;;  %979 = vmatprep.mubr.bf16.mxu1 %v2801_v7 }
 0x281   :  { %909 = vmatpush1.bf16.msra.mxu0 %v2227_v18  ;;  %950 = vmatpush1.bf16.msra.mxu1 %v2231_v19 }
 0x282   :  { %910 = vmatprep.subr.bf16.mxu0 %v2235_v22  ;;  %951 = vmatprep.subr.bf16.mxu1 %v2239_v23 }
 0x285   :  { %911 = vmatpush1.bf16.msra.mxu0 %v2245_v25  ;;  %952 = vmatpush1.bf16.msra.mxu1 %v2247_v26 }
 0x286   :  { %912 = vmatprep.subr.bf16.mxu0 %v2251_v27  ;;  %953 = vmatprep.subr.bf16.mxu1 %v2253_v28 }
 0x289   :  { %913 = vmatpush1.bf16.msra.mxu0 %v2255_v29  ;;  %954 = vmatpush1.bf16.msra.mxu1 %v2257_v30 }
 0x28a   :  { %914 = vmatprep.subr.bf16.mxu0 %v2263_v33  ;;  %955 = vmatprep.subr.bf16.mxu1 %v2267_v34 }
 0x28d   :  { %915 = vmatpush1.bf16.msra.mxu0 %v2271_v36  ;;  %956 = vmatpush1.bf16.msra.mxu1 %v2273_v37 }
 0x28e   :  { %916 = vmatprep.subr.bf16.mxu0 %v2277_v38  ;;  %957 = vmatprep.subr.bf16.mxu1 %v2281_v39 }
 0x291   :  { %917 = vmatpush1.bf16.msra.mxu0 %v2283_v40  ;;  %958 = vmatpush1.bf16.msra.mxu1 %v2287_v41 }
 0x292   :  { %918 = vmatprep.subr.bf16.mxu0 %v2293_v44  ;;  %959 = vmatprep.subr.bf16.mxu1 %v2295_v45 }
 0x295   :  { %919 = vmatpush1.bf16.msra.mxu0 %v2301_v47  ;;  %960 = vmatpush1.bf16.msra.mxu1 %v2303_v48 }
 0x296   :  { %920 = vmatprep.subr.bf16.mxu0 %v2307_v49  ;;  %961 = vmatprep.subr.bf16.mxu1 %v2309_v50 }
 0x299   :  { %921 = vmatpush1.bf16.msra.mxu0 %v2315_v51  ;;  %962 = vmatpush1.bf16.msra.mxu1 %v2317_v52 }
 0x29a   :  { %1022 = vmatprep.subr.bf16.mxu0 %v2213_v11  ;;  %1063 = vmatprep.subr.bf16.mxu1 %v2215_v13 }
 0x34f   :  { %v824_v55 = vpop.f32.mrb[24].mxu0  ;;  %v865_v9 = vpop.f32.mrb[24].mxu1 }
 0x350   :  { %v872_v35 = vadd.f32 %v824_v55, %v2384_v32  ;;  %v874_v62 = vadd.f32 %v865_v9, %v2387_v42  ;;  %v826_v61 = vpop.f32.mrb[25].mxu0  ;;  %v867_v63 = vpop.f32.mrb[25].mxu1 }
 0x351   :  { %v873_v2 = vadd.f32 %v826_v61, %v2389_v46  ;;  %v875_v3 = vadd.f32 %v867_v63, %v2802_v1  ;;  %v828_v0 = vpop.f32.mrb[26].mxu0  ;;  %v869_v4 = vpop.f32.mrb[26].mxu1  ;;  %v2804_v63 = vld [vmem:[#allocation20_spill] sm:$0xff] }
 0x352   :  { %v1650_v5 = vmul.f32 -1.442695, %v872_v35  ;;  %v829_v24 = vpop.f32.mrb[27].mxu0  ;;  %v870_v57 = vpop.f32.mrb[27].mxu1  ;;  %v2805_v0 = vld [vmem:[#allocation21_spill] sm:$0xff] }
 0x353   :  { %v1651_v8 = vmul.f32 -1.442695, %v873_v2  ;;  %v1652_v10 = vmul.f32 -1.442695, %v875_v3 }
 0x354   :  { %1850 = vpow2.f32 %v1650_v5  ;;  %v2806_v5 = vld [vmem:[#allocation22_spill] sm:$0xff] }
 0x355   :  { %1852 = vpow2.f32 %v1651_v8 }
 0x356   :  { %1854 = vpow2.f32 %v1652_v10 }
 0x357   :  { %1856 = vtanh.f32 %v874_v62  ;;  %v2803_v62 = vld [vmem:[#allocation19_spill] sm:$0xff] }
 0x35e   :  { %v1851_v20 = vpop.eup %1850 }
 0x35f   :  { %v1853_v54 = vpop.eup %1852  ;;  %v879_v32 = vadd.f32 1.0, %v1851_v20 }
 0x360   :  { %v885_v42 = vadd.f32 1.0, %v1853_v54  ;;  %v1855_v46 = vpop.eup %1854 }
 0x361   :  { %1858 = vrcp.f32 %v879_v32  ;;  %v1857_v21 = vpop.eup %1856  ;;  %v892_v58 = vadd.f32 1.0, %v1855_v46 }
 0x362   :  { %1860 = vrcp.f32 %v885_v42 }
 0x363   :  { %1862 = vrcp.f32 %v892_v58 }
 0x36b   :  { %v1859_v12 = vpop.eup %1858 }
 0x36c   :  { %v1861_v59 = vpop.eup %1860  ;;  %v896_v43 = vmul.f32 %v1859_v12, %v1857_v21 }
 0x36d   :  { %v895_v6 = vmul.f32 %v1861_v59, %v2490_v31  ;;  %v1863_v56 = vpop.eup %1862 }
 0x36f   :  { %v2532_v53 = vadd.f32 %v896_v43, %v895_v6 }
 0x371   :  { %1864 = vtanh.f32 %v2532_v53 }
 0x37b   :  { %v1865_v60 = vpop.eup %1864 }
 0x37c   :  { %v899_v55 = vmul.f32 %v1865_v60, %v1863_v56 }
 0x37e   :  { %v905_v9 = vpack.c.bf16 %v899_v55, %v899_v55 }
 0x380   :  { %939 = vmatmul.mubr.bf16.vlgmr.msra.gmra.mrb[28].mxu0 %v905_v9  ;;  %980 = vmatmul.mubr.bf16.vlgmr.msra.gmra.mrb[28].mxu1 %v905_v9 }
 0x381   :  { %1023 = vmatpush1.bf16.msra.mxu0 %v2217_v14  ;;  %1064 = vmatpush1.bf16.msra.mxu1 %v2219_v15 }
 0x382   :  { %1024 = vmatprep.subr.bf16.mxu0 %v2223_v16  ;;  %1065 = vmatprep.subr.bf16.mxu1 %v2225_v17 }
 0x383   :  { %1054 = vmatprep.mubr.bf16.mxu0 %v2801_v7  ;;  %1095 = vmatprep.mubr.bf16.mxu1 %v2801_v7 }
 0x385   :  { %1025 = vmatpush1.bf16.msra.mxu0 %v2227_v18  ;;  %1066 = vmatpush1.bf16.msra.mxu1 %v2231_v19 }
 0x386   :  { %1026 = vmatprep.subr.bf16.mxu0 %v2235_v22  ;;  %1067 = vmatprep.subr.bf16.mxu1 %v2239_v23 }
 0x389   :  { %1027 = vmatpush1.bf16.msra.mxu0 %v2245_v25  ;;  %1068 = vmatpush1.bf16.msra.mxu1 %v2247_v26 }
 0x38a   :  { %1028 = vmatprep.subr.bf16.mxu0 %v2251_v27  ;;  %1069 = vmatprep.subr.bf16.mxu1 %v2253_v28 }
 0x38d   :  { %1029 = vmatpush1.bf16.msra.mxu0 %v2255_v29  ;;  %1070 = vmatpush1.bf16.msra.mxu1 %v2257_v30 }
 0x38e   :  { %1030 = vmatprep.subr.bf16.mxu0 %v2263_v33  ;;  %1071 = vmatprep.subr.bf16.mxu1 %v2267_v34 }
 0x391   :  { %1031 = vmatpush1.bf16.msra.mxu0 %v2271_v36  ;;  %1072 = vmatpush1.bf16.msra.mxu1 %v2273_v37 }
 0x392   :  { %1032 = vmatprep.subr.bf16.mxu0 %v2277_v38  ;;  %1073 = vmatprep.subr.bf16.mxu1 %v2281_v39 }
 0x395   :  { %1033 = vmatpush1.bf16.msra.mxu0 %v2283_v40  ;;  %1074 = vmatpush1.bf16.msra.mxu1 %v2287_v41 }
 0x396   :  { %1034 = vmatprep.subr.bf16.mxu0 %v2293_v44  ;;  %1075 = vmatprep.subr.bf16.mxu1 %v2295_v45 }
 0x399   :  { %1035 = vmatpush1.bf16.msra.mxu0 %v2301_v47  ;;  %1076 = vmatpush1.bf16.msra.mxu1 %v2303_v48 }
 0x39a   :  { %1036 = vmatprep.subr.bf16.mxu0 %v2307_v49  ;;  %1077 = vmatprep.subr.bf16.mxu1 %v2309_v50 }
 0x39d   :  { %1037 = vmatpush1.bf16.msra.mxu0 %v2315_v51  ;;  %1078 = vmatpush1.bf16.msra.mxu1 %v2317_v52 }
 0x39e   :  { %1138 = vmatprep.subr.bf16.mxu0 %v2213_v11  ;;  %1179 = vmatprep.subr.bf16.mxu1 %v2215_v13 }
 0x453   :  { %v940_v31 = vpop.f32.mrb[28].mxu0  ;;  %v981_v35 = vpop.f32.mrb[28].mxu1 }
 0x454   :  { %v988_v61 = vadd.f32 %v940_v31, %v2803_v62  ;;  %v990_v2 = vadd.f32 %v981_v35, %v2804_v63  ;;  %v942_v1 = vpop.f32.mrb[29].mxu0  ;;  %v983_v3 = vpop.f32.mrb[29].mxu1 }
 0x455   :  { %v989_v4 = vadd.f32 %v942_v1, %v2805_v0  ;;  %v991_v24 = vadd.f32 %v983_v3, %v2806_v5  ;;  %v944_v57 = vpop.f32.mrb[30].mxu0  ;;  %v985_v8 = vpop.f32.mrb[30].mxu1 }
 0x456   :  { %v1653_v10 = vmul.f32 -1.442695, %v988_v61  ;;  %v945_v20 = vpop.f32.mrb[31].mxu0  ;;  %v986_v54 = vpop.f32.mrb[31].mxu1 }
 0x457   :  { %v1654_v11 = vmul.f32 -1.442695, %v989_v4  ;;  %v1655_v13 = vmul.f32 -1.442695, %v991_v24 }
 0x458   :  { %1866 = vpow2.f32 %v1653_v10 }
 0x459   :  { %1868 = vpow2.f32 %v1654_v11  ;;  %v2623_v11 = vld [vmem:[#allocation10] ss:$16 sps:$4 sm:$0xff]  }
 0x45a   :  { %1870 = vpow2.f32 %v1655_v13  ;;  %v2626_v13 = vld [vmem:[#allocation10 + $0x8] ss:$16 sps:$4 sm:$0xff]  }
 0x45b   :  { %1872 = vtanh.f32 %v990_v2 }
 0x462   :  { %v1867_v32 = vpop.eup %1866 }
 0x463   :  { %v1869_v42 = vpop.eup %1868  ;;  %v995_v46 = vadd.f32 1.0, %v1867_v32  ;;  %v2629_v32 = vld [vmem:[#allocation10 + $0x24] ss:$16 sps:$4 sm:$0xff]  }
 0x464   :  { %v1001_v21 = vadd.f32 1.0, %v1869_v42  ;;  %v1871_v12 = vpop.eup %1870  ;;  %v2632_v42 = vld [vmem:[#allocation10 + $0x2c] ss:$16 sps:$4 sm:$0xff]  }
 0x465   :  { %1874 = vrcp.f32 %v995_v46  ;;  %v1873_v59 = vpop.eup %1872  ;;  %v1008_v56 = vadd.f32 1.0, %v1871_v12  ;;  %v2637_v46 = vld [vmem:[#allocation10 + $0x20] ss:$16 sps:$4 sm:$0xff]   ;;  %v2643_v12 = vld [vmem:[#allocation10 + $0x44] ss:$16 sps:$4 sm:$0xff]  }
 0x466   :  { %1876 = vrcp.f32 %v1001_v21  ;;  %v2640_v21 = vld [vmem:[#allocation10 + $0x28] ss:$16 sps:$4 sm:$0xff]  }
 0x467   :  { %1878 = vrcp.f32 %v1008_v56  ;;  %v2658_v56 = vld [vmem:[#allocation10 + $0x6c] ss:$16 sps:$4 sm:$0xff]  }
 0x46f   :  { %v1875_v43 = vpop.eup %1874 }
 0x470   :  { %v1877_v58 = vpop.eup %1876  ;;  %v1012_v6 = vmul.f32 %v1875_v43, %v1873_v59  ;;  %v2646_v59 = vld [vmem:[#allocation10 + $0x4c] ss:$16 sps:$4 sm:$0xff]   ;;  %v2649_v43 = vld [vmem:[#allocation10 + $0x40] ss:$16 sps:$4 sm:$0xff]  }
 0x471   :  { %v1011_v60 = vmul.f32 %v1877_v58, %v2532_v53  ;;  %v1879_v9 = vpop.eup %1878  ;;  %v2652_v58 = vld [vmem:[#allocation10 + $0x48] ss:$16 sps:$4 sm:$0xff]  }
 0x473   :  { %v2574_v55 = vadd.f32 %v1012_v6, %v1011_v60  ;;  %v2655_v6 = vld [vmem:[#allocation10 + $0x64] ss:$16 sps:$4 sm:$0xff]   ;;  %v2661_v60 = vld [vmem:[#allocation10 + $0x60] ss:$16 sps:$4 sm:$0xff]  }
 0x475   :  { %1880 = vtanh.f32 %v2574_v55 }
 0x47f   :  { %v1881_v31 = vpop.eup %1880 }
 0x480   :  { %v1015_v35 = vmul.f32 %v1881_v31, %v1879_v9  ;;  %v2667_v9 = vld [vmem:[#allocation10 + $0x84] ss:$16 sps:$4 sm:$0xff]   ;;  %v2670_v31 = vld [vmem:[#allocation10 + $0x8c] ss:$16 sps:$4 sm:$0xff]  }
 0x482   :  { %v1021_v62 = vpack.c.bf16 %v1015_v35, %v1015_v35  ;;  %v2673_v35 = vld [vmem:[#allocation10 + $0x80] ss:$16 sps:$4 sm:$0xff]  }
 0x484   :  { %1055 = vmatmul.mubr.bf16.vlgmr.msra.gmra.mrb[32].mxu0 %v1021_v62  ;;  %1096 = vmatmul.mubr.bf16.vlgmr.msra.gmra.mrb[32].mxu1 %v1021_v62  ;;  %v2676_v62 = vld [vmem:[#allocation10 + $0x88] ss:$16 sps:$4 sm:$0xff]  }
 0x485   :  { %1139 = vmatpush1.bf16.msra.mxu0 %v2217_v14  ;;  %1180 = vmatpush1.bf16.msra.mxu1 %v2219_v15  ;;  %v2609_v14 = vld [vmem:[#allocation10 + $0x4] ss:$16 sps:$4 sm:$0xff]   ;;  %v2612_v15 = vld [vmem:[#allocation10 + $0xc] ss:$16 sps:$4 sm:$0xff]  }
 0x486   :  { %1140 = vmatprep.subr.bf16.mxu0 %v2223_v16  ;;  %1181 = vmatprep.subr.bf16.mxu1 %v2225_v17 }
 0x487   :  { %1170 = vmatprep.mubr.bf16.mxu0 %v2801_v7  ;;  %1211 = vmatprep.mubr.bf16.mxu1 %v2801_v7 }
 0x489   :  { %1141 = vmatpush1.bf16.msra.mxu0 %v2227_v18  ;;  %1182 = vmatpush1.bf16.msra.mxu1 %v2231_v19  ;;  %v2807_v18 = vld [vmem:[#allocation23_spill] sm:$0xff] }
 0x48a   :  { %1142 = vmatprep.subr.bf16.mxu0 %v2235_v22  ;;  %1183 = vmatprep.subr.bf16.mxu1 %v2239_v23  ;;  %v2808_v22 = vld [vmem:[#allocation24_spill] sm:$0xff] }
 0x48d   :  { %1143 = vmatpush1.bf16.msra.mxu0 %v2245_v25  ;;  %1184 = vmatpush1.bf16.msra.mxu1 %v2247_v26 }
 0x48e   :  { %1144 = vmatprep.subr.bf16.mxu0 %v2251_v27  ;;  %1185 = vmatprep.subr.bf16.mxu1 %v2253_v28  ;;  %v2809_v27 = vld [vmem:[#allocation25_spill] sm:$0xff] }
 0x491   :  { %1145 = vmatpush1.bf16.msra.mxu0 %v2255_v29  ;;  %1186 = vmatpush1.bf16.msra.mxu1 %v2257_v30  ;;  %v2810_v29 = vld [vmem:[#allocation26_spill] sm:$0xff] }
 0x492   :  { %1146 = vmatprep.subr.bf16.mxu0 %v2263_v33  ;;  %1187 = vmatprep.subr.bf16.mxu1 %v2267_v34 }
 0x495   :  { %1147 = vmatpush1.bf16.msra.mxu0 %v2271_v36  ;;  %1188 = vmatpush1.bf16.msra.mxu1 %v2273_v37 }
 0x496   :  { %1148 = vmatprep.subr.bf16.mxu0 %v2277_v38  ;;  %1189 = vmatprep.subr.bf16.mxu1 %v2281_v39 }
 0x499   :  { %1149 = vmatpush1.bf16.msra.mxu0 %v2283_v40  ;;  %1190 = vmatpush1.bf16.msra.mxu1 %v2287_v41 }
 0x49a   :  { %1150 = vmatprep.subr.bf16.mxu0 %v2293_v44  ;;  %1191 = vmatprep.subr.bf16.mxu1 %v2295_v45 }
 0x49d   :  { %1151 = vmatpush1.bf16.msra.mxu0 %v2301_v47  ;;  %1192 = vmatpush1.bf16.msra.mxu1 %v2303_v48 }
 0x49e   :  { %1152 = vmatprep.subr.bf16.mxu0 %v2307_v49  ;;  %1193 = vmatprep.subr.bf16.mxu1 %v2309_v50 }
 0x4a1   :  { %1153 = vmatpush1.bf16.msra.mxu0 %v2315_v51  ;;  %1194 = vmatpush1.bf16.msra.mxu1 %v2317_v52 }
 0x4a2   :  { %1254 = vmatprep.subr.bf16.mxu0 %v2609_v14  ;;  %1295 = vmatprep.subr.bf16.mxu1 %v2612_v15 }
 0x557   :  { %v1056_v16 = vpop.f32.mrb[32].mxu0  ;;  %v1097_v17 = vpop.f32.mrb[32].mxu1 }
 0x558   :  { %v1104_v19 = vadd.f32 %v1056_v16, %v2807_v18  ;;  %v1106_v23 = vadd.f32 %v1097_v17, %v2808_v22  ;;  %v1058_v25 = vpop.f32.mrb[33].mxu0  ;;  %v1099_v26 = vpop.f32.mrb[33].mxu1  ;;  %v2679_v16 = vld [vmem:[#allocation10 + $0xa4] ss:$16 sps:$4 sm:$0xff]   ;;  %v2682_v17 = vld [vmem:[#allocation10 + $0xac] ss:$16 sps:$4 sm:$0xff]  }
 0x559   :  { %v1105_v28 = vadd.f32 %v1058_v25, %v2809_v27  ;;  %v1107_v30 = vadd.f32 %v1099_v26, %v2810_v29  ;;  %v1060_v33 = vpop.f32.mrb[34].mxu0  ;;  %v1101_v34 = vpop.f32.mrb[34].mxu1  ;;  %v2685_v18 = vld [vmem:[#allocation10 + $0xa0] ss:$16 sps:$4 sm:$0xff]   ;;  %v2812_v25 = vld [vmem:[#allocation28_spill] sm:$0xff] }
 0x55a   :  { %v1656_v36 = vmul.f32 -1.442695, %v1104_v19  ;;  %v1061_v37 = vpop.f32.mrb[35].mxu0  ;;  %v1102_v38 = vpop.f32.mrb[35].mxu1  ;;  %v2688_v19 = vld [vmem:[#allocation10 + $0xa8] ss:$16 sps:$4 sm:$0xff]  }
 0x55b   :  { %v1657_v39 = vmul.f32 -1.442695, %v1105_v28  ;;  %v1658_v40 = vmul.f32 -1.442695, %v1107_v30  ;;  %v2813_v27 = vld [vmem:[#allocation29_spill] sm:$0xff]  ;;  %v2814_v28 = vld [vmem:[#allocation30_spill] sm:$0xff] }
 0x55c   :  { %1882 = vpow2.f32 %v1656_v36 }
 0x55d   :  { %1884 = vpow2.f32 %v1657_v39 }
 0x55e   :  { %1886 = vpow2.f32 %v1658_v40 }
 0x55f   :  { %1888 = vtanh.f32 %v1106_v23  ;;  %v2811_v23 = vld [vmem:[#allocation27_spill] sm:$0xff] }
 0x566   :  { %v1883_v41 = vpop.eup %1882 }
 0x567   :  { %v1885_v53 = vpop.eup %1884  ;;  %v1111_v61 = vadd.f32 1.0, %v1883_v41 }
 0x568   :  { %v1117_v63 = vadd.f32 1.0, %v1885_v53  ;;  %v1887_v2 = vpop.eup %1886 }
 0x569   :  { %1890 = vrcp.f32 %v1111_v61  ;;  %v1889_v1 = vpop.eup %1888  ;;  %v1124_v5 = vadd.f32 1.0, %v1887_v2 }
 0x56a   :  { %1892 = vrcp.f32 %v1117_v63 }
 0x56b   :  { %1894 = vrcp.f32 %v1124_v5 }
 0x573   :  { %v1891_v3 = vpop.eup %1890 }
 0x574   :  { %v1893_v0 = vpop.eup %1892  ;;  %v1128_v4 = vmul.f32 %v1891_v3, %v1889_v1 }
 0x575   :  { %v1127_v24 = vmul.f32 %v1893_v0, %v2574_v55  ;;  %v1895_v8 = vpop.eup %1894  ;;  %v2664_v55 = vld [vmem:[#allocation10 + $0x68] ss:$16 sps:$4 sm:$0xff]  }
 0x577   :  { %v2620_v57 = vadd.f32 %v1128_v4, %v1127_v24  ;;  %v1971_v24 = vld [vmem:[#allocation10 + $0xcc] ss:$16 sps:$4 sm:$0xff]  }
 0x579   :  { %1896 = vtanh.f32 %v2620_v57 }
 0x583   :  { %v1897_v10 = vpop.eup %1896 }
 0x584   :  { %v1131_v20 = vmul.f32 %v1897_v10, %v1895_v8  ;;  %v1973_v8 = vld [vmem:[#allocation10 + $0xc8] ss:$16 sps:$4 sm:$0xff]   ;;  %v1974_v10 = vld [vmem:[#allocation10 + $0xe4] ss:$16 sps:$4 sm:$0xff]  }
 0x586   :  { %v1137_v54 = vpack.c.bf16 %v1131_v20, %v1131_v20  ;;  %v1975_v20 = vld [vmem:[#allocation10 + $0xec] ss:$16 sps:$4 sm:$0xff]  }
 0x588   :  { %1171 = vmatmul.mubr.bf16.vlgmr.msra.gmra.mrb[36].mxu0 %v1137_v54  ;;  %1212 = vmatmul.mubr.bf16.vlgmr.msra.gmra.mrb[36].mxu1 %v1137_v54  ;;  %v1976_v54 = vld [vmem:[#allocation10 + $0xe0] ss:$16 sps:$4 sm:$0xff]  }
 0x589   :  { %1255 = vmatpush1.bf16.msra.mxu0 %v2623_v11  ;;  %1296 = vmatpush1.bf16.msra.mxu1 %v2626_v13 }
 0x58a   :  { %1256 = vmatprep.subr.bf16.mxu0 %v2629_v32  ;;  %1297 = vmatprep.subr.bf16.mxu1 %v2632_v42 }
 0x58b   :  { %1286 = vmatprep.mubr.bf16.mxu0 %v2801_v7  ;;  %1327 = vmatprep.mubr.bf16.mxu1 %v2801_v7 }
 0x58d   :  { %1257 = vmatpush1.bf16.msra.mxu0 %v2637_v46  ;;  %1298 = vmatpush1.bf16.msra.mxu1 %v2640_v21 }
 0x58e   :  { %1258 = vmatprep.subr.bf16.mxu0 %v2643_v12  ;;  %1299 = vmatprep.subr.bf16.mxu1 %v2646_v59 }
 0x591   :  { %1259 = vmatpush1.bf16.msra.mxu0 %v2649_v43  ;;  %1300 = vmatpush1.bf16.msra.mxu1 %v2652_v58 }
 0x592   :  { %1260 = vmatprep.subr.bf16.mxu0 %v2655_v6  ;;  %1301 = vmatprep.subr.bf16.mxu1 %v2658_v56 }
 0x595   :  { %1261 = vmatpush1.bf16.msra.mxu0 %v2661_v60  ;;  %1302 = vmatpush1.bf16.msra.mxu1 %v2664_v55 }
 0x596   :  { %1262 = vmatprep.subr.bf16.mxu0 %v2667_v9  ;;  %1303 = vmatprep.subr.bf16.mxu1 %v2670_v31 }
 0x599   :  { %1263 = vmatpush1.bf16.msra.mxu0 %v2673_v35  ;;  %1304 = vmatpush1.bf16.msra.mxu1 %v2676_v62 }
 0x59a   :  { %1264 = vmatprep.subr.bf16.mxu0 %v2679_v16  ;;  %1305 = vmatprep.subr.bf16.mxu1 %v2682_v17 }
 0x59d   :  { %1265 = vmatpush1.bf16.msra.mxu0 %v2685_v18  ;;  %1306 = vmatpush1.bf16.msra.mxu1 %v2688_v19 }
 0x59e   :  { %1266 = vmatprep.subr.bf16.mxu0 %v2293_v44  ;;  %1307 = vmatprep.subr.bf16.mxu1 %v2295_v45 }
 0x5a1   :  { %1267 = vmatpush1.bf16.msra.mxu0 %v2301_v47  ;;  %1308 = vmatpush1.bf16.msra.mxu1 %v2303_v48 }
 0x5a2   :  { %1268 = vmatprep.subr.bf16.mxu0 %v2307_v49  ;;  %1309 = vmatprep.subr.bf16.mxu1 %v2309_v50 }
 0x5a5   :  { %1269 = vmatpush1.bf16.msra.mxu0 %v2315_v51  ;;  %1310 = vmatpush1.bf16.msra.mxu1 %v2317_v52 }
 0x5a6   :  { %1370 = vmatprep.subr.bf16.mxu0 %v2609_v14  ;;  %1411 = vmatprep.subr.bf16.mxu1 %v2612_v15 }
 0x65b   :  { %v1172_v22 = vpop.f32.mrb[36].mxu0  ;;  %v1213_v44 = vpop.f32.mrb[36].mxu1 }
 0x65c   :  { %v1220_v45 = vadd.f32 %v1172_v22, %v2811_v23  ;;  %v1222_v47 = vadd.f32 %v1213_v44, %v2812_v25  ;;  %v1174_v26 = vpop.f32.mrb[37].mxu0  ;;  %v1215_v48 = vpop.f32.mrb[37].mxu1 }
 0x65d   :  { %v1221_v49 = vadd.f32 %v1174_v26, %v2813_v27  ;;  %v1223_v50 = vadd.f32 %v1215_v48, %v2814_v28  ;;  %v1176_v29 = vpop.f32.mrb[38].mxu0  ;;  %v1217_v51 = vpop.f32.mrb[38].mxu1 }
 0x65e   :  { %v1659_v30 = vmul.f32 -1.442695, %v1220_v45  ;;  %v1177_v52 = vpop.f32.mrb[39].mxu0  ;;  %v1218_v33 = vpop.f32.mrb[39].mxu1 }
 0x65f   :  { %v1660_v14 = vmul.f32 -1.442695, %v1221_v49  ;;  %v1661_v15 = vmul.f32 -1.442695, %v1223_v50  ;;  %v1485_v52 = vld [vmem:[#allocation11] sm:$0xff]  ;;  %v1486_v33 = vld [vmem:[#allocation11 + $0x8] sm:$0xff] }
 0x660   :  { %1898 = vpow2.f32 %v1659_v30 }
 0x661   :  { %1900 = vpow2.f32 %v1660_v14  ;;  %v1722_v14 = vpack.c.bf16 %v1486_v33, %v1485_v52 }
 0x662   :  { %1902 = vpow2.f32 %v1661_v15  ;;  %v1487_v15 = vld [vmem:[#allocation11 + $0x10] sm:$0xff] }
 0x663   :  { %1904 = vtanh.f32 %v1222_v47 }
 0x66a   :  { %v1899_v34 = vpop.eup %1898 }
 0x66b   :  { %v1901_v36 = vpop.eup %1900  ;;  %v1227_v37 = vadd.f32 1.0, %v1899_v34  ;;  %v1488_v34 = vld [vmem:[#allocation11 + $0x18] sm:$0xff] }
 0x66c   :  { %v1233_v38 = vadd.f32 1.0, %v1901_v36  ;;  %v1903_v39 = vpop.eup %1902  ;;  %v1725_v36 = vpack.c.bf16 %v1488_v34, %v1487_v15 }
 0x66d   :  { %1906 = vrcp.f32 %v1227_v37  ;;  %v1905_v40 = vpop.eup %1904  ;;  %v1240_v63 = vadd.f32 1.0, %v1903_v39  ;;  %v1489_v37 = vld [vmem:[#allocation11 + $0x20] sm:$0xff] }
 0x66e   :  { %1908 = vrcp.f32 %v1233_v38  ;;  %v1490_v38 = vld [vmem:[#allocation11 + $0x28] sm:$0xff] }
 0x66f   :  { %1910 = vrcp.f32 %v1240_v63  ;;  %v1728_v39 = vpack.c.bf16 %v1490_v38, %v1489_v37  ;;  %v1494_v63 = vld [vmem:[#allocation11 + $0x48] sm:$0xff] }
 0x677   :  { %v1907_v41 = vpop.eup %1906 }
 0x678   :  { %v1909_v53 = vpop.eup %1908  ;;  %v1244_v61 = vmul.f32 %v1907_v41, %v1905_v40  ;;  %v1491_v40 = vld [vmem:[#allocation11 + $0x30] sm:$0xff]  ;;  %v1492_v41 = vld [vmem:[#allocation11 + $0x38] sm:$0xff] }
 0x679   :  { %v1243_v2 = vmul.f32 %v1909_v53, %v2620_v57  ;;  %v1911_v3 = vpop.eup %1910  ;;  %v1972_v57 = vld [vmem:[#allocation10 + $0xc0] ss:$16 sps:$4 sm:$0xff]   ;;  %v1731_v53 = vpack.c.bf16 %v1492_v41, %v1491_v40 }
 0x67b   :  { %v2706_v1 = vadd.f32 %v1244_v61, %v1243_v2  ;;  %v1493_v61 = vld [vmem:[#allocation11 + $0x40] sm:$0xff] }
 0x67c   :  { %v1734_v2 = vpack.c.bf16 %v1494_v63, %v1493_v61 }
 0x67d   :  { %1912 = vtanh.f32 %v2706_v1 }
 0x687   :  { %v1913_v0 = vpop.eup %1912 }
 0x688   :  { %v1247_v4 = vmul.f32 %v1913_v0, %v1911_v3  ;;  %v1496_v3 = vld [vmem:[#allocation11 + $0x58] sm:$0xff]  ;;  %v1497_v0 = vld [vmem:[#allocation11 + $0x60] sm:$0xff] }
 0x68a   :  { %v1253_v5 = vpack.c.bf16 %v1247_v4, %v1247_v4 }
 0x68c   :  { %1287 = vmatmul.mubr.bf16.vlgmr.msra.gmra.mrb[40].mxu0 %v1253_v5  ;;  %1328 = vmatmul.mubr.bf16.vlgmr.msra.gmra.mrb[40].mxu1 %v1253_v5  ;;  %v1498_v5 = vld [vmem:[#allocation11 + $0x68] sm:$0xff] }
 0x68d   :  { %1371 = vmatpush1.bf16.msra.mxu0 %v2623_v11  ;;  %1412 = vmatpush1.bf16.msra.mxu1 %v2626_v13  ;;  %v1977_v11 = vld [vmem:[#allocation10 + $0xe8] ss:$16 sps:$4 sm:$0xff]   ;;  %v2815_v13 = vmov 0.0|0.0  }
 0x68e   :  { %1372 = vmatprep.subr.bf16.mxu0 %v2629_v32  ;;  %1413 = vmatprep.subr.bf16.mxu1 %v2632_v42 }
 0x68f   :  { %1402 = vmatprep.mubr.bf16.mxu0 %v2801_v7  ;;  %1443 = vmatprep.mubr.bf16.mxu1 %v2801_v7  ;;  %v1970_v7 = vld [vmem:[#allocation10 + $0xc4] ss:$16 sps:$4 sm:$0xff]  }
 0x691   :  { %1373 = vmatpush1.bf16.msra.mxu0 %v2637_v46  ;;  %1414 = vmatpush1.bf16.msra.mxu1 %v2640_v21  ;;  %v2816_v46 = vld [vmem:[#allocation31_spill] sm:$0xff] }
 0x692   :  { %1374 = vmatprep.subr.bf16.mxu0 %v2643_v12  ;;  %1415 = vmatprep.subr.bf16.mxu1 %v2646_v59  ;;  %v2817_v12 = vld [vmem:[#allocation32_spill] sm:$0xff] }
 0x695   :  { %1375 = vmatpush1.bf16.msra.mxu0 %v2649_v43  ;;  %1416 = vmatpush1.bf16.msra.mxu1 %v2652_v58 }
 0x696   :  { %1376 = vmatprep.subr.bf16.mxu0 %v2655_v6  ;;  %1417 = vmatprep.subr.bf16.mxu1 %v2658_v56  ;;  %v2818_v6 = vld [vmem:[#allocation33_spill] sm:$0xff] }
 0x699   :  { %1377 = vmatpush1.bf16.msra.mxu0 %v2661_v60  ;;  %1418 = vmatpush1.bf16.msra.mxu1 %v2664_v55  ;;  %v2819_v60 = vld [vmem:[#allocation34_spill] sm:$0xff] }
 0x69a   :  { %1378 = vmatprep.subr.bf16.mxu0 %v2667_v9  ;;  %1419 = vmatprep.subr.bf16.mxu1 %v2670_v31 }
 0x69d   :  { %1379 = vmatpush1.bf16.msra.mxu0 %v2673_v35  ;;  %1420 = vmatpush1.bf16.msra.mxu1 %v2676_v62 }
 0x69e   :  { %1380 = vmatprep.subr.bf16.mxu0 %v2679_v16  ;;  %1421 = vmatprep.subr.bf16.mxu1 %v2682_v17 }
 0x6a1   :  { %1381 = vmatpush1.bf16.msra.mxu0 %v2685_v18  ;;  %1422 = vmatpush1.bf16.msra.mxu1 %v2688_v19 }
 0x6a2   :  { %1382 = vmatprep.subr.bf16.mxu0 %v1970_v7  ;;  %1423 = vmatprep.subr.bf16.mxu1 %v1971_v24  ;;  %v2107_v7 = vmov 0.0   ;;  %v1740_v24 = vpack.c.bf16 %v1498_v5, %v1497_v0 }
 0x6a5   :  { %1383 = vmatpush1.bf16.msra.mxu0 %v1972_v57  ;;  %1424 = vmatpush1.bf16.msra.mxu1 %v1973_v8  ;;  %v1499_v57 = vld [vmem:[#allocation11 + $0x70] sm:$0xff]  ;;  %v1500_v8 = vld [vmem:[#allocation11 + $0x78] sm:$0xff] }
 0x6a6   :  { %1384 = vmatprep.subr.bf16.mxu0 %v1974_v10  ;;  %1425 = vmatprep.subr.bf16.mxu1 %v1975_v20  ;;  %v1743_v10 = vpack.c.bf16 %v1500_v8, %v1499_v57 }
 0x6a9   :  { %1385 = vmatpush1.bf16.msra.mxu0 %v1976_v54  ;;  %1426 = vmatpush1.bf16.msra.mxu1 %v1977_v11  ;;  %v2820_v11 = vld [vmem:[#allocation35_spill] sm:$0xff] }
 0x6aa   :  { %1721 = vmatprep.subr.bf16.mxu0 %v2815_v13 }
 0x75f   :  { %v1288_v32 = vpop.f32.mrb[40].mxu0  ;;  %v1329_v42 = vpop.f32.mrb[40].mxu1 }
 0x760   :  { %v1336_v21 = vadd.f32 %v1288_v32, %v2816_v46  ;;  %v1338_v59 = vadd.f32 %v1329_v42, %v2817_v12  ;;  %v1290_v43 = vpop.f32.mrb[41].mxu0  ;;  %v1331_v58 = vpop.f32.mrb[41].mxu1  ;;  %v2821_v42 = vld [vmem:[#allocation36_spill] sm:$0xff] }
 0x761   :  { %v1337_v56 = vadd.f32 %v1290_v43, %v2818_v6  ;;  %v1339_v55 = vadd.f32 %v1331_v58, %v2819_v60  ;;  %v1292_v9 = vpop.f32.mrb[42].mxu0  ;;  %v1333_v31 = vpop.f32.mrb[42].mxu1  ;;  %v2823_v58 = vld [vmem:[#allocation38_spill] sm:$0xff] }
 0x762   :  { %v1662_v35 = vmul.f32 -1.442695, %v1336_v21  ;;  %v1293_v62 = vpop.f32.mrb[43].mxu0  ;;  %v1334_v16 = vpop.f32.mrb[43].mxu1 }
 0x763   :  { %v1663_v17 = vmul.f32 -1.442695, %v1337_v56  ;;  %v1664_v18 = vmul.f32 -1.442695, %v1339_v55 }
 0x764   :  { %1914 = vpow2.f32 %v1662_v35 }
 0x765   :  { %1916 = vpow2.f32 %v1663_v17 }
 0x766   :  { %1918 = vpow2.f32 %v1664_v18 }
 0x767   :  { %1920 = vtanh.f32 %v1338_v59  ;;  %v2822_v59 = vld [vmem:[#allocation37_spill] sm:$0xff] }
 0x76e   :  { %v1915_v19 = vpop.eup %1914 }
 0x76f   :  { %v1917_v22 = vpop.eup %1916  ;;  %v1343_v44 = vadd.f32 1.0, %v1915_v19 }
 0x770   :  { %v1349_v23 = vadd.f32 1.0, %v1917_v22  ;;  %v1919_v45 = vpop.eup %1918 }
 0x771   :  { %1922 = vrcp.f32 %v1343_v44  ;;  %v1921_v25 = vpop.eup %1920  ;;  %v1356_v27 = vadd.f32 1.0, %v1919_v45 }
 0x772   :  { %1924 = vrcp.f32 %v1349_v23 }
 0x773   :  { %1926 = vrcp.f32 %v1356_v27 }
 0x77b   :  { %v1923_v47 = vpop.eup %1922 }
 0x77c   :  { %v1925_v26 = vpop.eup %1924  ;;  %v1360_v48 = vmul.f32 %v1923_v47, %v1921_v25 }
 0x77d   :  { %v1359_v49 = vmul.f32 %v1925_v26, %v2706_v1  ;;  %v1927_v50 = vpop.eup %1926  ;;  %v1495_v1 = vld [vmem:[#allocation11 + $0x50] sm:$0xff] }
 0x77e   :  { %v1737_v4 = vpack.c.bf16 %v1496_v3, %v1495_v1 }
 0x77f   :  { %v2739_v28 = vadd.f32 %v1360_v48, %v1359_v49 }
 0x781   :  { %1928 = vtanh.f32 %v2739_v28 }
 0x78b   :  { %v1929_v29 = vpop.eup %1928 }
 0x78c   :  { %v1363_v51 = vmul.f32 %v1929_v29, %v1927_v50  ;;  %v1668_v50 = vld [vmem:[%s2774_s5] ss:$0 sm:$0xff] }
 0x78e   :  { %v1369_v30 = vpack.c.bf16 %v1363_v51, %v1363_v51 }
 0x790   :  { %1403 = vmatmul.mubr.bf16.vlgmr.msra.gmra.mrb[44].mxu0 %v1369_v30  ;;  %1444 = vmatmul.mubr.bf16.vlgmr.msra.gmra.mrb[44].mxu1 %v1369_v30 }
 0x791   :  { %1723 = vmatpush3.bf16.msra.mxu0 %v1722_v14  ;;  %1718 = vmatprep.mubr.msk.f32.mxu0 %vm2106_vm1, %v2107_v7 }
 0x792   :  { %1724 = vmatprep.subr.bf16.mxu0 %v2815_v13 }
 0x795   :  { %1726 = vmatpush3.bf16.msra.mxu0 %v1725_v36 }
 0x796   :  { %1727 = vmatprep.subr.bf16.mxu0 %v2815_v13 }
 0x799   :  { %1729 = vmatpush3.bf16.msra.mxu0 %v1728_v39 }
 0x79a   :  { %1730 = vmatprep.subr.bf16.mxu0 %v2815_v13 }
 0x79d   :  { %1732 = vmatpush3.bf16.msra.mxu0 %v1731_v53 }
 0x79e   :  { %1733 = vmatprep.subr.bf16.mxu0 %v2815_v13 }
 0x7a1   :  { %1735 = vmatpush3.bf16.msra.mxu0 %v1734_v2 }
 0x7a2   :  { %1736 = vmatprep.subr.bf16.mxu0 %v2815_v13 }
 0x7a5   :  { %1738 = vmatpush3.bf16.msra.mxu0 %v1737_v4 }
 0x7a6   :  { %1739 = vmatprep.subr.bf16.mxu0 %v2815_v13 }
 0x7a9   :  { %1741 = vmatpush3.bf16.msra.mxu0 %v1740_v24 }
 0x7aa   :  { %1742 = vmatprep.subr.bf16.mxu0 %v2815_v13 }
 0x7ad   :  { %1744 = vmatpush3.bf16.msra.mxu0 %v1743_v10 }
 0x863   :  { %v1404_v20 = vpop.f32.mrb[44].mxu0  ;;  %v1445_v54 = vpop.f32.mrb[44].mxu1 }
 0x864   :  { %v1452_v32 = vadd.f32 %v1404_v20, %v2820_v11  ;;  %v1454_v46 = vadd.f32 %v1445_v54, %v2821_v42  ;;  %v1406_v21 = vpop.f32.mrb[45].mxu0  ;;  %v1447_v12 = vpop.f32.mrb[45].mxu1 }
 0x865   :  { %v1453_v43 = vadd.f32 %v1406_v21, %v2822_v59  ;;  %v1455_v6 = vadd.f32 %v1447_v12, %v2823_v58  ;;  %v1408_v56 = vpop.f32.mrb[46].mxu0  ;;  %v1449_v60 = vpop.f32.mrb[46].mxu1 }
 0x866   :  { %v1665_v55 = vmul.f32 -1.442695, %v1452_v32  ;;  %v1409_v9 = vpop.f32.mrb[47].mxu0  ;;  %v1450_v31 = vpop.f32.mrb[47].mxu1 }
 0x867   :  { %v1666_v35 = vmul.f32 -1.442695, %v1453_v43  ;;  %v1667_v13 = vmul.f32 -1.442695, %v1455_v6 }
 0x868   :  { %1930 = vpow2.f32 %v1665_v55 }
 0x869   :  { %1932 = vpow2.f32 %v1666_v35 }
 0x86a   :  { %1934 = vpow2.f32 %v1667_v13 }
 0x86b   :  { %1936 = vtanh.f32 %v1454_v46 }
 0x872   :  { %v1931_v62 = vpop.eup %1930 }
 0x873   :  { %v1933_v16 = vpop.eup %1932  ;;  %v1459_v17 = vadd.f32 1.0, %v1931_v62 }
 0x874   :  { %v1465_v18 = vadd.f32 1.0, %v1933_v16  ;;  %v1935_v19 = vpop.eup %1934 }
 0x875   :  { %1938 = vrcp.f32 %v1459_v17  ;;  %v1937_v22 = vpop.eup %1936  ;;  %v1472_v25 = vadd.f32 1.0, %v1935_v19 }
 0x876   :  { %1940 = vrcp.f32 %v1465_v18 }
 0x877   :  { %1942 = vrcp.f32 %v1472_v25 }
 0x87f   :  { %v1939_v44 = vpop.eup %1938 }
 0x880   :  { %v1941_v23 = vpop.eup %1940  ;;  %v1476_v45 = vmul.f32 %v1939_v44, %v1937_v22 }
 0x881   :  { %v1475_v47 = vmul.f32 %v1941_v23, %v2739_v28  ;;  %v1943_v48 = vpop.eup %1942 }
 0x883   :  { %v1477_v26 = vadd.f32 %v1476_v45, %v1475_v47 }
 0x885   :  { %1944 = vtanh.f32 %v1477_v26 }
 0x88f   :  { %v1945_v27 = vpop.eup %1944 }
 0x890   :  { %v1479_v49 = vmul.f32 %v1945_v27, %v1943_v48 }
 0x892   :  { %1719 = vmatmul.mubr.f32.vlgmr.msra.gmra.mrb[48].mxu0 %v1479_v49 }
 0x965   :  { %v1574_v29 = vpop.f32.mrb[48].mxu0 }
 0x966   :  { %v1575_v51 = vadd.f32 %v1668_v50, %v1574_v29  ;;  %v1720_v30 = vpop.f32.mrb[49].mxu0 }
 0x968   :  { %1578 = vst [vmem:[#allocation13] sm:$0xff] %v1575_v51 }
 0x969   :  { %2077 = shalt.err (!%p2074_p8)
}
 0x96a   :  { %s2078_s28 = scalar_lea.hbm %s2775_s6, 128 }
 0x96b   :  { %p2079_p9 = scmp.ne.s32.totalorder %s2775_s6, %s2078_s28  ;;  %p2082_p10 = scmp.lt.u32.totalorder %s2078_s28, %s2775_s6 }
 0x96d   :  { %p2084_p11 = pnand %p2082_p10, %p2079_p9 }
 0x96f   :  { %2087 = shalt.err (!%p2084_p11)
}
 0x970   :  { %1588 = dma.vmem_to_hbm [thread:$0]  %s1586_s24, 128, %s2775_s6, [#allocation7]  }
 0x971   :  { %2094 = dma.done.wait [#allocation7], 128  }
 0x972   :  { %2095 = vsyncadd [#allocation7], 4294967168 }
 0x973   :  { %1592 = vsyncpa [#allocation6], 1 }
 0x974   :  { %1593 = vsyncpa [#allocation9], 1 }
 0x975   :  { %1594 = vsyncpa [#allocation12], 1 }
 0x976   :  { %1595 = vsyncpa [#allocation7], 1 }

// kernel: tpu_custom_call.1
= control target key start
LH: loop header
LB: loop body
LE: loop exit
PB: predicated region body
PF: predicated region fallthrough
CT: control target
= control target key end

     0   :  { %11 = vsyncpa [#allocation6], 0  ;;  %s2769_s0 = inlined_call_operand.hbm [shape: f32[8,8,32], index: 0, kind: input, shape index: {}]   ;;  %s2770_s1 = inlined_call_operand.hbm [shape: bf16[32,512], index: 1, kind: input, shape index: {}]   ;;  %s2771_s2 = inlined_call_operand.hbm [shape: bf16[128,512], index: 2, kind: input, shape index: {}]   ;;  %s2772_s3 = inlined_call_operand.vmem [shape: f32[1,512], index: 3, kind: input, shape index: {}]   ;;  %s2773_s4 = inlined_call_operand.hbm [shape: f32[128,128], index: 4, kind: input, shape index: {}]   ;;  %s2774_s5 = inlined_call_operand.vmem [shape: f32[1,128], index: 5, kind: input, shape index: {}]   ;;  %s2775_s6 = inlined_call_operand.hbm [shape: f32[8,128], index: 6, kind: output, shape index: {}]  }
   0x1   :  { %12 = vsyncpa [#allocation9], 0 }
   0x2   :  { %13 = vsyncpa [#allocation12], 0 }
   0x3   :  { %14 = vsyncpa [#allocation7], 0  ;;  %s2096_s21 = smov [#allocation8]   ;;  %s1978_s25 = scalar_lea.hbm %s2770_s1, 1024 }
   0x4   :  { %s32_s22 = sshll.u32 %s2096_s21, 4  ;;  %p1979_p0 = scmp.ne.s32.totalorder %s2770_s1, %s1978_s25  ;;  %s33_s22 = int_to_ptr.vmem [resolvable:$true] %s32_s22 }
   0x5   :  { %p1982_p1 = scmp.lt.u32.totalorder %s1978_s25, %s2770_s1 }
   0x7   :  { %p1984_p2 = pnand %p1982_p1, %p1979_p0 }
   0x9   :  { %1987 = shalt.err (!%p1984_p2)
}
   0xa   :  { %s1988_s30 = scalar_lea.vmem %s33_s22, 1024  ;;  %p1993_p4 = scmp.lt.s32.totalorder %s33_s22, %s33_s22 }
   0xb   :  { %p1989_p3 = scmp.ne.s32.totalorder %s33_s22, %s1988_s30  ;;  %p1994_p5 = scmp.lt.s32.totalorder %s1988_s30, %s1988_s30 }
   0xd   :  { %p1995_p6 = por %p1994_p5, %p1993_p4 }
   0xf   :  { %p1996_p7 = pnand %p1995_p6, %p1989_p3 }
  0x11   :  { %1999 = shalt.err (!%p1996_p7)
}
  0x12   :  { %s2097_s7 = smov 256   ;;  %s2098_s8 = smov 16  }
  0x13   :  { %38 = dma.hbm_to_vmem [thread:$0]  %s2770_s1, 1024, %s33_s22, [#allocation9], %s2097_s7, %s2097_s7, %s2098_s8  }
  0x14   :  { %s2099_s11 = smov [#allocation5]   ;;  %s2000_s15 = scalar_lea.hbm %s2769_s0, 1024 }
  0x15   :  { %s20_s12 = sshll.u32 %s2099_s11, 4  ;;  %p2001_p8 = scmp.ne.s32.totalorder %s2769_s0, %s2000_s15  ;;  %s21_s12 = int_to_ptr.vmem [resolvable:$true] %s20_s12 }
  0x16   :  { %p2004_p9 = scmp.lt.u32.totalorder %s2000_s15, %s2769_s0 }
  0x18   :  { %p2006_p10 = pnand %p2004_p9, %p2001_p8 }
  0x1a   :  { %2009 = shalt.err (!%p2006_p10)
}
  0x1b   :  { %s2010_s20 = scalar_lea.vmem %s21_s12, 1024  ;;  %p2015_p12 = scmp.lt.s32.totalorder %s21_s12, %s21_s12 }
  0x1c   :  { %p2011_p11 = scmp.ne.s32.totalorder %s21_s12, %s2010_s20  ;;  %p2016_p13 = scmp.lt.s32.totalorder %s2010_s20, %s2010_s20 }
  0x1e   :  { %p2017_p0 = por %p2016_p13, %p2015_p12 }
  0x20   :  { %p2018_p1 = pnand %p2017_p0, %p2011_p11 }
  0x22   :  { %2021 = shalt.err (!%p2018_p1)
}
  0x23   :  { %s2100_s1 = smov 128   ;;  %s2101_s21 = smov 8  }
  0x24   :  { %26 = dma.hbm_to_vmem [thread:$0]  %s2769_s0, 1024, %s21_s12, [#allocation6], %s2100_s1, %s2100_s1, %s2101_s21  }
  0x25   :  { %s2102_s24 = smov [#allocation10]   ;;  %s2103_s26 = smov [#allocation11]  }
  0x26   :  { %s44_s25 = sshll.u32 %s2102_s24, 4  ;;  %s58_s27 = sshll.u32 %s2103_s26, 4  ;;  %s45_s25 = int_to_ptr.vmem [resolvable:$true] %s44_s25  ;;  %s2174_s27 = int_to_ptr.vmem [resolvable:$true] %s58_s27 }
  0x27   :  { %s2022_s30 = scalar_lea.hbm %s2771_s2, 4096 }
  0x28   :  { %p2023_p2 = scmp.ne.s32.totalorder %s2771_s2, %s2022_s30  ;;  %p2026_p3 = scmp.lt.u32.totalorder %s2022_s30, %s2771_s2 }
  0x2a   :  { %p2028_p4 = pnand %p2026_p3, %p2023_p2 }
  0x2c   :  { %2031 = shalt.err (!%p2028_p4)
}
  0x2d   :  { %s2032_s0 = scalar_lea.vmem %s45_s25, 4096  ;;  %p2037_p6 = scmp.lt.s32.totalorder %s45_s25, %s45_s25 }
  0x2e   :  { %p2033_p5 = scmp.ne.s32.totalorder %s45_s25, %s2032_s0  ;;  %p2038_p7 = scmp.lt.s32.totalorder %s2032_s0, %s2032_s0 }
  0x30   :  { %p2039_p8 = por %p2038_p7, %p2037_p6 }
  0x32   :  { %p2040_p9 = pnand %p2039_p8, %p2033_p5 }
  0x34   :  { %2043 = shalt.err (!%p2040_p9)
}
  0x35   :  { %50 = dma.hbm_to_vmem [thread:$0]  %s2771_s2, 4096, %s45_s25, [#allocation9], %s2097_s7, %s2097_s7, %s2098_s8  }
  0x36   :  { %s2044_s17 = scalar_lea.hbm %s2773_s4, 2048 }
  0x37   :  { %p2045_p10 = scmp.ne.s32.totalorder %s2773_s4, %s2044_s17  ;;  %p2048_p11 = scmp.lt.u32.totalorder %s2044_s17, %s2773_s4 }
  0x39   :  { %p2050_p12 = pnand %p2048_p11, %p2045_p10 }
  0x3b   :  { %2053 = shalt.err (!%p2050_p12)
}
  0x3c   :  { %s2054_s23 = scalar_lea.vmem %s2174_s27, 2048  ;;  %p2059_p0 = scmp.lt.s32.totalorder %s2174_s27, %s2174_s27 }
  0x3d   :  { %p2055_p13 = scmp.ne.s32.totalorder %s2174_s27, %s2054_s23  ;;  %p2060_p1 = scmp.lt.s32.totalorder %s2054_s23, %s2054_s23 }
  0x3f   :  { %p2061_p2 = por %p2060_p1, %p2059_p0 }
  0x41   :  { %p2062_p3 = pnand %p2061_p2, %p2055_p13 }
  0x43   :  { %2065 = shalt.err (!%p2062_p3)
}
  0x44   :  { %64 = dma.hbm_to_vmem [thread:$0]  %s2773_s4, 2048, %s2174_s27, [#allocation12], %s2100_s1, %s2100_s1, %s2101_s21  }
  0x45   :  { %2088 = dma.done.wait [#allocation6], 1024  }
  0x46   :  { %2089 = vsyncadd [#allocation6], 4294966272 }
  0x47   :  { %2090 = dma.done.wait [#allocation9], 5120  }
  0x48   :  { %2091 = vsyncadd [#allocation9], 4294962176 }
  0x49   :  { %2092 = dma.done.wait [#allocation12], 2048  }
  0x4a   :  { %2093 = vsyncadd [#allocation12], 4294965248  ;;  %v2778_v0 = vmov 0   ;;  %v1758_v1 = vld [vmem:[#allocation8 + $0x4] ss:$16 sps:$4 sm:$0xff]   ;;  %v87_v10 = vld [vmem:[#allocation5 + $0x8] sm:$0xff]  ;;  %v108_v54 = vlaneseq }
  0x4b   :  { %213 = vmatprep.mubr.bf16.mxu0 %v2778_v0  ;;  %286 = vmatprep.mubr.bf16.mxu1 %v2778_v0  ;;  %v1760_v2 = vld [vmem:[#allocation8 + $0xc] ss:$16 sps:$4 sm:$0xff]   ;;  %v1762_v3 = vld [vmem:[#allocation8] ss:$16 sps:$4 sm:$0xff]   ;;  %v1763_v4 = vld [vmem:[#allocation8 + $0x8] ss:$16 sps:$4 sm:$0xff]  }
  0x4c   :  { %181 = vmatprep.subr.bf16.mxu0 %v1758_v1  ;;  %254 = vmatprep.subr.bf16.mxu1 %v1760_v2  ;;  %v1764_v5 = vld [vmem:[#allocation8 + $0x24] ss:$16 sps:$4 sm:$0xff]   ;;  %v1766_v6 = vld [vmem:[#allocation8 + $0x2c] ss:$16 sps:$4 sm:$0xff]   ;;  %v1768_v7 = vld [vmem:[#allocation8 + $0x20] ss:$16 sps:$4 sm:$0xff]  }
  0x4d   :  { %182 = vmatpush1.bf16.msra.mxu0 %v1762_v3  ;;  %255 = vmatpush1.bf16.msra.mxu1 %v1763_v4  ;;  %v1769_v8 = vld [vmem:[#allocation8 + $0x28] ss:$16 sps:$4 sm:$0xff]   ;;  %v86_v9 = vld [vmem:[#allocation5] sm:$0xff]  ;;  %v2215_v13 = vld [vmem:[#allocation10 + $0xc] ss:$16 sps:$4 sm:$0xff]   ;;  %vm168_vm0 = vcmask 261120  }
  0x4e   :  { %183 = vmatprep.subr.bf16.mxu0 %v1764_v5  ;;  %256 = vmatprep.subr.bf16.mxu1 %v1766_v6  ;;  %v2213_v11 = vld [vmem:[#allocation10 + $0x4] ss:$16 sps:$4 sm:$0xff]   ;;  %v94_v12 = vpack.c.bf16 %v87_v10, %v86_v9  ;;  %v2217_v14 = vld [vmem:[#allocation10] ss:$16 sps:$4 sm:$0xff]   ;;  %v2219_v15 = vld [vmem:[#allocation10 + $0x8] ss:$16 sps:$4 sm:$0xff]  }
  0x4f   :  { %v2223_v16 = vld [vmem:[#allocation10 + $0x24] ss:$16 sps:$4 sm:$0xff]   ;;  %v2225_v17 = vld [vmem:[#allocation10 + $0x2c] ss:$16 sps:$4 sm:$0xff]   ;;  %v2227_v18 = vld [vmem:[#allocation10 + $0x20] ss:$16 sps:$4 sm:$0xff]  }
  0x50   :  { %v2231_v19 = vld [vmem:[#allocation10 + $0x28] ss:$16 sps:$4 sm:$0xff]   ;;  %v88_v20 = vld [vmem:[#allocation5 + $0x10] sm:$0xff]  ;;  %v2239_v23 = vld [vmem:[#allocation10 + $0x4c] ss:$16 sps:$4 sm:$0xff]   ;;  %v2776_v53 = vmov 0.0|0.0  }
  0x51   :  { %184 = vmatpush1.bf16.msra.mxu0 %v1768_v7  ;;  %257 = vmatpush1.bf16.msra.mxu1 %v1769_v8  ;;  %v89_v21 = vld [vmem:[#allocation5 + $0x18] sm:$0xff]  ;;  %v2235_v22 = vld [vmem:[#allocation10 + $0x44] ss:$16 sps:$4 sm:$0xff]   ;;  %v2245_v25 = vld [vmem:[#allocation10 + $0x40] ss:$16 sps:$4 sm:$0xff]   ;;  %v109_v55 = vshrl.u32 %v108_v54, 7 }
  0x52   :  { %558 = vmatprep.subr.bf16.mxu0 %v2213_v11  ;;  %599 = vmatprep.subr.bf16.mxu1 %v2215_v13  ;;  %v95_v24 = vpack.c.bf16 %v89_v21, %v88_v20  ;;  %v2247_v26 = vld [vmem:[#allocation10 + $0x48] ss:$16 sps:$4 sm:$0xff]   ;;  %v2251_v27 = vld [vmem:[#allocation10 + $0x64] ss:$16 sps:$4 sm:$0xff]   ;;  %v2253_v28 = vld [vmem:[#allocation10 + $0x6c] ss:$16 sps:$4 sm:$0xff]  }
  0x53   :  { %v2255_v29 = vld [vmem:[#allocation10 + $0x60] ss:$16 sps:$4 sm:$0xff]   ;;  %v2257_v30 = vld [vmem:[#allocation10 + $0x68] ss:$16 sps:$4 sm:$0xff]   ;;  %v2263_v33 = vld [vmem:[#allocation10 + $0x84] ss:$16 sps:$4 sm:$0xff]  }
  0x54   :  { %1604 = vmatmul.mubr.msk.bf16.vlgmr.msra.gmra.mrb[0].mxu0 %vm168_vm0, %v94_v12  ;;  %1608 = vmatmul.mubr.msk.bf16.vlgmr.msra.gmra.mrb[0].mxu1 %vm168_vm0, %v94_v12  ;;  %v90_v31 = vld [vmem:[#allocation5 + $0x20] sm:$0xff]  ;;  %v91_v32 = vld [vmem:[#allocation5 + $0x28] sm:$0xff]  ;;  %v92_v42 = vld [vmem:[#allocation5 + $0x30] sm:$0xff]  ;;  %v118_v56 = vsub.s32 2, %v109_v55  ;;  %v122_v57 = vsub.s32 3, %v109_v55  ;;  %v110_v58 = vsub.s32 0, %v109_v55 }
  0x55   :  { %559 = vmatpush1.bf16.msra.mxu0 %v2217_v14  ;;  %600 = vmatpush1.bf16.msra.mxu1 %v2219_v15  ;;  %v2267_v34 = vld [vmem:[#allocation10 + $0x8c] ss:$16 sps:$4 sm:$0xff]   ;;  %v96_v35 = vpack.c.bf16 %v91_v32, %v90_v31  ;;  %v2271_v36 = vld [vmem:[#allocation10 + $0x80] ss:$16 sps:$4 sm:$0xff]   ;;  %v2273_v37 = vld [vmem:[#allocation10 + $0x88] ss:$16 sps:$4 sm:$0xff]  }
  0x56   :  { %560 = vmatprep.subr.bf16.mxu0 %v2223_v16  ;;  %601 = vmatprep.subr.bf16.mxu1 %v2225_v17  ;;  %v2277_v38 = vld [vmem:[#allocation10 + $0xa4] ss:$16 sps:$4 sm:$0xff]   ;;  %v2281_v39 = vld [vmem:[#allocation10 + $0xac] ss:$16 sps:$4 sm:$0xff]   ;;  %v2283_v40 = vld [vmem:[#allocation10 + $0xa0] ss:$16 sps:$4 sm:$0xff]  }
  0x57   :  { %223 = vmatprep.mubr.bf16.mxu0 %v2778_v0  ;;  %296 = vmatprep.mubr.bf16.mxu1 %v2778_v0  ;;  %v2287_v41 = vld [vmem:[#allocation10 + $0xa8] ss:$16 sps:$4 sm:$0xff]   ;;  %v2293_v44 = vld [vmem:[#allocation10 + $0xc4] ss:$16 sps:$4 sm:$0xff]   ;;  %v2295_v45 = vld [vmem:[#allocation10 + $0xcc] ss:$16 sps:$4 sm:$0xff]  }
  0x58   :  { %v93_v43 = vld [vmem:[#allocation5 + $0x38] sm:$0xff]  ;;  %v2301_v47 = vld [vmem:[#allocation10 + $0xc0] ss:$16 sps:$4 sm:$0xff]   ;;  %v2307_v49 = vld [vmem:[#allocation10 + $0xe4] ss:$16 sps:$4 sm:$0xff]   ;;  %v114_v60 = vsub.s32 1, %v109_v55 }
  0x59   :  { %561 = vmatpush1.bf16.msra.mxu0 %v2227_v18  ;;  %602 = vmatpush1.bf16.msra.mxu1 %v2231_v19  ;;  %v97_v46 = vpack.c.bf16 %v93_v43, %v92_v42  ;;  %v2303_v48 = vld [vmem:[#allocation10 + $0xc8] ss:$16 sps:$4 sm:$0xff]   ;;  %v2309_v50 = vld [vmem:[#allocation10 + $0xec] ss:$16 sps:$4 sm:$0xff]   ;;  %v2315_v51 = vld [vmem:[#allocation10 + $0xe0] ss:$16 sps:$4 sm:$0xff]  }
  0x5a   :  { %562 = vmatprep.subr.bf16.mxu0 %v2235_v22  ;;  %603 = vmatprep.subr.bf16.mxu1 %v2239_v23  ;;  %v2317_v52 = vld [vmem:[#allocation10 + $0xe8] ss:$16 sps:$4 sm:$0xff]   ;;  %v106_v59 = vld [vmem:[%s2772_s3] sm:$0xf]  ;;  %vm2106_vm1 = vmmov 0   ;;  %s2108_s21 = smov [#allocation13]  }
  0x5b   :  { %v2366_v61 = vrot.slane %v106_v59, %v118_v56  ;;  %v2372_v1 = vrot.slane %v106_v59, %v122_v57  ;;  %v111_v2 = vrot.slane %v106_v59, %v110_v58  ;;  %v115_v5 = vrot.slane %v106_v59, %v114_v60  ;;  %s1585_s24 = sshll.u32 %s2108_s21, 4  ;;  %s1586_s24 = int_to_ptr.vmem [resolvable:$true] %s1585_s24 }
  0x5c   :  { %1605 = vmatmul.mubr.msk.bf16.gmra.mrb[4].mxu0 %vm168_vm0, %v95_v24  ;;  %1609 = vmatmul.mubr.msk.bf16.gmra.mrb[4].mxu1 %vm168_vm0, %v95_v24  ;;  %s2066_s25 = scalar_lea.vmem %s1586_s24, 128  ;;  %p2071_p5 = scmp.lt.s32.totalorder %s1586_s24, %s1586_s24 }
  0x5d   :  { %563 = vmatpush1.bf16.msra.mxu0 %v2245_v25  ;;  %604 = vmatpush1.bf16.msra.mxu1 %v2247_v26  ;;  %p2067_p4 = scmp.ne.s32.totalorder %s1586_s24, %s2066_s25  ;;  %p2072_p6 = scmp.lt.s32.totalorder %s2066_s25, %s2066_s25 }
  0x5e   :  { %564 = vmatprep.subr.bf16.mxu0 %v2251_v27  ;;  %605 = vmatprep.subr.bf16.mxu1 %v2253_v28 }
  0x5f   :  { %233 = vmatprep.mubr.bf16.mxu0 %v2778_v0  ;;  %306 = vmatprep.mubr.bf16.mxu1 %v2778_v0  ;;  %p2073_p7 = por %p2072_p6, %p2071_p5 }
  0x61   :  { %565 = vmatpush1.bf16.msra.mxu0 %v2255_v29  ;;  %606 = vmatpush1.bf16.msra.mxu1 %v2257_v30  ;;  %p2074_p8 = pnand %p2073_p7, %p2067_p4 }
  0x62   :  { %566 = vmatprep.subr.bf16.mxu0 %v2263_v33  ;;  %607 = vmatprep.subr.bf16.mxu1 %v2267_v34 }
  0x64   :  { %1606 = vmatmul.mubr.msk.bf16.gmra.mrb[8].mxu0 %vm168_vm0, %v96_v35  ;;  %1610 = vmatmul.mubr.msk.bf16.gmra.mrb[8].mxu1 %vm168_vm0, %v96_v35 }
  0x65   :  { %567 = vmatpush1.bf16.msra.mxu0 %v2271_v36  ;;  %608 = vmatpush1.bf16.msra.mxu1 %v2273_v37 }
  0x66   :  { %568 = vmatprep.subr.bf16.mxu0 %v2277_v38  ;;  %609 = vmatprep.subr.bf16.mxu1 %v2281_v39 }
  0x67   :  { %243 = vmatprep.mubr.bf16.mxu0 %v2778_v0  ;;  %316 = vmatprep.mubr.bf16.mxu1 %v2778_v0 }
  0x69   :  { %569 = vmatpush1.bf16.msra.mxu0 %v2283_v40  ;;  %610 = vmatpush1.bf16.msra.mxu1 %v2287_v41 }
  0x6a   :  { %570 = vmatprep.subr.bf16.mxu0 %v2293_v44  ;;  %611 = vmatprep.subr.bf16.mxu1 %v2295_v45 }
  0x6c   :  { %1607 = vmatmul.mubr.msk.bf16.gmra.mrb[12].mxu0 %vm168_vm0, %v97_v46  ;;  %1611 = vmatmul.mubr.msk.bf16.gmra.mrb[12].mxu1 %vm168_vm0, %v97_v46 }
  0x6d   :  { %571 = vmatpush1.bf16.msra.mxu0 %v2301_v47  ;;  %612 = vmatpush1.bf16.msra.mxu1 %v2303_v48 }
  0x6e   :  { %572 = vmatprep.subr.bf16.mxu0 %v2307_v49  ;;  %613 = vmatprep.subr.bf16.mxu1 %v2309_v50 }
  0x6f   :  { %590 = vmatprep.mubr.bf16.mxu0 %v2778_v0  ;;  %631 = vmatprep.mubr.bf16.mxu1 %v2778_v0 }
  0x71   :  { %573 = vmatpush1.bf16.msra.mxu0 %v2315_v51  ;;  %614 = vmatpush1.bf16.msra.mxu1 %v2317_v52 }
  0x72   :  { %674 = vmatprep.subr.bf16.mxu0 %v2213_v11  ;;  %715 = vmatprep.subr.bf16.mxu1 %v2215_v13 }
  0x74   :  { %591 = vmatmul.mubr.bf16.vlgmr.msra.gmra.mrb[16].mxu0 %v2776_v53  ;;  %632 = vmatmul.mubr.bf16.vlgmr.msra.gmra.mrb[16].mxu1 %v2776_v53 }
  0x75   :  { %675 = vmatpush1.bf16.msra.mxu0 %v2217_v14  ;;  %716 = vmatpush1.bf16.msra.mxu1 %v2219_v15 }
  0x76   :  { %676 = vmatprep.subr.bf16.mxu0 %v2223_v16  ;;  %717 = vmatprep.subr.bf16.mxu1 %v2225_v17 }
  0x77   :  { %706 = vmatprep.mubr.bf16.mxu0 %v2778_v0  ;;  %747 = vmatprep.mubr.bf16.mxu1 %v2778_v0 }
  0x79   :  { %677 = vmatpush1.bf16.msra.mxu0 %v2227_v18  ;;  %718 = vmatpush1.bf16.msra.mxu1 %v2231_v19 }
  0x7a   :  { %678 = vmatprep.subr.bf16.mxu0 %v2235_v22  ;;  %719 = vmatprep.subr.bf16.mxu1 %v2239_v23 }
  0x7d   :  { %679 = vmatpush1.bf16.msra.mxu0 %v2245_v25  ;;  %720 = vmatpush1.bf16.msra.mxu1 %v2247_v26 }
  0x7e   :  { %680 = vmatprep.subr.bf16.mxu0 %v2251_v27  ;;  %721 = vmatprep.subr.bf16.mxu1 %v2253_v28 }
  0x81   :  { %681 = vmatpush1.bf16.msra.mxu0 %v2255_v29  ;;  %722 = vmatpush1.bf16.msra.mxu1 %v2257_v30 }
  0x82   :  { %682 = vmatprep.subr.bf16.mxu0 %v2263_v33  ;;  %723 = vmatprep.subr.bf16.mxu1 %v2267_v34 }
  0x85   :  { %683 = vmatpush1.bf16.msra.mxu0 %v2271_v36  ;;  %724 = vmatpush1.bf16.msra.mxu1 %v2273_v37 }
  0x86   :  { %684 = vmatprep.subr.bf16.mxu0 %v2277_v38  ;;  %725 = vmatprep.subr.bf16.mxu1 %v2281_v39 }
  0x89   :  { %685 = vmatpush1.bf16.msra.mxu0 %v2283_v40  ;;  %726 = vmatpush1.bf16.msra.mxu1 %v2287_v41 }
  0x8a   :  { %686 = vmatprep.subr.bf16.mxu0 %v2293_v44  ;;  %727 = vmatprep.subr.bf16.mxu1 %v2295_v45 }
  0x8d   :  { %687 = vmatpush1.bf16.msra.mxu0 %v2301_v47  ;;  %728 = vmatpush1.bf16.msra.mxu1 %v2303_v48 }
  0x8e   :  { %688 = vmatprep.subr.bf16.mxu0 %v2307_v49  ;;  %729 = vmatprep.subr.bf16.mxu1 %v2309_v50 }
  0x91   :  { %689 = vmatpush1.bf16.msra.mxu0 %v2315_v51  ;;  %730 = vmatpush1.bf16.msra.mxu1 %v2317_v52 }
  0x92   :  { %790 = vmatprep.subr.bf16.mxu0 %v2213_v11  ;;  %831 = vmatprep.subr.bf16.mxu1 %v2215_v13 }
 0x127   :  { %v2368_v62 = vpop.f32.mrb[0].mxu0  ;;  %v2370_v63 = vpop.f32.mrb[0].mxu1 }
 0x128   :  { %v217_v3 = vpop.f32.mrb[1].mxu0  ;;  %v290_v4 = vpop.f32.mrb[1].mxu1 }
 0x129   :  { %v219_v6 = vpop.f32.mrb[2].mxu0  ;;  %v292_v7 = vpop.f32.mrb[2].mxu1 }
 0x12a   :  { %v2374_v8 = vadd.f32 %v219_v6, %v111_v2  ;;  %v221_v9 = vpop.f32.mrb[3].mxu0  ;;  %v2377_v10 = vadd.f32 %v292_v7, %v2366_v61  ;;  %v294_v12 = vpop.f32.mrb[3].mxu1 }
 0x12b   :  { %v2379_v20 = vadd.f32 %v221_v9, %v115_v5  ;;  %v2382_v21 = vadd.f32 %v294_v12, %v2372_v1 }
 0x12f   :  { %v225_v24 = vpop.f32.mrb[4].mxu0  ;;  %v298_v31 = vpop.f32.mrb[4].mxu1 }
 0x130   :  { %v2384_v32 = vadd.f32 %v225_v24, %v111_v2  ;;  %v227_v35 = vpop.f32.mrb[5].mxu0  ;;  %v2387_v42 = vadd.f32 %v298_v31, %v2366_v61  ;;  %v300_v43 = vpop.f32.mrb[5].mxu1 }
 0x131   :  { %v2389_v46 = vadd.f32 %v227_v35, %v115_v5  ;;  %v229_v54 = vpop.f32.mrb[6].mxu0  ;;  %v2392_v55 = vadd.f32 %v300_v43, %v2372_v1  ;;  %v302_v56 = vpop.f32.mrb[6].mxu1 }
 0x132   :  { %v2394_v57 = vadd.f32 %v229_v54, %v111_v2  ;;  %v231_v58 = vpop.f32.mrb[7].mxu0  ;;  %v2397_v59 = vadd.f32 %v302_v56, %v2366_v61  ;;  %v304_v60 = vpop.f32.mrb[7].mxu1 }
 0x133   :  { %2780 = vst [vmem:[#allocation18_spill] sm:$0xff] %v2392_v55  ;;  %v2399_v6 = vadd.f32 %v231_v58, %v115_v5  ;;  %v2402_v7 = vadd.f32 %v304_v60, %v2372_v1 }
 0x134   :  { %2781 = vst [vmem:[#allocation19_spill] sm:$0xff] %v2394_v57  ;;  %2782 = vst [vmem:[#allocation20_spill] sm:$0xff] %v2397_v59 }
 0x135   :  { %2783 = vst [vmem:[#allocation21_spill] sm:$0xff] %v2399_v6  ;;  %2784 = vst [vmem:[#allocation22_spill] sm:$0xff] %v2402_v7 }
 0x137   :  { %v235_v9 = vpop.f32.mrb[8].mxu0  ;;  %v308_v12 = vpop.f32.mrb[8].mxu1 }
 0x138   :  { %v2404_v24 = vadd.f32 %v235_v9, %v111_v2  ;;  %v237_v31 = vpop.f32.mrb[9].mxu0  ;;  %v2407_v35 = vadd.f32 %v308_v12, %v2366_v61  ;;  %v310_v43 = vpop.f32.mrb[9].mxu1 }
 0x139   :  { %v2409_v54 = vadd.f32 %v237_v31, %v115_v5  ;;  %v239_v53 = vpop.f32.mrb[10].mxu0  ;;  %v2412_v56 = vadd.f32 %v310_v43, %v2372_v1  ;;  %v312_v58 = vpop.f32.mrb[10].mxu1 }
 0x13a   :  { %2785 = vst [vmem:[#allocation23_spill] sm:$0xff] %v2404_v24  ;;  %2786 = vst [vmem:[#allocation24_spill] sm:$0xff] %v2407_v35  ;;  %v2414_v0 = vadd.f32 %v239_v53, %v111_v2  ;;  %v241_v60 = vpop.f32.mrb[11].mxu0  ;;  %v2417_v7 = vadd.f32 %v312_v58, %v2366_v61  ;;  %v314_v9 = vpop.f32.mrb[11].mxu1 }
 0x13b   :  { %2787 = vst [vmem:[#allocation25_spill] sm:$0xff] %v2409_v54  ;;  %2788 = vst [vmem:[#allocation26_spill] sm:$0xff] %v2412_v56  ;;  %v2419_v24 = vadd.f32 %v241_v60, %v115_v5  ;;  %v2422_v12 = vadd.f32 %v314_v9, %v2372_v1 }
 0x13c   :  { %2789 = vst [vmem:[#allocation27_spill] sm:$0xff] %v2414_v0  ;;  %2790 = vst [vmem:[#allocation28_spill] sm:$0xff] %v2417_v7 }
 0x13d   :  { %2791 = vst [vmem:[#allocation29_spill] sm:$0xff] %v2419_v24  ;;  %2792 = vst [vmem:[#allocation30_spill] sm:$0xff] %v2422_v12 }
 0x13f   :  { %v245_v35 = vpop.f32.mrb[12].mxu0  ;;  %v318_v31 = vpop.f32.mrb[12].mxu1 }
 0x140   :  { %v2424_v54 = vadd.f32 %v245_v35, %v111_v2  ;;  %v247_v6 = vpop.f32.mrb[13].mxu0  ;;  %v2427_v43 = vadd.f32 %v318_v31, %v2366_v61  ;;  %v320_v53 = vpop.f32.mrb[13].mxu1 }
 0x141   :  { %v2429_v0 = vadd.f32 %v247_v6, %v115_v5  ;;  %v249_v56 = vpop.f32.mrb[14].mxu0  ;;  %v2432_v58 = vadd.f32 %v320_v53, %v2372_v1  ;;  %v322_v60 = vpop.f32.mrb[14].mxu1  ;;  %v216_v6 = vadd.f32 %v2368_v62, %v111_v2  ;;  %v218_v53 = vadd.f32 %v217_v3, %v115_v5 }
 0x142   :  { %2793 = vst [vmem:[#allocation31_spill] sm:$0xff] %v2424_v54  ;;  %2794 = vst [vmem:[#allocation32_spill] sm:$0xff] %v2427_v43  ;;  %v2434_v24 = vadd.f32 %v249_v56, %v111_v2  ;;  %v251_v9 = vpop.f32.mrb[15].mxu0  ;;  %v2437_v12 = vadd.f32 %v322_v60, %v2366_v61  ;;  %v324_v35 = vpop.f32.mrb[15].mxu1 }
 0x143   :  { %2795 = vst [vmem:[#allocation33_spill] sm:$0xff] %v2429_v0  ;;  %2796 = vst [vmem:[#allocation34_spill] sm:$0xff] %v2432_v58  ;;  %v2439_v54 = vadd.f32 %v251_v9, %v115_v5  ;;  %v2442_v31 = vadd.f32 %v324_v35, %v2372_v1  ;;  %v289_v0 = vadd.f32 %v2370_v63, %v2366_v61 }
 0x144   :  { %2797 = vst [vmem:[#allocation35_spill] sm:$0xff] %v2434_v24  ;;  %2798 = vst [vmem:[#allocation36_spill] sm:$0xff] %v2437_v12  ;;  %v291_v58 = vadd.f32 %v290_v4, %v2372_v1 }
 0x145   :  { %2799 = vst [vmem:[#allocation37_spill] sm:$0xff] %v2439_v54  ;;  %2800 = vst [vmem:[#allocation38_spill] sm:$0xff] %v2442_v31 }
 0x147   :  { %v592_v56 = vpop.f32.mrb[16].mxu0  ;;  %v633_v24 = vpop.f32.mrb[16].mxu1 }
 0x148   :  { %v640_v43 = vadd.f32 %v592_v56, %v216_v6  ;;  %v642_v7 = vadd.f32 %v633_v24, %v289_v0  ;;  %v594_v60 = vpop.f32.mrb[17].mxu0  ;;  %v635_v12 = vpop.f32.mrb[17].mxu1 }
 0x149   :  { %v641_v59 = vadd.f32 %v594_v60, %v218_v53  ;;  %v643_v9 = vadd.f32 %v635_v12, %v291_v58  ;;  %v596_v54 = vpop.f32.mrb[18].mxu0  ;;  %v637_v57 = vpop.f32.mrb[18].mxu1 }
 0x14a   :  { %v1644_v35 = vmul.f32 -1.442695, %v640_v43  ;;  %v597_v31 = vpop.f32.mrb[19].mxu0  ;;  %v638_v55 = vpop.f32.mrb[19].mxu1 }
 0x14b   :  { %v1645_v62 = vmul.f32 -1.442695, %v641_v59  ;;  %v1646_v61 = vmul.f32 -1.442695, %v643_v9 }
 0x14c   :  { %1818 = vpow2.f32 %v1644_v35 }
 0x14d   :  { %1820 = vpow2.f32 %v1645_v62 }
 0x14e   :  { %1822 = vpow2.f32 %v1646_v61 }
 0x14f   :  { %1824 = vtanh.f32 %v642_v7  ;;  %v2801_v7 = vmov 0  }
 0x156   :  { %v1819_v63 = vpop.eup %1818 }
 0x157   :  { %v1821_v2 = vpop.eup %1820  ;;  %v647_v1 = vadd.f32 1.0, %v1819_v63 }
 0x158   :  { %v653_v3 = vadd.f32 1.0, %v1821_v2  ;;  %v1823_v0 = vpop.eup %1822 }
 0x159   :  { %1826 = vrcp.f32 %v647_v1  ;;  %v1825_v4 = vpop.eup %1824  ;;  %v660_v54 = vadd.f32 1.0, %v1823_v0 }
 0x15a   :  { %1828 = vrcp.f32 %v653_v3 }
 0x15b   :  { %1830 = vrcp.f32 %v660_v54 }
 0x163   :  { %v1827_v5 = vpop.eup %1826 }
 0x164   :  { %v1829_v24 = vpop.eup %1828  ;;  %v664_v57 = vmul.f32 %v1827_v5, %v1825_v4 }
 0x165   :  { %v663_v12 = vmul.f32 0.0, %v1829_v24  ;;  %v1831_v59 = vpop.eup %1830 }
 0x167   :  { %v2448_v55 = vadd.f32 %v664_v57, %v663_v12 }
 0x169   :  { %1832 = vtanh.f32 %v2448_v55 }
 0x173   :  { %v1833_v43 = vpop.eup %1832 }
 0x174   :  { %v667_v58 = vmul.f32 %v1833_v43, %v1831_v59 }
 0x176   :  { %v673_v31 = vpack.c.bf16 %v667_v58, %v667_v58 }
 0x178   :  { %707 = vmatmul.mubr.bf16.vlgmr.msra.gmra.mrb[20].mxu0 %v673_v31  ;;  %748 = vmatmul.mubr.bf16.vlgmr.msra.gmra.mrb[20].mxu1 %v673_v31 }
 0x179   :  { %791 = vmatpush1.bf16.msra.mxu0 %v2217_v14  ;;  %832 = vmatpush1.bf16.msra.mxu1 %v2219_v15 }
 0x17a   :  { %792 = vmatprep.subr.bf16.mxu0 %v2223_v16  ;;  %833 = vmatprep.subr.bf16.mxu1 %v2225_v17 }
 0x17b   :  { %822 = vmatprep.mubr.bf16.mxu0 %v2801_v7  ;;  %863 = vmatprep.mubr.bf16.mxu1 %v2801_v7 }
 0x17d   :  { %793 = vmatpush1.bf16.msra.mxu0 %v2227_v18  ;;  %834 = vmatpush1.bf16.msra.mxu1 %v2231_v19 }
 0x17e   :  { %794 = vmatprep.subr.bf16.mxu0 %v2235_v22  ;;  %835 = vmatprep.subr.bf16.mxu1 %v2239_v23 }
 0x181   :  { %795 = vmatpush1.bf16.msra.mxu0 %v2245_v25  ;;  %836 = vmatpush1.bf16.msra.mxu1 %v2247_v26 }
 0x182   :  { %796 = vmatprep.subr.bf16.mxu0 %v2251_v27  ;;  %837 = vmatprep.subr.bf16.mxu1 %v2253_v28 }
 0x185   :  { %797 = vmatpush1.bf16.msra.mxu0 %v2255_v29  ;;  %838 = vmatpush1.bf16.msra.mxu1 %v2257_v30 }
 0x186   :  { %798 = vmatprep.subr.bf16.mxu0 %v2263_v33  ;;  %839 = vmatprep.subr.bf16.mxu1 %v2267_v34 }
 0x189   :  { %799 = vmatpush1.bf16.msra.mxu0 %v2271_v36  ;;  %840 = vmatpush1.bf16.msra.mxu1 %v2273_v37 }
 0x18a   :  { %800 = vmatprep.subr.bf16.mxu0 %v2277_v38  ;;  %841 = vmatprep.subr.bf16.mxu1 %v2281_v39 }
 0x18d   :  { %801 = vmatpush1.bf16.msra.mxu0 %v2283_v40  ;;  %842 = vmatpush1.bf16.msra.mxu1 %v2287_v41 }
 0x18e   :  { %802 = vmatprep.subr.bf16.mxu0 %v2293_v44  ;;  %843 = vmatprep.subr.bf16.mxu1 %v2295_v45 }
 0x191   :  { %803 = vmatpush1.bf16.msra.mxu0 %v2301_v47  ;;  %844 = vmatpush1.bf16.msra.mxu1 %v2303_v48 }
 0x192   :  { %804 = vmatprep.subr.bf16.mxu0 %v2307_v49  ;;  %845 = vmatprep.subr.bf16.mxu1 %v2309_v50 }
 0x195   :  { %805 = vmatpush1.bf16.msra.mxu0 %v2315_v51  ;;  %846 = vmatpush1.bf16.msra.mxu1 %v2317_v52 }
 0x196   :  { %906 = vmatprep.subr.bf16.mxu0 %v2213_v11  ;;  %947 = vmatprep.subr.bf16.mxu1 %v2215_v13 }
 0x24b   :  { %v708_v6 = vpop.f32.mrb[20].mxu0  ;;  %v749_v53 = vpop.f32.mrb[20].mxu1 }
 0x24c   :  { %v756_v56 = vadd.f32 %v708_v6, %v2374_v8  ;;  %v758_v60 = vadd.f32 %v749_v53, %v2377_v10  ;;  %v710_v9 = vpop.f32.mrb[21].mxu0  ;;  %v751_v35 = vpop.f32.mrb[21].mxu1 }
 0x24d   :  { %v757_v62 = vadd.f32 %v710_v9, %v2379_v20  ;;  %v759_v61 = vadd.f32 %v751_v35, %v2382_v21  ;;  %v712_v63 = vpop.f32.mrb[22].mxu0  ;;  %v753_v2 = vpop.f32.mrb[22].mxu1 }
 0x24e   :  { %v1647_v1 = vmul.f32 -1.442695, %v756_v56  ;;  %v713_v3 = vpop.f32.mrb[23].mxu0  ;;  %v754_v0 = vpop.f32.mrb[23].mxu1 }
 0x24f   :  { %v1648_v4 = vmul.f32 -1.442695, %v757_v62  ;;  %v1649_v5 = vmul.f32 -1.442695, %v759_v61 }
 0x250   :  { %1834 = vpow2.f32 %v1647_v1  ;;  %v2802_v1 = vld [vmem:[#allocation18_spill] sm:$0xff] }
 0x251   :  { %1836 = vpow2.f32 %v1648_v4 }
 0x252   :  { %1838 = vpow2.f32 %v1649_v5 }
 0x253   :  { %1840 = vtanh.f32 %v758_v60 }
 0x25a   :  { %v1835_v24 = vpop.eup %1834 }
 0x25b   :  { %v1837_v57 = vpop.eup %1836  ;;  %v763_v8 = vadd.f32 1.0, %v1835_v24 }
 0x25c   :  { %v769_v10 = vadd.f32 1.0, %v1837_v57  ;;  %v1839_v20 = vpop.eup %1838 }
 0x25d   :  { %1842 = vrcp.f32 %v763_v8  ;;  %v1841_v54 = vpop.eup %1840  ;;  %v776_v43 = vadd.f32 1.0, %v1839_v20 }
 0x25e   :  { %1844 = vrcp.f32 %v769_v10 }
 0x25f   :  { %1846 = vrcp.f32 %v776_v43 }
 0x267   :  { %v1843_v21 = vpop.eup %1842 }
 0x268   :  { %v1845_v12 = vpop.eup %1844  ;;  %v780_v59 = vmul.f32 %v1843_v21, %v1841_v54 }
 0x269   :  { %v779_v58 = vmul.f32 %v1845_v12, %v2448_v55  ;;  %v1847_v6 = vpop.eup %1846 }
 0x26b   :  { %v2490_v31 = vadd.f32 %v780_v59, %v779_v58 }
 0x26d   :  { %1848 = vtanh.f32 %v2490_v31 }
 0x277   :  { %v1849_v53 = vpop.eup %1848 }
 0x278   :  { %v783_v56 = vmul.f32 %v1849_v53, %v1847_v6 }
 0x27a   :  { %v789_v60 = vpack.c.bf16 %v783_v56, %v783_v56 }
 0x27c   :  { %823 = vmatmul.mubr.bf16.vlgmr.msra.gmra.mrb[24].mxu0 %v789_v60  ;;  %864 = vmatmul.mubr.bf16.vlgmr.msra.gmra.mrb[24].mxu1 %v789_v60 }
 0x27d   :  { %907 = vmatpush1.bf16.msra.mxu0 %v2217_v14  ;;  %948 = vmatpush1.bf16.msra.mxu1 %v2219_v15 }
 0x27e   :  { %908 = vmatprep.subr.bf16.mxu0 %v2223_v16  ;;  %949 = vmatprep.subr.bf16.mxu1 %v2225_v17 }
 0x27f   :  { %938 = vmatprep.mubr.bf16.mxu0 %v2801_v7  ;;  %979 = vmatprep.mubr.bf16.mxu1 %v2801_v7 }
 0x281   :  { %909 = vmatpush1.bf16.msra.mxu0 %v2227_v18  ;;  %950 = vmatpush1.bf16.msra.mxu1 %v2231_v19 }
 0x282   :  { %910 = vmatprep.subr.bf16.mxu0 %v2235_v22  ;;  %951 = vmatprep.subr.bf16.mxu1 %v2239_v23 }
 0x285   :  { %911 = vmatpush1.bf16.msra.mxu0 %v2245_v25  ;;  %952 = vmatpush1.bf16.msra.mxu1 %v2247_v26 }
 0x286   :  { %912 = vmatprep.subr.bf16.mxu0 %v2251_v27  ;;  %953 = vmatprep.subr.bf16.mxu1 %v2253_v28 }
 0x289   :  { %913 = vmatpush1.bf16.msra.mxu0 %v2255_v29  ;;  %954 = vmatpush1.bf16.msra.mxu1 %v2257_v30 }
 0x28a   :  { %914 = vmatprep.subr.bf16.mxu0 %v2263_v33  ;;  %955 = vmatprep.subr.bf16.mxu1 %v2267_v34 }
 0x28d   :  { %915 = vmatpush1.bf16.msra.mxu0 %v2271_v36  ;;  %956 = vmatpush1.bf16.msra.mxu1 %v2273_v37 }
 0x28e   :  { %916 = vmatprep.subr.bf16.mxu0 %v2277_v38  ;;  %957 = vmatprep.subr.bf16.mxu1 %v2281_v39 }
 0x291   :  { %917 = vmatpush1.bf16.msra.mxu0 %v2283_v40  ;;  %958 = vmatpush1.bf16.msra.mxu1 %v2287_v41 }
 0x292   :  { %918 = vmatprep.subr.bf16.mxu0 %v2293_v44  ;;  %959 = vmatprep.subr.bf16.mxu1 %v2295_v45 }
 0x295   :  { %919 = vmatpush1.bf16.msra.mxu0 %v2301_v47  ;;  %960 = vmatpush1.bf16.msra.mxu1 %v2303_v48 }
 0x296   :  { %920 = vmatprep.subr.bf16.mxu0 %v2307_v49  ;;  %961 = vmatprep.subr.bf16.mxu1 %v2309_v50 }
 0x299   :  { %921 = vmatpush1.bf16.msra.mxu0 %v2315_v51  ;;  %962 = vmatpush1.bf16.msra.mxu1 %v2317_v52 }
 0x29a   :  { %1022 = vmatprep.subr.bf16.mxu0 %v2213_v11  ;;  %1063 = vmatprep.subr.bf16.mxu1 %v2215_v13 }
 0x34f   :  { %v824_v55 = vpop.f32.mrb[24].mxu0  ;;  %v865_v9 = vpop.f32.mrb[24].mxu1 }
 0x350   :  { %v872_v35 = vadd.f32 %v824_v55, %v2384_v32  ;;  %v874_v62 = vadd.f32 %v865_v9, %v2387_v42  ;;  %v826_v61 = vpop.f32.mrb[25].mxu0  ;;  %v867_v63 = vpop.f32.mrb[25].mxu1 }
 0x351   :  { %v873_v2 = vadd.f32 %v826_v61, %v2389_v46  ;;  %v875_v3 = vadd.f32 %v867_v63, %v2802_v1  ;;  %v828_v0 = vpop.f32.mrb[26].mxu0  ;;  %v869_v4 = vpop.f32.mrb[26].mxu1  ;;  %v2804_v63 = vld [vmem:[#allocation20_spill] sm:$0xff] }
 0x352   :  { %v1650_v5 = vmul.f32 -1.442695, %v872_v35  ;;  %v829_v24 = vpop.f32.mrb[27].mxu0  ;;  %v870_v57 = vpop.f32.mrb[27].mxu1  ;;  %v2805_v0 = vld [vmem:[#allocation21_spill] sm:$0xff] }
 0x353   :  { %v1651_v8 = vmul.f32 -1.442695, %v873_v2  ;;  %v1652_v10 = vmul.f32 -1.442695, %v875_v3 }
 0x354   :  { %1850 = vpow2.f32 %v1650_v5  ;;  %v2806_v5 = vld [vmem:[#allocation22_spill] sm:$0xff] }
 0x355   :  { %1852 = vpow2.f32 %v1651_v8 }
 0x356   :  { %1854 = vpow2.f32 %v1652_v10 }
 0x357   :  { %1856 = vtanh.f32 %v874_v62  ;;  %v2803_v62 = vld [vmem:[#allocation19_spill] sm:$0xff] }
 0x35e   :  { %v1851_v20 = vpop.eup %1850 }
 0x35f   :  { %v1853_v54 = vpop.eup %1852  ;;  %v879_v32 = vadd.f32 1.0, %v1851_v20 }
 0x360   :  { %v885_v42 = vadd.f32 1.0, %v1853_v54  ;;  %v1855_v46 = vpop.eup %1854 }
 0x361   :  { %1858 = vrcp.f32 %v879_v32  ;;  %v1857_v21 = vpop.eup %1856  ;;  %v892_v58 = vadd.f32 1.0, %v1855_v46 }
 0x362   :  { %1860 = vrcp.f32 %v885_v42 }
 0x363   :  { %1862 = vrcp.f32 %v892_v58 }
 0x36b   :  { %v1859_v12 = vpop.eup %1858 }
 0x36c   :  { %v1861_v59 = vpop.eup %1860  ;;  %v896_v43 = vmul.f32 %v1859_v12, %v1857_v21 }
 0x36d   :  { %v895_v6 = vmul.f32 %v1861_v59, %v2490_v31  ;;  %v1863_v56 = vpop.eup %1862 }
 0x36f   :  { %v2532_v53 = vadd.f32 %v896_v43, %v895_v6 }
 0x371   :  { %1864 = vtanh.f32 %v2532_v53 }
 0x37b   :  { %v1865_v60 = vpop.eup %1864 }
 0x37c   :  { %v899_v55 = vmul.f32 %v1865_v60, %v1863_v56 }
 0x37e   :  { %v905_v9 = vpack.c.bf16 %v899_v55, %v899_v55 }
 0x380   :  { %939 = vmatmul.mubr.bf16.vlgmr.msra.gmra.mrb[28].mxu0 %v905_v9  ;;  %980 = vmatmul.mubr.bf16.vlgmr.msra.gmra.mrb[28].mxu1 %v905_v9 }
 0x381   :  { %1023 = vmatpush1.bf16.msra.mxu0 %v2217_v14  ;;  %1064 = vmatpush1.bf16.msra.mxu1 %v2219_v15 }
 0x382   :  { %1024 = vmatprep.subr.bf16.mxu0 %v2223_v16  ;;  %1065 = vmatprep.subr.bf16.mxu1 %v2225_v17 }
 0x383   :  { %1054 = vmatprep.mubr.bf16.mxu0 %v2801_v7  ;;  %1095 = vmatprep.mubr.bf16.mxu1 %v2801_v7 }
 0x385   :  { %1025 = vmatpush1.bf16.msra.mxu0 %v2227_v18  ;;  %1066 = vmatpush1.bf16.msra.mxu1 %v2231_v19 }
 0x386   :  { %1026 = vmatprep.subr.bf16.mxu0 %v2235_v22  ;;  %1067 = vmatprep.subr.bf16.mxu1 %v2239_v23 }
 0x389   :  { %1027 = vmatpush1.bf16.msra.mxu0 %v2245_v25  ;;  %1068 = vmatpush1.bf16.msra.mxu1 %v2247_v26 }
 0x38a   :  { %1028 = vmatprep.subr.bf16.mxu0 %v2251_v27  ;;  %1069 = vmatprep.subr.bf16.mxu1 %v2253_v28 }
 0x38d   :  { %1029 = vmatpush1.bf16.msra.mxu0 %v2255_v29  ;;  %1070 = vmatpush1.bf16.msra.mxu1 %v2257_v30 }
 0x38e   :  { %1030 = vmatprep.subr.bf16.mxu0 %v2263_v33  ;;  %1071 = vmatprep.subr.bf16.mxu1 %v2267_v34 }
 0x391   :  { %1031 = vmatpush1.bf16.msra.mxu0 %v2271_v36  ;;  %1072 = vmatpush1.bf16.msra.mxu1 %v2273_v37 }
 0x392   :  { %1032 = vmatprep.subr.bf16.mxu0 %v2277_v38  ;;  %1073 = vmatprep.subr.bf16.mxu1 %v2281_v39 }
 0x395   :  { %1033 = vmatpush1.bf16.msra.mxu0 %v2283_v40  ;;  %1074 = vmatpush1.bf16.msra.mxu1 %v2287_v41 }
 0x396   :  { %1034 = vmatprep.subr.bf16.mxu0 %v2293_v44  ;;  %1075 = vmatprep.subr.bf16.mxu1 %v2295_v45 }
 0x399   :  { %1035 = vmatpush1.bf16.msra.mxu0 %v2301_v47  ;;  %1076 = vmatpush1.bf16.msra.mxu1 %v2303_v48 }
 0x39a   :  { %1036 = vmatprep.subr.bf16.mxu0 %v2307_v49  ;;  %1077 = vmatprep.subr.bf16.mxu1 %v2309_v50 }
 0x39d   :  { %1037 = vmatpush1.bf16.msra.mxu0 %v2315_v51  ;;  %1078 = vmatpush1.bf16.msra.mxu1 %v2317_v52 }
 0x39e   :  { %1138 = vmatprep.subr.bf16.mxu0 %v2213_v11  ;;  %1179 = vmatprep.subr.bf16.mxu1 %v2215_v13 }
 0x453   :  { %v940_v31 = vpop.f32.mrb[28].mxu0  ;;  %v981_v35 = vpop.f32.mrb[28].mxu1 }
 0x454   :  { %v988_v61 = vadd.f32 %v940_v31, %v2803_v62  ;;  %v990_v2 = vadd.f32 %v981_v35, %v2804_v63  ;;  %v942_v1 = vpop.f32.mrb[29].mxu0  ;;  %v983_v3 = vpop.f32.mrb[29].mxu1 }
 0x455   :  { %v989_v4 = vadd.f32 %v942_v1, %v2805_v0  ;;  %v991_v24 = vadd.f32 %v983_v3, %v2806_v5  ;;  %v944_v57 = vpop.f32.mrb[30].mxu0  ;;  %v985_v8 = vpop.f32.mrb[30].mxu1 }
 0x456   :  { %v1653_v10 = vmul.f32 -1.442695, %v988_v61  ;;  %v945_v20 = vpop.f32.mrb[31].mxu0  ;;  %v986_v54 = vpop.f32.mrb[31].mxu1 }
 0x457   :  { %v1654_v11 = vmul.f32 -1.442695, %v989_v4  ;;  %v1655_v13 = vmul.f32 -1.442695, %v991_v24 }
 0x458   :  { %1866 = vpow2.f32 %v1653_v10 }
 0x459   :  { %1868 = vpow2.f32 %v1654_v11  ;;  %v2623_v11 = vld [vmem:[#allocation10] ss:$16 sps:$4 sm:$0xff]  }
 0x45a   :  { %1870 = vpow2.f32 %v1655_v13  ;;  %v2626_v13 = vld [vmem:[#allocation10 + $0x8] ss:$16 sps:$4 sm:$0xff]  }
 0x45b   :  { %1872 = vtanh.f32 %v990_v2 }
 0x462   :  { %v1867_v32 = vpop.eup %1866 }
 0x463   :  { %v1869_v42 = vpop.eup %1868  ;;  %v995_v46 = vadd.f32 1.0, %v1867_v32  ;;  %v2629_v32 = vld [vmem:[#allocation10 + $0x24] ss:$16 sps:$4 sm:$0xff]  }
 0x464   :  { %v1001_v21 = vadd.f32 1.0, %v1869_v42  ;;  %v1871_v12 = vpop.eup %1870  ;;  %v2632_v42 = vld [vmem:[#allocation10 + $0x2c] ss:$16 sps:$4 sm:$0xff]  }
 0x465   :  { %1874 = vrcp.f32 %v995_v46  ;;  %v1873_v59 = vpop.eup %1872  ;;  %v1008_v56 = vadd.f32 1.0, %v1871_v12  ;;  %v2637_v46 = vld [vmem:[#allocation10 + $0x20] ss:$16 sps:$4 sm:$0xff]   ;;  %v2643_v12 = vld [vmem:[#allocation10 + $0x44] ss:$16 sps:$4 sm:$0xff]  }
 0x466   :  { %1876 = vrcp.f32 %v1001_v21  ;;  %v2640_v21 = vld [vmem:[#allocation10 + $0x28] ss:$16 sps:$4 sm:$0xff]  }
 0x467   :  { %1878 = vrcp.f32 %v1008_v56  ;;  %v2658_v56 = vld [vmem:[#allocation10 + $0x6c] ss:$16 sps:$4 sm:$0xff]  }
 0x46f   :  { %v1875_v43 = vpop.eup %1874 }
 0x470   :  { %v1877_v58 = vpop.eup %1876  ;;  %v1012_v6 = vmul.f32 %v1875_v43, %v1873_v59  ;;  %v2646_v59 = vld [vmem:[#allocation10 + $0x4c] ss:$16 sps:$4 sm:$0xff]   ;;  %v2649_v43 = vld [vmem:[#allocation10 + $0x40] ss:$16 sps:$4 sm:$0xff]  }
 0x471   :  { %v1011_v60 = vmul.f32 %v1877_v58, %v2532_v53  ;;  %v1879_v9 = vpop.eup %1878  ;;  %v2652_v58 = vld [vmem:[#allocation10 + $0x48] ss:$16 sps:$4 sm:$0xff]  }
 0x473   :  { %v2574_v55 = vadd.f32 %v1012_v6, %v1011_v60  ;;  %v2655_v6 = vld [vmem:[#allocation10 + $0x64] ss:$16 sps:$4 sm:$0xff]   ;;  %v2661_v60 = vld [vmem:[#allocation10 + $0x60] ss:$16 sps:$4 sm:$0xff]  }
 0x475   :  { %1880 = vtanh.f32 %v2574_v55 }
 0x47f   :  { %v1881_v31 = vpop.eup %1880 }
 0x480   :  { %v1015_v35 = vmul.f32 %v1881_v31, %v1879_v9  ;;  %v2667_v9 = vld [vmem:[#allocation10 + $0x84] ss:$16 sps:$4 sm:$0xff]   ;;  %v2670_v31 = vld [vmem:[#allocation10 + $0x8c] ss:$16 sps:$4 sm:$0xff]  }
 0x482   :  { %v1021_v62 = vpack.c.bf16 %v1015_v35, %v1015_v35  ;;  %v2673_v35 = vld [vmem:[#allocation10 + $0x80] ss:$16 sps:$4 sm:$0xff]  }
 0x484   :  { %1055 = vmatmul.mubr.bf16.vlgmr.msra.gmra.mrb[32].mxu0 %v1021_v62  ;;  %1096 = vmatmul.mubr.bf16.vlgmr.msra.gmra.mrb[32].mxu1 %v1021_v62  ;;  %v2676_v62 = vld [vmem:[#allocation10 + $0x88] ss:$16 sps:$4 sm:$0xff]  }
 0x485   :  { %1139 = vmatpush1.bf16.msra.mxu0 %v2217_v14  ;;  %1180 = vmatpush1.bf16.msra.mxu1 %v2219_v15  ;;  %v2609_v14 = vld [vmem:[#allocation10 + $0x4] ss:$16 sps:$4 sm:$0xff]   ;;  %v2612_v15 = vld [vmem:[#allocation10 + $0xc] ss:$16 sps:$4 sm:$0xff]  }
 0x486   :  { %1140 = vmatprep.subr.bf16.mxu0 %v2223_v16  ;;  %1181 = vmatprep.subr.bf16.mxu1 %v2225_v17 }
 0x487   :  { %1170 = vmatprep.mubr.bf16.mxu0 %v2801_v7  ;;  %1211 = vmatprep.mubr.bf16.mxu1 %v2801_v7 }
 0x489   :  { %1141 = vmatpush1.bf16.msra.mxu0 %v2227_v18  ;;  %1182 = vmatpush1.bf16.msra.mxu1 %v2231_v19  ;;  %v2807_v18 = vld [vmem:[#allocation23_spill] sm:$0xff] }
 0x48a   :  { %1142 = vmatprep.subr.bf16.mxu0 %v2235_v22  ;;  %1183 = vmatprep.subr.bf16.mxu1 %v2239_v23  ;;  %v2808_v22 = vld [vmem:[#allocation24_spill] sm:$0xff] }
 0x48d   :  { %1143 = vmatpush1.bf16.msra.mxu0 %v2245_v25  ;;  %1184 = vmatpush1.bf16.msra.mxu1 %v2247_v26 }
 0x48e   :  { %1144 = vmatprep.subr.bf16.mxu0 %v2251_v27  ;;  %1185 = vmatprep.subr.bf16.mxu1 %v2253_v28  ;;  %v2809_v27 = vld [vmem:[#allocation25_spill] sm:$0xff] }
 0x491   :  { %1145 = vmatpush1.bf16.msra.mxu0 %v2255_v29  ;;  %1186 = vmatpush1.bf16.msra.mxu1 %v2257_v30  ;;  %v2810_v29 = vld [vmem:[#allocation26_spill] sm:$0xff] }
 0x492   :  { %1146 = vmatprep.subr.bf16.mxu0 %v2263_v33  ;;  %1187 = vmatprep.subr.bf16.mxu1 %v2267_v34 }
 0x495   :  { %1147 = vmatpush1.bf16.msra.mxu0 %v2271_v36  ;;  %1188 = vmatpush1.bf16.msra.mxu1 %v2273_v37 }
 0x496   :  { %1148 = vmatprep.subr.bf16.mxu0 %v2277_v38  ;;  %1189 = vmatprep.subr.bf16.mxu1 %v2281_v39 }
 0x499   :  { %1149 = vmatpush1.bf16.msra.mxu0 %v2283_v40  ;;  %1190 = vmatpush1.bf16.msra.mxu1 %v2287_v41 }
 0x49a   :  { %1150 = vmatprep.subr.bf16.mxu0 %v2293_v44  ;;  %1191 = vmatprep.subr.bf16.mxu1 %v2295_v45 }
 0x49d   :  { %1151 = vmatpush1.bf16.msra.mxu0 %v2301_v47  ;;  %1192 = vmatpush1.bf16.msra.mxu1 %v2303_v48 }
 0x49e   :  { %1152 = vmatprep.subr.bf16.mxu0 %v2307_v49  ;;  %1193 = vmatprep.subr.bf16.mxu1 %v2309_v50 }
 0x4a1   :  { %1153 = vmatpush1.bf16.msra.mxu0 %v2315_v51  ;;  %1194 = vmatpush1.bf16.msra.mxu1 %v2317_v52 }
 0x4a2   :  { %1254 = vmatprep.subr.bf16.mxu0 %v2609_v14  ;;  %1295 = vmatprep.subr.bf16.mxu1 %v2612_v15 }
 0x557   :  { %v1056_v16 = vpop.f32.mrb[32].mxu0  ;;  %v1097_v17 = vpop.f32.mrb[32].mxu1 }
 0x558   :  { %v1104_v19 = vadd.f32 %v1056_v16, %v2807_v18  ;;  %v1106_v23 = vadd.f32 %v1097_v17, %v2808_v22  ;;  %v1058_v25 = vpop.f32.mrb[33].mxu0  ;;  %v1099_v26 = vpop.f32.mrb[33].mxu1  ;;  %v2679_v16 = vld [vmem:[#allocation10 + $0xa4] ss:$16 sps:$4 sm:$0xff]   ;;  %v2682_v17 = vld [vmem:[#allocation10 + $0xac] ss:$16 sps:$4 sm:$0xff]  }
 0x559   :  { %v1105_v28 = vadd.f32 %v1058_v25, %v2809_v27  ;;  %v1107_v30 = vadd.f32 %v1099_v26, %v2810_v29  ;;  %v1060_v33 = vpop.f32.mrb[34].mxu0  ;;  %v1101_v34 = vpop.f32.mrb[34].mxu1  ;;  %v2685_v18 = vld [vmem:[#allocation10 + $0xa0] ss:$16 sps:$4 sm:$0xff]   ;;  %v2812_v25 = vld [vmem:[#allocation28_spill] sm:$0xff] }
 0x55a   :  { %v1656_v36 = vmul.f32 -1.442695, %v1104_v19  ;;  %v1061_v37 = vpop.f32.mrb[35].mxu0  ;;  %v1102_v38 = vpop.f32.mrb[35].mxu1  ;;  %v2688_v19 = vld [vmem:[#allocation10 + $0xa8] ss:$16 sps:$4 sm:$0xff]  }
 0x55b   :  { %v1657_v39 = vmul.f32 -1.442695, %v1105_v28  ;;  %v1658_v40 = vmul.f32 -1.442695, %v1107_v30  ;;  %v2813_v27 = vld [vmem:[#allocation29_spill] sm:$0xff]  ;;  %v2814_v28 = vld [vmem:[#allocation30_spill] sm:$0xff] }
 0x55c   :  { %1882 = vpow2.f32 %v1656_v36 }
 0x55d   :  { %1884 = vpow2.f32 %v1657_v39 }
 0x55e   :  { %1886 = vpow2.f32 %v1658_v40 }
 0x55f   :  { %1888 = vtanh.f32 %v1106_v23  ;;  %v2811_v23 = vld [vmem:[#allocation27_spill] sm:$0xff] }
 0x566   :  { %v1883_v41 = vpop.eup %1882 }
 0x567   :  { %v1885_v53 = vpop.eup %1884  ;;  %v1111_v61 = vadd.f32 1.0, %v1883_v41 }
 0x568   :  { %v1117_v63 = vadd.f32 1.0, %v1885_v53  ;;  %v1887_v2 = vpop.eup %1886 }
 0x569   :  { %1890 = vrcp.f32 %v1111_v61  ;;  %v1889_v1 = vpop.eup %1888  ;;  %v1124_v5 = vadd.f32 1.0, %v1887_v2 }
 0x56a   :  { %1892 = vrcp.f32 %v1117_v63 }
 0x56b   :  { %1894 = vrcp.f32 %v1124_v5 }
 0x573   :  { %v1891_v3 = vpop.eup %1890 }
 0x574   :  { %v1893_v0 = vpop.eup %1892  ;;  %v1128_v4 = vmul.f32 %v1891_v3, %v1889_v1 }
 0x575   :  { %v1127_v24 = vmul.f32 %v1893_v0, %v2574_v55  ;;  %v1895_v8 = vpop.eup %1894  ;;  %v2664_v55 = vld [vmem:[#allocation10 + $0x68] ss:$16 sps:$4 sm:$0xff]  }
 0x577   :  { %v2620_v57 = vadd.f32 %v1128_v4, %v1127_v24  ;;  %v1971_v24 = vld [vmem:[#allocation10 + $0xcc] ss:$16 sps:$4 sm:$0xff]  }
 0x579   :  { %1896 = vtanh.f32 %v2620_v57 }
 0x583   :  { %v1897_v10 = vpop.eup %1896 }
 0x584   :  { %v1131_v20 = vmul.f32 %v1897_v10, %v1895_v8  ;;  %v1973_v8 = vld [vmem:[#allocation10 + $0xc8] ss:$16 sps:$4 sm:$0xff]   ;;  %v1974_v10 = vld [vmem:[#allocation10 + $0xe4] ss:$16 sps:$4 sm:$0xff]  }
 0x586   :  { %v1137_v54 = vpack.c.bf16 %v1131_v20, %v1131_v20  ;;  %v1975_v20 = vld [vmem:[#allocation10 + $0xec] ss:$16 sps:$4 sm:$0xff]  }
 0x588   :  { %1171 = vmatmul.mubr.bf16.vlgmr.msra.gmra.mrb[36].mxu0 %v1137_v54  ;;  %1212 = vmatmul.mubr.bf16.vlgmr.msra.gmra.mrb[36].mxu1 %v1137_v54  ;;  %v1976_v54 = vld [vmem:[#allocation10 + $0xe0] ss:$16 sps:$4 sm:$0xff]  }
 0x589   :  { %1255 = vmatpush1.bf16.msra.mxu0 %v2623_v11  ;;  %1296 = vmatpush1.bf16.msra.mxu1 %v2626_v13 }
 0x58a   :  { %1256 = vmatprep.subr.bf16.mxu0 %v2629_v32  ;;  %1297 = vmatprep.subr.bf16.mxu1 %v2632_v42 }
 0x58b   :  { %1286 = vmatprep.mubr.bf16.mxu0 %v2801_v7  ;;  %1327 = vmatprep.mubr.bf16.mxu1 %v2801_v7 }
 0x58d   :  { %1257 = vmatpush1.bf16.msra.mxu0 %v2637_v46  ;;  %1298 = vmatpush1.bf16.msra.mxu1 %v2640_v21 }
 0x58e   :  { %1258 = vmatprep.subr.bf16.mxu0 %v2643_v12  ;;  %1299 = vmatprep.subr.bf16.mxu1 %v2646_v59 }
 0x591   :  { %1259 = vmatpush1.bf16.msra.mxu0 %v2649_v43  ;;  %1300 = vmatpush1.bf16.msra.mxu1 %v2652_v58 }
 0x592   :  { %1260 = vmatprep.subr.bf16.mxu0 %v2655_v6  ;;  %1301 = vmatprep.subr.bf16.mxu1 %v2658_v56 }
 0x595   :  { %1261 = vmatpush1.bf16.msra.mxu0 %v2661_v60  ;;  %1302 = vmatpush1.bf16.msra.mxu1 %v2664_v55 }
 0x596   :  { %1262 = vmatprep.subr.bf16.mxu0 %v2667_v9  ;;  %1303 = vmatprep.subr.bf16.mxu1 %v2670_v31 }
 0x599   :  { %1263 = vmatpush1.bf16.msra.mxu0 %v2673_v35  ;;  %1304 = vmatpush1.bf16.msra.mxu1 %v2676_v62 }
 0x59a   :  { %1264 = vmatprep.subr.bf16.mxu0 %v2679_v16  ;;  %1305 = vmatprep.subr.bf16.mxu1 %v2682_v17 }
 0x59d   :  { %1265 = vmatpush1.bf16.msra.mxu0 %v2685_v18  ;;  %1306 = vmatpush1.bf16.msra.mxu1 %v2688_v19 }
 0x59e   :  { %1266 = vmatprep.subr.bf16.mxu0 %v2293_v44  ;;  %1307 = vmatprep.subr.bf16.mxu1 %v2295_v45 }
 0x5a1   :  { %1267 = vmatpush1.bf16.msra.mxu0 %v2301_v47  ;;  %1308 = vmatpush1.bf16.msra.mxu1 %v2303_v48 }
 0x5a2   :  { %1268 = vmatprep.subr.bf16.mxu0 %v2307_v49  ;;  %1309 = vmatprep.subr.bf16.mxu1 %v2309_v50 }
 0x5a5   :  { %1269 = vmatpush1.bf16.msra.mxu0 %v2315_v51  ;;  %1310 = vmatpush1.bf16.msra.mxu1 %v2317_v52 }
 0x5a6   :  { %1370 = vmatprep.subr.bf16.mxu0 %v2609_v14  ;;  %1411 = vmatprep.subr.bf16.mxu1 %v2612_v15 }
 0x65b   :  { %v1172_v22 = vpop.f32.mrb[36].mxu0  ;;  %v1213_v44 = vpop.f32.mrb[36].mxu1 }
 0x65c   :  { %v1220_v45 = vadd.f32 %v1172_v22, %v2811_v23  ;;  %v1222_v47 = vadd.f32 %v1213_v44, %v2812_v25  ;;  %v1174_v26 = vpop.f32.mrb[37].mxu0  ;;  %v1215_v48 = vpop.f32.mrb[37].mxu1 }
 0x65d   :  { %v1221_v49 = vadd.f32 %v1174_v26, %v2813_v27  ;;  %v1223_v50 = vadd.f32 %v1215_v48, %v2814_v28  ;;  %v1176_v29 = vpop.f32.mrb[38].mxu0  ;;  %v1217_v51 = vpop.f32.mrb[38].mxu1 }
 0x65e   :  { %v1659_v30 = vmul.f32 -1.442695, %v1220_v45  ;;  %v1177_v52 = vpop.f32.mrb[39].mxu0  ;;  %v1218_v33 = vpop.f32.mrb[39].mxu1 }
 0x65f   :  { %v1660_v14 = vmul.f32 -1.442695, %v1221_v49  ;;  %v1661_v15 = vmul.f32 -1.442695, %v1223_v50  ;;  %v1485_v52 = vld [vmem:[#allocation11] sm:$0xff]  ;;  %v1486_v33 = vld [vmem:[#allocation11 + $0x8] sm:$0xff] }
 0x660   :  { %1898 = vpow2.f32 %v1659_v30 }
 0x661   :  { %1900 = vpow2.f32 %v1660_v14  ;;  %v1722_v14 = vpack.c.bf16 %v1486_v33, %v1485_v52 }
 0x662   :  { %1902 = vpow2.f32 %v1661_v15  ;;  %v1487_v15 = vld [vmem:[#allocation11 + $0x10] sm:$0xff] }
 0x663   :  { %1904 = vtanh.f32 %v1222_v47 }
 0x66a   :  { %v1899_v34 = vpop.eup %1898 }
 0x66b   :  { %v1901_v36 = vpop.eup %1900  ;;  %v1227_v37 = vadd.f32 1.0, %v1899_v34  ;;  %v1488_v34 = vld [vmem:[#allocation11 + $0x18] sm:$0xff] }
 0x66c   :  { %v1233_v38 = vadd.f32 1.0, %v1901_v36  ;;  %v1903_v39 = vpop.eup %1902  ;;  %v1725_v36 = vpack.c.bf16 %v1488_v34, %v1487_v15 }
 0x66d   :  { %1906 = vrcp.f32 %v1227_v37  ;;  %v1905_v40 = vpop.eup %1904  ;;  %v1240_v63 = vadd.f32 1.0, %v1903_v39  ;;  %v1489_v37 = vld [vmem:[#allocation11 + $0x20] sm:$0xff] }
 0x66e   :  { %1908 = vrcp.f32 %v1233_v38  ;;  %v1490_v38 = vld [vmem:[#allocation11 + $0x28] sm:$0xff] }
 0x66f   :  { %1910 = vrcp.f32 %v1240_v63  ;;  %v1728_v39 = vpack.c.bf16 %v1490_v38, %v1489_v37  ;;  %v1494_v63 = vld [vmem:[#allocation11 + $0x48] sm:$0xff] }
 0x677   :  { %v1907_v41 = vpop.eup %1906 }
 0x678   :  { %v1909_v53 = vpop.eup %1908  ;;  %v1244_v61 = vmul.f32 %v1907_v41, %v1905_v40  ;;  %v1491_v40 = vld [vmem:[#allocation11 + $0x30] sm:$0xff]  ;;  %v1492_v41 = vld [vmem:[#allocation11 + $0x38] sm:$0xff] }
 0x679   :  { %v1243_v2 = vmul.f32 %v1909_v53, %v2620_v57  ;;  %v1911_v3 = vpop.eup %1910  ;;  %v1972_v57 = vld [vmem:[#allocation10 + $0xc0] ss:$16 sps:$4 sm:$0xff]   ;;  %v1731_v53 = vpack.c.bf16 %v1492_v41, %v1491_v40 }
 0x67b   :  { %v2706_v1 = vadd.f32 %v1244_v61, %v1243_v2  ;;  %v1493_v61 = vld [vmem:[#allocation11 + $0x40] sm:$0xff] }
 0x67c   :  { %v1734_v2 = vpack.c.bf16 %v1494_v63, %v1493_v61 }
 0x67d   :  { %1912 = vtanh.f32 %v2706_v1 }
 0x687   :  { %v1913_v0 = vpop.eup %1912 }
 0x688   :  { %v1247_v4 = vmul.f32 %v1913_v0, %v1911_v3  ;;  %v1496_v3 = vld [vmem:[#allocation11 + $0x58] sm:$0xff]  ;;  %v1497_v0 = vld [vmem:[#allocation11 + $0x60] sm:$0xff] }
 0x68a   :  { %v1253_v5 = vpack.c.bf16 %v1247_v4, %v1247_v4 }
 0x68c   :  { %1287 = vmatmul.mubr.bf16.vlgmr.msra.gmra.mrb[40].mxu0 %v1253_v5  ;;  %1328 = vmatmul.mubr.bf16.vlgmr.msra.gmra.mrb[40].mxu1 %v1253_v5  ;;  %v1498_v5 = vld [vmem:[#allocation11 + $0x68] sm:$0xff] }
 0x68d   :  { %1371 = vmatpush1.bf16.msra.mxu0 %v2623_v11  ;;  %1412 = vmatpush1.bf16.msra.mxu1 %v2626_v13  ;;  %v1977_v11 = vld [vmem:[#allocation10 + $0xe8] ss:$16 sps:$4 sm:$0xff]   ;;  %v2815_v13 = vmov 0.0|0.0  }
 0x68e   :  { %1372 = vmatprep.subr.bf16.mxu0 %v2629_v32  ;;  %1413 = vmatprep.subr.bf16.mxu1 %v2632_v42 }
 0x68f   :  { %1402 = vmatprep.mubr.bf16.mxu0 %v2801_v7  ;;  %1443 = vmatprep.mubr.bf16.mxu1 %v2801_v7  ;;  %v1970_v7 = vld [vmem:[#allocation10 + $0xc4] ss:$16 sps:$4 sm:$0xff]  }
 0x691   :  { %1373 = vmatpush1.bf16.msra.mxu0 %v2637_v46  ;;  %1414 = vmatpush1.bf16.msra.mxu1 %v2640_v21  ;;  %v2816_v46 = vld [vmem:[#allocation31_spill] sm:$0xff] }
 0x692   :  { %1374 = vmatprep.subr.bf16.mxu0 %v2643_v12  ;;  %1415 = vmatprep.subr.bf16.mxu1 %v2646_v59  ;;  %v2817_v12 = vld [vmem:[#allocation32_spill] sm:$0xff] }
 0x695   :  { %1375 = vmatpush1.bf16.msra.mxu0 %v2649_v43  ;;  %1416 = vmatpush1.bf16.msra.mxu1 %v2652_v58 }
 0x696   :  { %1376 = vmatprep.subr.bf16.mxu0 %v2655_v6  ;;  %1417 = vmatprep.subr.bf16.mxu1 %v2658_v56  ;;  %v2818_v6 = vld [vmem:[#allocation33_spill] sm:$0xff] }
 0x699   :  { %1377 = vmatpush1.bf16.msra.mxu0 %v2661_v60  ;;  %1418 = vmatpush1.bf16.msra.mxu1 %v2664_v55  ;;  %v2819_v60 = vld [vmem:[#allocation34_spill] sm:$0xff] }
 0x69a   :  { %1378 = vmatprep.subr.bf16.mxu0 %v2667_v9  ;;  %1419 = vmatprep.subr.bf16.mxu1 %v2670_v31 }
 0x69d   :  { %1379 = vmatpush1.bf16.msra.mxu0 %v2673_v35  ;;  %1420 = vmatpush1.bf16.msra.mxu1 %v2676_v62 }
 0x69e   :  { %1380 = vmatprep.subr.bf16.mxu0 %v2679_v16  ;;  %1421 = vmatprep.subr.bf16.mxu1 %v2682_v17 }
 0x6a1   :  { %1381 = vmatpush1.bf16.msra.mxu0 %v2685_v18  ;;  %1422 = vmatpush1.bf16.msra.mxu1 %v2688_v19 }
 0x6a2   :  { %1382 = vmatprep.subr.bf16.mxu0 %v1970_v7  ;;  %1423 = vmatprep.subr.bf16.mxu1 %v1971_v24  ;;  %v2107_v7 = vmov 0.0   ;;  %v1740_v24 = vpack.c.bf16 %v1498_v5, %v1497_v0 }
 0x6a5   :  { %1383 = vmatpush1.bf16.msra.mxu0 %v1972_v57  ;;  %1424 = vmatpush1.bf16.msra.mxu1 %v1973_v8  ;;  %v1499_v57 = vld [vmem:[#allocation11 + $0x70] sm:$0xff]  ;;  %v1500_v8 = vld [vmem:[#allocation11 + $0x78] sm:$0xff] }
 0x6a6   :  { %1384 = vmatprep.subr.bf16.mxu0 %v1974_v10  ;;  %1425 = vmatprep.subr.bf16.mxu1 %v1975_v20  ;;  %v1743_v10 = vpack.c.bf16 %v1500_v8, %v1499_v57 }
 0x6a9   :  { %1385 = vmatpush1.bf16.msra.mxu0 %v1976_v54  ;;  %1426 = vmatpush1.bf16.msra.mxu1 %v1977_v11  ;;  %v2820_v11 = vld [vmem:[#allocation35_spill] sm:$0xff] }
 0x6aa   :  { %1721 = vmatprep.subr.bf16.mxu0 %v2815_v13 }
 0x75f   :  { %v1288_v32 = vpop.f32.mrb[40].mxu0  ;;  %v1329_v42 = vpop.f32.mrb[40].mxu1 }
 0x760   :  { %v1336_v21 = vadd.f32 %v1288_v32, %v2816_v46  ;;  %v1338_v59 = vadd.f32 %v1329_v42, %v2817_v12  ;;  %v1290_v43 = vpop.f32.mrb[41].mxu0  ;;  %v1331_v58 = vpop.f32.mrb[41].mxu1  ;;  %v2821_v42 = vld [vmem:[#allocation36_spill] sm:$0xff] }
 0x761   :  { %v1337_v56 = vadd.f32 %v1290_v43, %v2818_v6  ;;  %v1339_v55 = vadd.f32 %v1331_v58, %v2819_v60  ;;  %v1292_v9 = vpop.f32.mrb[42].mxu0  ;;  %v1333_v31 = vpop.f32.mrb[42].mxu1  ;;  %v2823_v58 = vld [vmem:[#allocation38_spill] sm:$0xff] }
 0x762   :  { %v1662_v35 = vmul.f32 -1.442695, %v1336_v21  ;;  %v1293_v62 = vpop.f32.mrb[43].mxu0  ;;  %v1334_v16 = vpop.f32.mrb[43].mxu1 }
 0x763   :  { %v1663_v17 = vmul.f32 -1.442695, %v1337_v56  ;;  %v1664_v18 = vmul.f32 -1.442695, %v1339_v55 }
 0x764   :  { %1914 = vpow2.f32 %v1662_v35 }
 0x765   :  { %1916 = vpow2.f32 %v1663_v17 }
 0x766   :  { %1918 = vpow2.f32 %v1664_v18 }
 0x767   :  { %1920 = vtanh.f32 %v1338_v59  ;;  %v2822_v59 = vld [vmem:[#allocation37_spill] sm:$0xff] }
 0x76e   :  { %v1915_v19 = vpop.eup %1914 }
 0x76f   :  { %v1917_v22 = vpop.eup %1916  ;;  %v1343_v44 = vadd.f32 1.0, %v1915_v19 }
 0x770   :  { %v1349_v23 = vadd.f32 1.0, %v1917_v22  ;;  %v1919_v45 = vpop.eup %1918 }
 0x771   :  { %1922 = vrcp.f32 %v1343_v44  ;;  %v1921_v25 = vpop.eup %1920  ;;  %v1356_v27 = vadd.f32 1.0, %v1919_v45 }
 0x772   :  { %1924 = vrcp.f32 %v1349_v23 }
 0x773   :  { %1926 = vrcp.f32 %v1356_v27 }
 0x77b   :  { %v1923_v47 = vpop.eup %1922 }
 0x77c   :  { %v1925_v26 = vpop.eup %1924  ;;  %v1360_v48 = vmul.f32 %v1923_v47, %v1921_v25 }
 0x77d   :  { %v1359_v49 = vmul.f32 %v1925_v26, %v2706_v1  ;;  %v1927_v50 = vpop.eup %1926  ;;  %v1495_v1 = vld [vmem:[#allocation11 + $0x50] sm:$0xff] }
 0x77e   :  { %v1737_v4 = vpack.c.bf16 %v1496_v3, %v1495_v1 }
 0x77f   :  { %v2739_v28 = vadd.f32 %v1360_v48, %v1359_v49 }
 0x781   :  { %1928 = vtanh.f32 %v2739_v28 }
 0x78b   :  { %v1929_v29 = vpop.eup %1928 }
 0x78c   :  { %v1363_v51 = vmul.f32 %v1929_v29, %v1927_v50  ;;  %v1668_v50 = vld [vmem:[%s2774_s5] ss:$0 sm:$0xff] }
 0x78e   :  { %v1369_v30 = vpack.c.bf16 %v1363_v51, %v1363_v51 }
 0x790   :  { %1403 = vmatmul.mubr.bf16.vlgmr.msra.gmra.mrb[44].mxu0 %v1369_v30  ;;  %1444 = vmatmul.mubr.bf16.vlgmr.msra.gmra.mrb[44].mxu1 %v1369_v30 }
 0x791   :  { %1723 = vmatpush3.bf16.msra.mxu0 %v1722_v14  ;;  %1718 = vmatprep.mubr.msk.f32.mxu0 %vm2106_vm1, %v2107_v7 }
 0x792   :  { %1724 = vmatprep.subr.bf16.mxu0 %v2815_v13 }
 0x795   :  { %1726 = vmatpush3.bf16.msra.mxu0 %v1725_v36 }
 0x796   :  { %1727 = vmatprep.subr.bf16.mxu0 %v2815_v13 }
 0x799   :  { %1729 = vmatpush3.bf16.msra.mxu0 %v1728_v39 }
 0x79a   :  { %1730 = vmatprep.subr.bf16.mxu0 %v2815_v13 }
 0x79d   :  { %1732 = vmatpush3.bf16.msra.mxu0 %v1731_v53 }
 0x79e   :  { %1733 = vmatprep.subr.bf16.mxu0 %v2815_v13 }
 0x7a1   :  { %1735 = vmatpush3.bf16.msra.mxu0 %v1734_v2 }
 0x7a2   :  { %1736 = vmatprep.subr.bf16.mxu0 %v2815_v13 }
 0x7a5   :  { %1738 = vmatpush3.bf16.msra.mxu0 %v1737_v4 }
 0x7a6   :  { %1739 = vmatprep.subr.bf16.mxu0 %v2815_v13 }
 0x7a9   :  { %1741 = vmatpush3.bf16.msra.mxu0 %v1740_v24 }
 0x7aa   :  { %1742 = vmatprep.subr.bf16.mxu0 %v2815_v13 }
 0x7ad   :  { %1744 = vmatpush3.bf16.msra.mxu0 %v1743_v10 }
 0x863   :  { %v1404_v20 = vpop.f32.mrb[44].mxu0  ;;  %v1445_v54 = vpop.f32.mrb[44].mxu1 }
 0x864   :  { %v1452_v32 = vadd.f32 %v1404_v20, %v2820_v11  ;;  %v1454_v46 = vadd.f32 %v1445_v54, %v2821_v42  ;;  %v1406_v21 = vpop.f32.mrb[45].mxu0  ;;  %v1447_v12 = vpop.f32.mrb[45].mxu1 }
 0x865   :  { %v1453_v43 = vadd.f32 %v1406_v21, %v2822_v59  ;;  %v1455_v6 = vadd.f32 %v1447_v12, %v2823_v58  ;;  %v1408_v56 = vpop.f32.mrb[46].mxu0  ;;  %v1449_v60 = vpop.f32.mrb[46].mxu1 }
 0x866   :  { %v1665_v55 = vmul.f32 -1.442695, %v1452_v32  ;;  %v1409_v9 = vpop.f32.mrb[47].mxu0  ;;  %v1450_v31 = vpop.f32.mrb[47].mxu1 }
 0x867   :  { %v1666_v35 = vmul.f32 -1.442695, %v1453_v43  ;;  %v1667_v13 = vmul.f32 -1.442695, %v1455_v6 }
 0x868   :  { %1930 = vpow2.f32 %v1665_v55 }
 0x869   :  { %1932 = vpow2.f32 %v1666_v35 }
 0x86a   :  { %1934 = vpow2.f32 %v1667_v13 }
 0x86b   :  { %1936 = vtanh.f32 %v1454_v46 }
 0x872   :  { %v1931_v62 = vpop.eup %1930 }
 0x873   :  { %v1933_v16 = vpop.eup %1932  ;;  %v1459_v17 = vadd.f32 1.0, %v1931_v62 }
 0x874   :  { %v1465_v18 = vadd.f32 1.0, %v1933_v16  ;;  %v1935_v19 = vpop.eup %1934 }
 0x875   :  { %1938 = vrcp.f32 %v1459_v17  ;;  %v1937_v22 = vpop.eup %1936  ;;  %v1472_v25 = vadd.f32 1.0, %v1935_v19 }
 0x876   :  { %1940 = vrcp.f32 %v1465_v18 }
 0x877   :  { %1942 = vrcp.f32 %v1472_v25 }
 0x87f   :  { %v1939_v44 = vpop.eup %1938 }
 0x880   :  { %v1941_v23 = vpop.eup %1940  ;;  %v1476_v45 = vmul.f32 %v1939_v44, %v1937_v22 }
 0x881   :  { %v1475_v47 = vmul.f32 %v1941_v23, %v2739_v28  ;;  %v1943_v48 = vpop.eup %1942 }
 0x883   :  { %v1477_v26 = vadd.f32 %v1476_v45, %v1475_v47 }
 0x885   :  { %1944 = vtanh.f32 %v1477_v26 }
 0x88f   :  { %v1945_v27 = vpop.eup %1944 }
 0x890   :  { %v1479_v49 = vmul.f32 %v1945_v27, %v1943_v48 }
 0x892   :  { %1719 = vmatmul.mubr.f32.vlgmr.msra.gmra.mrb[48].mxu0 %v1479_v49 }
 0x965   :  { %v1574_v29 = vpop.f32.mrb[48].mxu0 }
 0x966   :  { %v1575_v51 = vadd.f32 %v1668_v50, %v1574_v29  ;;  %v1720_v30 = vpop.f32.mrb[49].mxu0 }
 0x968   :  { %1578 = vst [vmem:[#allocation13] sm:$0xff] %v1575_v51 }
 0x969   :  { %2077 = shalt.err (!%p2074_p8)
}
 0x96a   :  { %s2078_s28 = scalar_lea.hbm %s2775_s6, 128 }
 0x96b   :  { %p2079_p9 = scmp.ne.s32.totalorder %s2775_s6, %s2078_s28  ;;  %p2082_p10 = scmp.lt.u32.totalorder %s2078_s28, %s2775_s6 }
 0x96d   :  { %p2084_p11 = pnand %p2082_p10, %p2079_p9 }
 0x96f   :  { %2087 = shalt.err (!%p2084_p11)
}
 0x970   :  { %1588 = dma.vmem_to_hbm [thread:$0]  %s1586_s24, 128, %s2775_s6, [#allocation7]  }
 0x971   :  { %2094 = dma.done.wait [#allocation7], 128  }
 0x972   :  { %2095 = vsyncadd [#allocation7], 4294967168 }
 0x973   :  { %1592 = vsyncpa [#allocation6], 1 }
 0x974   :  { %1593 = vsyncpa [#allocation9], 1 }
 0x975   :  { %1594 = vsyncpa [#allocation12], 1 }
 0x976   :  { %1595 = vsyncpa [#allocation7], 1 }

</bundles_post_ra>
